<compile_context>
chip_gen: v5e
topology: v5e:2x2
jax: 0.10.0
libtpu: 0.0.40
codegen_flags: <defaults>
</compile_context>

<pallas_src>
import functools
import math

import jax
import jax.numpy as jnp
from jax.experimental import pallas as pl
from jax.experimental.pallas import tpu as pltpu


# ---------------------------------------------------------------------------
# helpers
# ---------------------------------------------------------------------------

def _round_up(x, m):
    return ((x + m - 1) // m) * m


_VMEM_BUDGET = 12 * 1024 * 1024  # leave headroom under v5e's 16 MiB scoped VMEM
_TK = 512                        # contraction tile (N_pad is a multiple of 512)


def _vmem_bytes(tm, tk, fi_pad, fo_pad, out_bytes):
    """Rough double-buffered VMEM footprint of one layer kernel."""
    ahat = 2 * tm * tk * 2             # bf16 Ahat tiles, double buffered
    h = 2 * tk * fi_pad * 2            # bf16 H tiles, double buffered
    w = 2 * fi_pad * fo_pad * 4        # resident f32 weight
    b = 2 * fo_pad * 4                 # resident f32 bias
    acc = tm * fi_pad * 4              # f32 accumulator scratch
    out = 2 * tm * fo_pad * out_bytes  # output tiles, double buffered
    return ahat + h + w + b + acc + out


def _pick_tm(n_pad, fi_pad, fo_pad, out_bytes):
    """Largest row tile from {2048,1024,512} fitting VMEM; prefer >=2 row tiles."""
    cands = [t for t in (2048, 1024, 512) if n_pad % t == 0]
    fitting = [t for t in cands
               if _vmem_bytes(t, _TK, fi_pad, fo_pad, out_bytes) <= _VMEM_BUDGET]
    if not fitting:
        fitting = [512]
    multi = [t for t in fitting if n_pad // t >= 2]   # keep megacore fed (v7x)
    return (multi or fitting)[0]


# ---------------------------------------------------------------------------
# fused per-layer kernel:  act((Ahat @ H) @ W + b)
# ---------------------------------------------------------------------------

def _gcn_layer_kernel(ahat_ref, h_ref, w_ref, b_ref, o_ref, acc_ref, *, relu):
    """Accumulate Ahat@H over k; at k==last fuse the weight matmul, bias, act."""
    k = pl.program_id(1)

    @pl.when(k == 0)
    def _():
        acc_ref[...] = jnp.zeros_like(acc_ref)

    # Dominant work: bf16 MXU matmul, f32 accumulation.
    acc_ref[...] += jnp.dot(
        ahat_ref[...], h_ref[...], preferred_element_type=jnp.float32
    )

    @pl.when(k == pl.num_programs(1) - 1)
    def _():
        # Tiny epilogue matmul (TM x fi_pad x fo_pad) kept in f32 for accuracy.
        out = jnp.dot(acc_ref[...], w_ref[...], preferred_element_type=jnp.float32)
        out = out + b_ref[...]                 # (TM, fo_pad) + (1, fo_pad)
        if relu:
            out = jnp.maximum(out, 0.0)
        o_ref[...] = out.astype(o_ref.dtype)


def gcn_layer(ahat_bf, h_bf, w_pad, b_pad, *, relu, out_dtype):
    """One fused GCN layer on padded operands. Returns (N_pad, fo_pad) out_dtype."""
    n_pad = ahat_bf.shape[0]
    fi_pad, fo_pad = w_pad.shape
    out_bytes = jnp.dtype(out_dtype).itemsize
    tm = _pick_tm(n_pad, fi_pad, fo_pad, out_bytes)
    grid = (n_pad // tm, n_pad // _TK)

    kernel = functools.partial(_gcn_layer_kernel, relu=relu)
    return pl.pallas_call(
        kernel,
        out_shape=jax.ShapeDtypeStruct((n_pad, fo_pad), out_dtype),
        grid=grid,
        in_specs=[
            pl.BlockSpec((tm, _TK), lambda i, k: (i, k)),          # Ahat tile (bf16)
            pl.BlockSpec((_TK, fi_pad), lambda i, k: (k, 0)),      # H tile    (bf16)
            pl.BlockSpec((fi_pad, fo_pad), lambda i, k: (0, 0)),   # W resident (f32)
            pl.BlockSpec((1, fo_pad), lambda i, k: (0, 0)),        # bias row   (f32)
        ],
        out_specs=pl.BlockSpec((tm, fo_pad), lambda i, k: (i, 0)),
        scratch_shapes=[pltpu.VMEM((tm, fi_pad), jnp.float32)],
        compiler_params=pltpu.CompilerParams(
            dimension_semantics=("parallel", "arbitrary")
        ),
    )(ahat_bf, h_bf, w_pad, b_pad)


# ---------------------------------------------------------------------------
# model
# ---------------------------------------------------------------------------

def init_layer_params(key, in_feats, out_feats):
    """Matches GCNLayer.reset_parameters / NodeApplyModule.reset_parameters."""
    kw, kb = jax.random.split(key)
    stdv = 1.0 / math.sqrt(out_feats)  # weight.size(1) == bias.size(0) == out_feats
    w = jax.random.uniform(kw, (in_feats, out_feats), jnp.float32,
                           minval=-stdv, maxval=stdv)
    b = jax.random.uniform(kb, (out_feats,), jnp.float32,
                           minval=-stdv, maxval=stdv)
    return w, b


def build_normalized_adjacency(key, n_nodes):
    """Dense Ahat = diag(norm) A diag(norm) with norm = 1/sqrt(in_degree)."""
    mask = jax.random.bernoulli(key, p=0.3, shape=(n_nodes, n_nodes))
    a = jnp.asarray(mask, jnp.float32)
    a = jnp.maximum(a, a.T)                                   # symmetrize
    a = jnp.maximum(a, jnp.eye(n_nodes, dtype=jnp.float32))   # self loops
    deg = jnp.sum(a, axis=1)
    norm = 1.0 / jnp.sqrt(deg)
    return norm[:, None] * a * norm[None, :]


def gcn_forward(features, ahat, params):
    """Forward pass of the full GCN stack (padding handled here, jit-friendly)."""
    n, f_in = features.shape
    n_pad = _round_up(n, 512)

    # Cast to bf16 first, then pad: XLA fuses pad+cast, and no padded f32
    # N_pad^2 intermediate is ever materialized. Padded rows/cols are zero so
    # padded nodes never contaminate real nodes.
    ahat_bf = jnp.pad(ahat.astype(jnp.bfloat16),
                      ((0, n_pad - n), (0, n_pad - n)))

    fi0_pad = _round_up(f_in, 128)
    h = jnp.pad(features, ((0, n_pad - n), (0, fi0_pad - f_in))).astype(jnp.bfloat16)

    n_total = len(params)
    for idx, (w, b) in enumerate(params):
        fi, fo = w.shape
        fi_pad = _round_up(fi, 128)
        fo_pad = _round_up(fo, 128)
        w_pad = jnp.pad(w, ((0, fi_pad - fi), (0, fo_pad - fo)))
        b_pad = jnp.pad(b, (0, fo_pad - fo)).reshape(1, fo_pad)
        last = idx == n_total - 1
        # Intermediate layers emit bf16 directly (they feed the next aggregate);
        # the final layer emits f32.
        h = gcn_layer(ahat_bf, h, w_pad, b_pad,
                      relu=not last,
                      out_dtype=jnp.float32 if last else jnp.bfloat16)

    last_fo = params[-1][0].shape[1]
    return h[:n, :last_fo]


gcn_forward_jit = jax.jit(gcn_forward)


# ---------------------------------------------------------------------------
# example run
# ---------------------------------------------------------------------------

if __name__ == "__main__":
    key = jax.random.PRNGKey(0)
    k_graph, k_feat, k_params = jax.random.split(key, 3)

    # Small, module-consistent shapes.
    n_nodes = 16
    in_feats = 8
    n_hidden = 32
    n_classes = 4
    n_layers = 1  # GCN builds n_layers + 1 GCNLayers total

    ahat = build_normalized_adjacency(k_graph, n_nodes)
    features = jax.random.normal(k_feat, (n_nodes, in_feats), jnp.float32)

    # Parameters: in->hidden, (n_layers-1) x hidden->hidden, hidden->classes
    dims = [(in_feats, n_hidden)]
    dims += [(n_hidden, n_hidden)] * (n_layers - 1)
    dims += [(n_hidden, n_classes)]
    layer_keys = jax.random.split(k_params, len(dims))
    params = [init_layer_params(k, fi, fo) for k, (fi, fo) in zip(layer_keys, dims)]

    out = gcn_forward_jit(features, ahat, params)
    out = jax.block_until_ready(out)

    assert out.shape == (n_nodes, n_classes)
    assert out.dtype == jnp.float32
    assert bool(jnp.all(jnp.isfinite(out)))

    # Sanity check against a pure-JAX f32 reference (bf16 streaming tolerance).
    h_ref = features
    for idx, (w, b) in enumerate(params):
        h_ref = ahat @ (h_ref @ w) + b
        if idx < len(params) - 1:
            h_ref = jnp.maximum(h_ref, 0.0)
    assert bool(jnp.all(jnp.abs(out - h_ref) <= 5e-2 + 5e-2 * jnp.abs(h_ref)))

    print("KERNEL_OK")
</pallas_src>

<mosaic_0001>
module attributes {stable_mosaic.version = 11 : i64} {
  func.func @_gcn_layer_kernel(%arg0: i32, %arg1: i32, %arg2: memref<512x512xbf16, #tpu.memory_space<vmem>>, %arg3: memref<512x128xbf16, #tpu.memory_space<vmem>>, %arg4: memref<128x128xf32, #tpu.memory_space<vmem>>, %arg5: memref<1x128xf32, #tpu.memory_space<vmem>>, %arg6: memref<512x128xbf16, #tpu.memory_space<vmem>>, %arg7: memref<512x128xf32, #tpu.memory_space<vmem>>) attributes {dimension_semantics = [#tpu.dimension_semantics<parallel>, #tpu.dimension_semantics<arbitrary>], iteration_bounds = array<i64: 1, 1>, scalar_prefetch = 0 : i64, scratch_operands = 1 : i64, tpu.core_type = #tpu.core_type<tc>, window_params = [{transform_indices = @transform_0, window_bounds = array<i64: 512, 512>}, {transform_indices = @transform_1, window_bounds = array<i64: 512, 128>}, {pipeline_mode = #tpu.pipeline_mode<synchronous>, transform_indices = @transform_2, window_bounds = array<i64: 128, 128>}, {pipeline_mode = #tpu.pipeline_mode<synchronous>, transform_indices = @transform_3, window_bounds = array<i64: 1, 128>}, {transform_indices = @transform_4, window_bounds = array<i64: 512, 128>}]} {
    %c0_i32 = arith.constant 0 : i32
    %0 = arith.cmpi eq, %arg1, %c0_i32 : i32
    %1 = arith.extui %0 : i1 to i32
    %c0_i32_0 = arith.constant 0 : i32
    %2 = arith.cmpi ne, %1, %c0_i32_0 : i32
    scf.if %2 {
      %cst_10 = arith.constant 0.000000e+00 : f32
      %12 = vector.broadcast %cst_10 : f32 to vector<512x128xf32>
      %c0_11 = arith.constant 0 : index
      %c0_12 = arith.constant 0 : index
      %13 = vector.load %arg7[%c0_11, %c0_12] : memref<512x128xf32, #tpu.memory_space<vmem>>, vector<512x128xf32>
      tpu.vector_store %arg7[%c0_11, %c0_12], %12 {strides = array<i32>} : memref<512x128xf32, #tpu.memory_space<vmem>>, vector<512x128xf32>,
    } else {
    }
    %c0 = arith.constant 0 : index
    %c0_1 = arith.constant 0 : index
    %3 = vector.load %arg7[%c0, %c0_1] : memref<512x128xf32, #tpu.memory_space<vmem>>, vector<512x128xf32>
    %c0_2 = arith.constant 0 : index
    %c0_3 = arith.constant 0 : index
    %4 = vector.load %arg2[%c0_2, %c0_3] : memref<512x512xbf16, #tpu.memory_space<vmem>>, vector<512x512xbf16>
    %c0_4 = arith.constant 0 : index
    %c0_5 = arith.constant 0 : index
    %5 = vector.load %arg3[%c0_4, %c0_5] : memref<512x128xbf16, #tpu.memory_space<vmem>>, vector<512x128xbf16>
    %cst = arith.constant dense<0.000000e+00> : vector<512x128xf32>
    %6 = tpu.matmul %4, %5, %cst {dimension_numbers = #tpu.dot_dimension_numbers<[1], [0], [0], [1], [0, 0, 1, 1], [], []>} : vector<512x512xbf16>, vector<512x128xbf16>, vector<512x128xf32> -> vector<512x128xf32>
    %7 = arith.addf %3, %6 : vector<512x128xf32>
    %c0_6 = arith.constant 0 : index
    %c0_7 = arith.constant 0 : index
    %8 = vector.load %arg7[%c0_6, %c0_7] : memref<512x128xf32, #tpu.memory_space<vmem>>, vector<512x128xf32>
    tpu.vector_store %arg7[%c0_6, %c0_7], %7 {strides = array<i32>} : memref<512x128xf32, #tpu.memory_space<vmem>>, vector<512x128xf32>,
    %c0_i32_8 = arith.constant 0 : i32
    %9 = arith.cmpi eq, %arg1, %c0_i32_8 : i32
    %10 = arith.extui %9 : i1 to i32
    %c0_i32_9 = arith.constant 0 : i32
    %11 = arith.cmpi ne, %10, %c0_i32_9 : i32
    scf.if %11 {
      %c0_10 = arith.constant 0 : index
      %c0_11 = arith.constant 0 : index
      %12 = vector.load %arg7[%c0_10, %c0_11] : memref<512x128xf32, #tpu.memory_space<vmem>>, vector<512x128xf32>
      %c0_12 = arith.constant 0 : index
      %c0_13 = arith.constant 0 : index
      %13 = vector.load %arg4[%c0_12, %c0_13] : memref<128x128xf32, #tpu.memory_space<vmem>>, vector<128x128xf32>
      %cst_14 = arith.constant dense<0.000000e+00> : vector<512x128xf32>
      %14 = tpu.matmul %12, %13, %cst_14 {dimension_numbers = #tpu.dot_dimension_numbers<[1], [0], [0], [1], [0, 0, 1, 1], [], []>} : vector<512x128xf32>, vector<128x128xf32>, vector<512x128xf32> -> vector<512x128xf32>
      %c0_15 = arith.constant 0 : index
      %c0_16 = arith.constant 0 : index
      %15 = vector.load %arg5[%c0_15, %c0_16] : memref<1x128xf32, #tpu.memory_space<vmem>>, vector<1x128xf32>
      %16 = vector.broadcast %15 : vector<1x128xf32> to vector<512x128xf32>
      %17 = arith.addf %14, %16 : vector<512x128xf32>
      %cst_17 = arith.constant 0.000000e+00 : f32
      %18 = vector.broadcast %cst_17 : f32 to vector<512x128xf32>
      %19 = arith.maximumf %17, %18 : vector<512x128xf32>
      %20 = arith.truncf %19 : vector<512x128xf32> to vector<512x128xbf16>
      %c0_18 = arith.constant 0 : index
      %c0_19 = arith.constant 0 : index
      %21 = vector.load %arg6[%c0_18, %c0_19] : memref<512x128xbf16, #tpu.memory_space<vmem>>, vector<512x128xbf16>
      tpu.vector_store %arg6[%c0_18, %c0_19], %20 {strides = array<i32>} : memref<512x128xbf16, #tpu.memory_space<vmem>>, vector<512x128xbf16>,
    } else {
    }
    return
  }
  func.func @transform_0(%arg0: i32, %arg1: i32) -> (i32, i32) {
    %c0_i32 = arith.constant 0 : i32
    return %arg0, %arg1 : i32, i32
  }
  func.func @transform_1(%arg0: i32, %arg1: i32) -> (i32, i32) {
    %c0_i32 = arith.constant 0 : i32
    %c0_i32_0 = arith.constant 0 : i32
    return %arg1, %c0_i32 : i32, i32
  }
  func.func @transform_2(%arg0: i32, %arg1: i32) -> (i32, i32) {
    %c0_i32 = arith.constant 0 : i32
    %c0_i32_0 = arith.constant 0 : i32
    %c0_i32_1 = arith.constant 0 : i32
    return %c0_i32, %c0_i32_0 : i32, i32
  }
  func.func @transform_3(%arg0: i32, %arg1: i32) -> (i32, i32) {
    %c0_i32 = arith.constant 0 : i32
    %c0_i32_0 = arith.constant 0 : i32
    %c0_i32_1 = arith.constant 0 : i32
    return %c0_i32, %c0_i32_0 : i32, i32
  }
  func.func @transform_4(%arg0: i32, %arg1: i32) -> (i32, i32) {
    %c0_i32 = arith.constant 0 : i32
    %c0_i32_0 = arith.constant 0 : i32
    return %arg0, %c0_i32 : i32, i32
  }
}

module attributes {stable_mosaic.version = 11 : i64} {
  func.func @_gcn_layer_kernel(%arg0: i32, %arg1: i32, %arg2: memref<512x512xbf16, #tpu.memory_space<vmem>>, %arg3: memref<512x128xbf16, #tpu.memory_space<vmem>>, %arg4: memref<128x128xf32, #tpu.memory_space<vmem>>, %arg5: memref<1x128xf32, #tpu.memory_space<vmem>>, %arg6: memref<512x128xf32, #tpu.memory_space<vmem>>, %arg7: memref<512x128xf32, #tpu.memory_space<vmem>>) attributes {dimension_semantics = [#tpu.dimension_semantics<parallel>, #tpu.dimension_semantics<arbitrary>], iteration_bounds = array<i64: 1, 1>, scalar_prefetch = 0 : i64, scratch_operands = 1 : i64, tpu.core_type = #tpu.core_type<tc>, window_params = [{transform_indices = @transform_0, window_bounds = array<i64: 512, 512>}, {transform_indices = @transform_1, window_bounds = array<i64: 512, 128>}, {pipeline_mode = #tpu.pipeline_mode<synchronous>, transform_indices = @transform_2, window_bounds = array<i64: 128, 128>}, {pipeline_mode = #tpu.pipeline_mode<synchronous>, transform_indices = @transform_3, window_bounds = array<i64: 1, 128>}, {transform_indices = @transform_4, window_bounds = array<i64: 512, 128>}]} {
    %c0_i32 = arith.constant 0 : i32
    %0 = arith.cmpi eq, %arg1, %c0_i32 : i32
    %1 = arith.extui %0 : i1 to i32
    %c0_i32_0 = arith.constant 0 : i32
    %2 = arith.cmpi ne, %1, %c0_i32_0 : i32
    scf.if %2 {
      %cst_10 = arith.constant 0.000000e+00 : f32
      %12 = vector.broadcast %cst_10 : f32 to vector<512x128xf32>
      %c0_11 = arith.constant 0 : index
      %c0_12 = arith.constant 0 : index
      %13 = vector.load %arg7[%c0_11, %c0_12] : memref<512x128xf32, #tpu.memory_space<vmem>>, vector<512x128xf32>
      tpu.vector_store %arg7[%c0_11, %c0_12], %12 {strides = array<i32>} : memref<512x128xf32, #tpu.memory_space<vmem>>, vector<512x128xf32>,
    } else {
    }
    %c0 = arith.constant 0 : index
    %c0_1 = arith.constant 0 : index
    %3 = vector.load %arg7[%c0, %c0_1] : memref<512x128xf32, #tpu.memory_space<vmem>>, vector<512x128xf32>
    %c0_2 = arith.constant 0 : index
    %c0_3 = arith.constant 0 : index
    %4 = vector.load %arg2[%c0_2, %c0_3] : memref<512x512xbf16, #tpu.memory_space<vmem>>, vector<512x512xbf16>
    %c0_4 = arith.constant 0 : index
    %c0_5 = arith.constant 0 : index
    %5 = vector.load %arg3[%c0_4, %c0_5] : memref<512x128xbf16, #tpu.memory_space<vmem>>, vector<512x128xbf16>
    %cst = arith.constant dense<0.000000e+00> : vector<512x128xf32>
    %6 = tpu.matmul %4, %5, %cst {dimension_numbers = #tpu.dot_dimension_numbers<[1], [0], [0], [1], [0, 0, 1, 1], [], []>} : vector<512x512xbf16>, vector<512x128xbf16>, vector<512x128xf32> -> vector<512x128xf32>
    %7 = arith.addf %3, %6 : vector<512x128xf32>
    %c0_6 = arith.constant 0 : index
    %c0_7 = arith.constant 0 : index
    %8 = vector.load %arg7[%c0_6, %c0_7] : memref<512x128xf32, #tpu.memory_space<vmem>>, vector<512x128xf32>
    tpu.vector_store %arg7[%c0_6, %c0_7], %7 {strides = array<i32>} : memref<512x128xf32, #tpu.memory_space<vmem>>, vector<512x128xf32>,
    %c0_i32_8 = arith.constant 0 : i32
    %9 = arith.cmpi eq, %arg1, %c0_i32_8 : i32
    %10 = arith.extui %9 : i1 to i32
    %c0_i32_9 = arith.constant 0 : i32
    %11 = arith.cmpi ne, %10, %c0_i32_9 : i32
    scf.if %11 {
      %c0_10 = arith.constant 0 : index
      %c0_11 = arith.constant 0 : index
      %12 = vector.load %arg7[%c0_10, %c0_11] : memref<512x128xf32, #tpu.memory_space<vmem>>, vector<512x128xf32>
      %c0_12 = arith.constant 0 : index
      %c0_13 = arith.constant 0 : index
      %13 = vector.load %arg4[%c0_12, %c0_13] : memref<128x128xf32, #tpu.memory_space<vmem>>, vector<128x128xf32>
      %cst_14 = arith.constant dense<0.000000e+00> : vector<512x128xf32>
      %14 = tpu.matmul %12, %13, %cst_14 {dimension_numbers = #tpu.dot_dimension_numbers<[1], [0], [0], [1], [0, 0, 1, 1], [], []>} : vector<512x128xf32>, vector<128x128xf32>, vector<512x128xf32> -> vector<512x128xf32>
      %c0_15 = arith.constant 0 : index
      %c0_16 = arith.constant 0 : index
      %15 = vector.load %arg5[%c0_15, %c0_16] : memref<1x128xf32, #tpu.memory_space<vmem>>, vector<1x128xf32>
      %16 = vector.broadcast %15 : vector<1x128xf32> to vector<512x128xf32>
      %17 = arith.addf %14, %16 : vector<512x128xf32>
      %c0_17 = arith.constant 0 : index
      %c0_18 = arith.constant 0 : index
      %18 = vector.load %arg6[%c0_17, %c0_18] : memref<512x128xf32, #tpu.memory_space<vmem>>, vector<512x128xf32>
      tpu.vector_store %arg6[%c0_17, %c0_18], %17 {strides = array<i32>} : memref<512x128xf32, #tpu.memory_space<vmem>>, vector<512x128xf32>,
    } else {
    }
    return
  }
  func.func @transform_0(%arg0: i32, %arg1: i32) -> (i32, i32) {
    %c0_i32 = arith.constant 0 : i32
    return %arg0, %arg1 : i32, i32
  }
  func.func @transform_1(%arg0: i32, %arg1: i32) -> (i32, i32) {
    %c0_i32 = arith.constant 0 : i32
    %c0_i32_0 = arith.constant 0 : i32
    return %arg1, %c0_i32 : i32, i32
  }
  func.func @transform_2(%arg0: i32, %arg1: i32) -> (i32, i32) {
    %c0_i32 = arith.constant 0 : i32
    %c0_i32_0 = arith.constant 0 : i32
    %c0_i32_1 = arith.constant 0 : i32
    return %c0_i32, %c0_i32_0 : i32, i32
  }
  func.func @transform_3(%arg0: i32, %arg1: i32) -> (i32, i32) {
    %c0_i32 = arith.constant 0 : i32
    %c0_i32_0 = arith.constant 0 : i32
    %c0_i32_1 = arith.constant 0 : i32
    return %c0_i32, %c0_i32_0 : i32, i32
  }
  func.func @transform_4(%arg0: i32, %arg1: i32) -> (i32, i32) {
    %c0_i32 = arith.constant 0 : i32
    %c0_i32_0 = arith.constant 0 : i32
    return %arg0, %c0_i32 : i32, i32
  }
}

</mosaic_0001>

<bundles_post_ra>
// kernel: gcn_forward.3
= control target key start
LH: loop header
LB: loop body
LE: loop exit
PB: predicated region body
PF: predicated region fallthrough
CT: control target
= control target key end

     0   :  { %s4514_s1 = inlined_call_operand.vmem [shape: bf16[512,128], index: 1, kind: input, shape index: {}]   ;;  %s4515_s0 = inlined_call_operand.vmem [shape: bf16[512,512], index: 0, kind: input, shape index: {}]   ;;  %s4516_s2 = inlined_call_operand.vmem [shape: f32[128,128], index: 2, kind: input, shape index: {}]   ;;  %s4517_s3 = inlined_call_operand.vmem [shape: f32[1,128], index: 3, kind: input, shape index: {}]   ;;  %s4518_s4 = inlined_call_operand.vmem [shape: f32[512,128], index: 4, kind: output, shape index: {}]  }
   0x1   :  { %v3116_v0 = vld [vmem:[%s4514_s1 + $0x38] sm:$0xff]  ;;  %v3115_v1 = vld [vmem:[%s4514_s1 + $0x30] sm:$0xff]  ;;  %v3114_v2 = vld [vmem:[%s4514_s1 + $0x28] sm:$0xff] }
   0x2   :  { %3141 = vmatpush.bf16.msra.mxu1 %v3116_v0  ;;  %3142 = vmatpush.bf16.msra.mxu2 %v3116_v0  ;;  %v3113_v3 = vld [vmem:[%s4514_s1 + $0x20] sm:$0xff]  ;;  %v3112_v4 = vld [vmem:[%s4514_s1 + $0x18] sm:$0xff]  ;;  %v3111_v5 = vld [vmem:[%s4514_s1 + $0x10] sm:$0xff] }
   0x3   :  { %3143 = vmatpush.bf16.msra.mxu3 %v3116_v0  ;;  %1173 = vmatpush.bf16.msra.mxu0 %v3116_v0  ;;  %v3110_v6 = vld [vmem:[%s4514_s1 + $0x8] sm:$0xff]  ;;  %v3109_v7 = vld [vmem:[%s4514_s1] sm:$0xff]  ;;  %v3015_v9 = vld [vmem:[%s4515_s0 + $0x10c] sm:$0xf0] }
   0x4   :  { %v2471_v8 = vld [vmem:[%s4515_s0 + $0x100] sm:$0xf]  ;;  %v3047_v11 = vld [vmem:[%s4515_s0 + $0x20c] sm:$0xf0]  ;;  %v3132_v14 = vld [vmem:[%s4514_s1 + $0xb8] sm:$0xff] }
   0x5   :  { %v2599_v10 = vld [vmem:[%s4515_s0 + $0x200] sm:$0xf]  ;;  %v3079_v13 = vld [vmem:[%s4515_s0 + $0x30c] sm:$0xf0]  ;;  %v3140_v15 = vld [vmem:[%s4514_s1 + $0xf8] sm:$0xff]  ;;  %v2472_v17 = vor.u32 %v3015_v9, %v2471_v8 }
   0x6   :  { %3144 = vmatpush.bf16.msra.mxu1 %v3115_v1  ;;  %3145 = vmatpush.bf16.msra.mxu2 %v3115_v1  ;;  %v2727_v12 = vld [vmem:[%s4515_s0 + $0x300] sm:$0xf]  ;;  %v3124_v16 = vld [vmem:[%s4514_s1 + $0x78] sm:$0xff]  ;;  %v2600_v18 = vor.u32 %v3047_v11, %v2599_v10  ;;  %v3131_v20 = vld [vmem:[%s4514_s1 + $0xb0] sm:$0xff] }
   0x7   :  { %3146 = vmatpush.bf16.msra.mxu3 %v3115_v1  ;;  %1174 = vmatpush.bf16.msra.mxu0 %v3115_v1  ;;  %v2728_v19 = vor.u32 %v3079_v13, %v2727_v12  ;;  %v3139_v21 = vld [vmem:[%s4514_s1 + $0xf0] sm:$0xff]  ;;  %v3130_v23 = vld [vmem:[%s4514_s1 + $0xa8] sm:$0xff]  ;;  %v2487_v26 = vld [vmem:[%s4515_s0 + $0x120] sm:$0xf] }
   0x8   :  { %v3123_v22 = vld [vmem:[%s4514_s1 + $0x70] sm:$0xff]  ;;  %v3138_v24 = vld [vmem:[%s4514_s1 + $0xe8] sm:$0xff]  ;;  %v2615_v28 = vld [vmem:[%s4515_s0 + $0x220] sm:$0xf] }
   0x9   :  { %v3122_v25 = vld [vmem:[%s4514_s1 + $0x68] sm:$0xff]  ;;  %v3019_v27 = vld [vmem:[%s4515_s0 + $0x12c] sm:$0xf0]  ;;  %v2743_v30 = vld [vmem:[%s4515_s0 + $0x320] sm:$0xf] }
   0xa   :  { %3147 = vmatpush.bf16.msra.mxu1 %v3114_v2  ;;  %3148 = vmatpush.bf16.msra.mxu2 %v3114_v2  ;;  %v3051_v29 = vld [vmem:[%s4515_s0 + $0x22c] sm:$0xf0]  ;;  %v2488_v32 = vor.u32 %v3019_v27, %v2487_v26  ;;  %v3129_v35 = vld [vmem:[%s4514_s1 + $0xa0] sm:$0xff]  ;;  %v3128_v47 = vld [vmem:[%s4514_s1 + $0x98] sm:$0xff] }
   0xb   :  { %3149 = vmatpush.bf16.msra.mxu3 %v3114_v2  ;;  %1175 = vmatpush.bf16.msra.mxu0 %v3114_v2  ;;  %v3083_v31 = vld [vmem:[%s4515_s0 + $0x32c] sm:$0xf0]  ;;  %v2616_v33 = vor.u32 %v3051_v29, %v2615_v28  ;;  %v3137_v36 = vld [vmem:[%s4514_s1 + $0xe0] sm:$0xff]  ;;  %v3136_v48 = vld [vmem:[%s4514_s1 + $0xd8] sm:$0xff] }
   0xc   :  { %v2744_v34 = vor.u32 %v3083_v31, %v2743_v30  ;;  %v3121_v37 = vld [vmem:[%s4514_s1 + $0x60] sm:$0xff]  ;;  %v3023_v39 = vld [vmem:[%s4515_s0 + $0x14c] sm:$0xf0]  ;;  %v3120_v49 = vld [vmem:[%s4514_s1 + $0x58] sm:$0xff] }
   0xd   :  { %v2503_v38 = vld [vmem:[%s4515_s0 + $0x140] sm:$0xf]  ;;  %v3055_v41 = vld [vmem:[%s4515_s0 + $0x24c] sm:$0xf0]  ;;  %v3134_v8 = vld [vmem:[%s4514_s1 + $0xc8] sm:$0xff] }
   0xe   :  { %3150 = vmatpush.bf16.msra.mxu1 %v3113_v3  ;;  %3151 = vmatpush.bf16.msra.mxu2 %v3113_v3  ;;  %v2631_v40 = vld [vmem:[%s4515_s0 + $0x240] sm:$0xf]  ;;  %v3087_v43 = vld [vmem:[%s4515_s0 + $0x34c] sm:$0xf0]  ;;  %v2504_v44 = vor.u32 %v3023_v39, %v2503_v38  ;;  %v3118_v9 = vld [vmem:[%s4514_s1 + $0x48] sm:$0xff] }
   0xf   :  { %3152 = vmatpush.bf16.msra.mxu3 %v3113_v3  ;;  %1176 = vmatpush.bf16.msra.mxu0 %v3113_v3  ;;  %v2759_v42 = vld [vmem:[%s4515_s0 + $0x340] sm:$0xf]  ;;  %v2632_v45 = vor.u32 %v3055_v41, %v2631_v40  ;;  %v3027_v51 = vld [vmem:[%s4515_s0 + $0x16c] sm:$0xf0] }
  0x10   :  { %v2760_v46 = vor.u32 %v3087_v43, %v2759_v42  ;;  %v2519_v50 = vld [vmem:[%s4515_s0 + $0x160] sm:$0xf]  ;;  %v3059_v53 = vld [vmem:[%s4515_s0 + $0x26c] sm:$0xf0] }
  0x11   :  { %v2647_v52 = vld [vmem:[%s4515_s0 + $0x260] sm:$0xf]  ;;  %v3091_v55 = vld [vmem:[%s4515_s0 + $0x36c] sm:$0xf0]  ;;  %v2520_v56 = vor.u32 %v3027_v51, %v2519_v50  ;;  %v2345_v50 = vld [vmem:[%s4515_s0 + $0x10] sm:$0xf0] }
  0x12   :  { %3153 = vmatpush.bf16.msra.mxu1 %v3112_v4  ;;  %3154 = vmatpush.bf16.msra.mxu2 %v3112_v4  ;;  %v2775_v54 = vld [vmem:[%s4515_s0 + $0x360] sm:$0xf]  ;;  %v2648_v57 = vor.u32 %v3059_v53, %v2647_v52  ;;  %v3127_v59 = vld [vmem:[%s4514_s1 + $0x90] sm:$0xff]  ;;  %v2351_v51 = vld [vmem:[%s4515_s0 + $0x8] sm:$0xf] }
  0x13   :  { %3155 = vmatpush.bf16.msra.mxu3 %v3112_v4  ;;  %1177 = vmatpush.bf16.msra.mxu0 %v3112_v4  ;;  %v2776_v58 = vor.u32 %v3091_v55, %v2775_v54  ;;  %v3135_v60 = vld [vmem:[%s4514_s1 + $0xd0] sm:$0xff]  ;;  %v2535_v62 = vld [vmem:[%s4515_s0 + $0x180] sm:$0xf]  ;;  %v2984_v52 = vld [vmem:[%s4515_s0 + $0x14] sm:$0xf0] }
  0x14   :  { %v3119_v61 = vld [vmem:[%s4514_s1 + $0x50] sm:$0xff]  ;;  %v2663_v0 = vld [vmem:[%s4515_s0 + $0x280] sm:$0xf]  ;;  %v2982_v53 = vld [vmem:[%s4515_s0 + $0xc] sm:$0xf] }
  0x15   :  { %v3031_v63 = vld [vmem:[%s4515_s0 + $0x18c] sm:$0xf0]  ;;  %v2791_v2 = vld [vmem:[%s4515_s0 + $0x380] sm:$0xf]  ;;  %v2353_v54 = vld [vmem:[%s4515_s0 + $0x18] sm:$0xf0] }
  0x16   :  { %3156 = vmatpush.bf16.msra.mxu1 %v3111_v5  ;;  %3157 = vmatpush.bf16.msra.mxu2 %v3111_v5  ;;  %v3063_v1 = vld [vmem:[%s4515_s0 + $0x28c] sm:$0xf0]  ;;  %v2536_v4 = vor.u32 %v3031_v63, %v2535_v62  ;;  %v2551_v10 = vld [vmem:[%s4515_s0 + $0x1a0] sm:$0xf] }
  0x17   :  { %3158 = vmatpush.bf16.msra.mxu3 %v3111_v5  ;;  %1178 = vmatpush.bf16.msra.mxu0 %v3111_v5  ;;  %v3095_v3 = vld [vmem:[%s4515_s0 + $0x38c] sm:$0xf0]  ;;  %v2664_v5 = vor.u32 %v3063_v1, %v2663_v0  ;;  %v2679_v12 = vld [vmem:[%s4515_s0 + $0x2a0] sm:$0xf] }
  0x18   :  { %v3035_v11 = vld [vmem:[%s4515_s0 + $0x1ac] sm:$0xf0]  ;;  %v2695_v27 = vld [vmem:[%s4515_s0 + $0x2c0] sm:$0xf] }
  0x19   :  { %v3067_v13 = vld [vmem:[%s4515_s0 + $0x2ac] sm:$0xf0]  ;;  %v2823_v29 = vld [vmem:[%s4515_s0 + $0x3c0] sm:$0xf] }
  0x1a   :  { %3159 = vmatpush.bf16.msra.mxu1 %v3110_v6  ;;  %3160 = vmatpush.bf16.msra.mxu2 %v3110_v6  ;;  %v3039_v26 = vld [vmem:[%s4515_s0 + $0x1cc] sm:$0xf0]  ;;  %v2839_v39 = vld [vmem:[%s4515_s0 + $0x3e0] sm:$0xf] }
  0x1b   :  { %3161 = vmatpush.bf16.msra.mxu3 %v3110_v6  ;;  %1179 = vmatpush.bf16.msra.mxu0 %v3110_v6  ;;  %v2792_v6 = vor.u32 %v3095_v3, %v2791_v2  ;;  %v3071_v28 = vld [vmem:[%s4515_s0 + $0x2cc] sm:$0xf0]  ;;  %v2359_v41 = vld [vmem:[%s4515_s0 + $0x20] sm:$0xf]  ;;  %v2055_v2 = vld [vmem:[%s4516_s2 + $0x58] sm:$0xff] }
  0x1c   :  { %v3103_v30 = vld [vmem:[%s4515_s0 + $0x3cc] sm:$0xf0]  ;;  %v2375_v55 = vld [vmem:[%s4515_s0 + $0x40] sm:$0xf]  ;;  %v2985_v3 = vld [vmem:[%s4515_s0 + $0x24] sm:$0xf] }
  0x1d   :  { %v3075_v38 = vld [vmem:[%s4515_s0 + $0x2ec] sm:$0xf0]  ;;  %v2056_v62 = vld [vmem:[%s4516_s2 + $0x60] sm:$0xff] }
  0x1e   :  { %3162 = vmatpush.bf16.msra.mxu1 %v3109_v7  ;;  %3163 = vmatpush.bf16.msra.mxu2 %v3109_v7  ;;  %v3107_v40 = vld [vmem:[%s4515_s0 + $0x3ec] sm:$0xf0] }
  0x1f   :  { %3164 = vmatpush.bf16.msra.mxu3 %v3109_v7  ;;  %1180 = vmatpush.bf16.msra.mxu0 %v3109_v7  ;;  %v3126_v7 = vld [vmem:[%s4514_s1 + $0x88] sm:$0xff]  ;;  %v2987_v42 = vld [vmem:[%s4515_s0 + $0x2c] sm:$0xf0] }
  0x20   :  { %v2360_v43 = vor.u32 %v2987_v42, %v2359_v41  ;;  %v2051_v42 = vld [vmem:[%s4516_s2 + $0x38] sm:$0xff] }
  0x21   :  { %1221 = vmatmul.bf16.vlgmr.msra.gmra.mxu1 %v2472_v17  ;;  %1261 = vmatmul.bf16.vlgmr.msra.gmra.mxu2 %v2600_v18  ;;  %v2680_v17 = vor.u32 %v3067_v13, %v2679_v12 }
  0x22   :  { %1511 = vmatpush.bf16.msrb.mxu2 %v3132_v14  ;;  %1342 = vmatpush.bf16.msrb.mxu1 %v3124_v16  ;;  %v2807_v14 = vld [vmem:[%s4515_s0 + $0x3a0] sm:$0xf]  ;;  %v2552_v16 = vor.u32 %v3035_v11, %v2551_v10  ;;  %v2995_v10 = vld [vmem:[%s4515_s0 + $0x6c] sm:$0xf0] }
  0x23   :  { %1680 = vmatpush.bf16.msrb.mxu3 %v3140_v15  ;;  %v3099_v15 = vld [vmem:[%s4515_s0 + $0x3ac] sm:$0xf0] }
  0x24   :  { %1301 = vmatmul.bf16.vlgmr.msra.gmra.mxu3 %v2728_v19  ;;  %v2808_v18 = vor.u32 %v3099_v15, %v2807_v14  ;;  %v3125_v19 = vld [vmem:[%s4514_s1 + $0x80] sm:$0xff] }
  0x26   :  { %1512 = vmatpush.bf16.msrb.mxu2 %v3131_v20  ;;  %1343 = vmatpush.bf16.msrb.mxu1 %v3123_v22  ;;  %v3133_v20 = vld [vmem:[%s4514_s1 + $0xc0] sm:$0xff] }
  0x27   :  { %1681 = vmatpush.bf16.msrb.mxu3 %v3139_v21  ;;  %v3117_v21 = vld [vmem:[%s4514_s1 + $0x40] sm:$0xff] }
  0x28   :  { %v2343_v22 = vld [vmem:[%s4515_s0] sm:$0xf] }
  0x2a   :  { %1513 = vmatpush.bf16.msrb.mxu2 %v3130_v23  ;;  %1344 = vmatpush.bf16.msrb.mxu1 %v3122_v25  ;;  %v2983_v23 = vld [vmem:[%s4515_s0 + $0xc] sm:$0xf0]  ;;  %v2567_v25 = vld [vmem:[%s4515_s0 + $0x1c0] sm:$0xf] }
  0x2b   :  { %1682 = vmatpush.bf16.msrb.mxu3 %v3138_v24  ;;  %v2344_v24 = vor.u32 %v2983_v23, %v2343_v22  ;;  %v2568_v31 = vor.u32 %v3039_v26, %v2567_v25  ;;  %v2053_v22 = vld [vmem:[%s4516_s2 + $0x48] sm:$0xff]  ;;  %v2989_v23 = vld [vmem:[%s4515_s0 + $0x44] sm:$0xf]  ;;  %v2992_v26 = vld [vmem:[%s4515_s0 + $0x54] sm:$0xf0] }
  0x2c   :  { %v2383_v25 = vld [vmem:[%s4515_s0 + $0x48] sm:$0xf] }
  0x2d   :  { %1181 = vmatmul.bf16.vlgmr.msra.gmra.mxu0 %v2344_v24  ;;  %v2377_v24 = vld [vmem:[%s4515_s0 + $0x50] sm:$0xf0] }
  0x2e   :  { %1514 = vmatpush.bf16.msrb.mxu2 %v3129_v35  ;;  %1345 = vmatpush.bf16.msrb.mxu1 %v3121_v37  ;;  %v2583_v35 = vld [vmem:[%s4515_s0 + $0x1e0] sm:$0xf] }
  0x2f   :  { %1683 = vmatpush.bf16.msrb.mxu3 %v3137_v36  ;;  %v3043_v36 = vld [vmem:[%s4515_s0 + $0x1ec] sm:$0xf0]  ;;  %v2711_v37 = vld [vmem:[%s4515_s0 + $0x2e0] sm:$0xf] }
  0x31   :  { %1226 = vmatmul.bf16.gmra.mxu1 %v2488_v32  ;;  %1266 = vmatmul.bf16.gmra.mxu2 %v2616_v33  ;;  %v2696_v32 = vor.u32 %v3071_v28, %v2695_v27  ;;  %v2824_v33 = vor.u32 %v3103_v30, %v2823_v29  ;;  %v2990_v27 = vld [vmem:[%s4515_s0 + $0x4c] sm:$0xf]  ;;  %v2385_v28 = vld [vmem:[%s4515_s0 + $0x58] sm:$0xf0]  ;;  %v2407_v29 = vld [vmem:[%s4515_s0 + $0x80] sm:$0xf] }
  0x32   :  { %1515 = vmatpush.bf16.msrb.mxu2 %v3128_v47  ;;  %1346 = vmatpush.bf16.msrb.mxu1 %v3120_v49  ;;  %v2058_v47 = vld [vmem:[%s4516_s2 + $0x70] sm:$0xff]  ;;  %v2981_v49 = vld [vmem:[%s4515_s0 + $0x4] sm:$0xf] }
  0x33   :  { %1684 = vmatpush.bf16.msrb.mxu3 %v3136_v48  ;;  %v2057_v48 = vld [vmem:[%s4516_s2 + $0x68] sm:$0xff]  ;;  %v2999_v30 = vld [vmem:[%s4515_s0 + $0x8c] sm:$0xf0] }
  0x34   :  { %1306 = vmatmul.bf16.gmra.mxu3 %v2744_v34  ;;  %v2059_v34 = vld [vmem:[%s4516_s2 + $0x78] sm:$0xff] }
  0x35   :  { %2064 = vmatpush.msrb.mxu0 %v2059_v34  ;;  %v2380_v34 = vor.u32 %v2989_v23, %v2377_v24  ;;  %v2048_v24 = vld [vmem:[%s4516_s2 + $0x20] sm:$0xff] }
  0x36   :  { %1516 = vmatpush.bf16.msrb.mxu2 %v3127_v59  ;;  %1347 = vmatpush.bf16.msrb.mxu1 %v3119_v61  ;;  %v2352_v59 = vor.u32 %v2984_v52, %v2351_v51  ;;  %v2356_v61 = vor.u32 %v2982_v53, %v2353_v54 }
  0x37   :  { %1685 = vmatpush.bf16.msrb.mxu3 %v3135_v60  ;;  %2065 = vmatpush.msrb.mxu0 %v2058_v47  ;;  %v2994_v47 = vld [vmem:[%s4515_s0 + $0x6c] sm:$0xf] }
  0x39   :  { %2066 = vmatpush.msrb.mxu0 %v2057_v48  ;;  %v2401_v48 = vld [vmem:[%s4515_s0 + $0x78] sm:$0xf0] }
  0x3a   :  { %1517 = vmatpush.bf16.msrb.mxu2 %v3126_v7  ;;  %1348 = vmatpush.bf16.msrb.mxu1 %v3118_v9  ;;  %v2986_v7 = vld [vmem:[%s4515_s0 + $0x2c] sm:$0xf]  ;;  %v2391_v9 = vld [vmem:[%s4515_s0 + $0x60] sm:$0xf] }
  0x3b   :  { %1686 = vmatpush.bf16.msrb.mxu3 %v3134_v8  ;;  %2067 = vmatpush.msrb.mxu0 %v2056_v62  ;;  %v2369_v8 = vld [vmem:[%s4515_s0 + $0x38] sm:$0xf0]  ;;  %v2392_v12 = vor.u32 %v2995_v10, %v2391_v9  ;;  %v2439_v9 = vld [vmem:[%s4515_s0 + $0xc0] sm:$0xf]  ;;  %v3007_v10 = vld [vmem:[%s4515_s0 + $0xcc] sm:$0xf0] }
  0x3d   :  { %1186 = vmatmul.bf16.gmra.mxu0 %v2360_v43  ;;  %v2993_v43 = vld [vmem:[%s4515_s0 + $0x64] sm:$0xf] }
  0x3e   :  { %1518 = vmatpush.bf16.msrb.mxu2 %v3125_v19  ;;  %1349 = vmatpush.bf16.msrb.mxu1 %v3117_v21 }
  0x3f   :  { %1687 = vmatpush.bf16.msrb.mxu3 %v3133_v20  ;;  %2068 = vmatpush.msrb.mxu0 %v2055_v2  ;;  %v2049_v2 = vld [vmem:[%s4516_s2 + $0x28] sm:$0xff] }
  0x41   :  { %1231 = vmatmul.bf16.gmra.mxu1 %v2504_v44  ;;  %1271 = vmatmul.bf16.gmra.mxu2 %v2632_v45  ;;  %v2584_v44 = vor.u32 %v3043_v36, %v2583_v35  ;;  %v2712_v45 = vor.u32 %v3075_v38, %v2711_v37  ;;  %v2384_v35 = vor.u32 %v2992_v26, %v2383_v25  ;;  %v2052_v38 = vld [vmem:[%s4516_s2 + $0x40] sm:$0xff] }
  0x42   :  { %v2388_v37 = vor.u32 %v2990_v27, %v2385_v28  ;;  %v2047_v28 = vld [vmem:[%s4516_s2 + $0x18] sm:$0xff] }
  0x44   :  { %1311 = vmatmul.bf16.gmra.mxu3 %v2760_v46  ;;  %v2840_v46 = vor.u32 %v3107_v40, %v2839_v39 }
  0x51   :  { %1236 = vmatmul.bf16.gmra.mxu1 %v2520_v56  ;;  %1276 = vmatmul.bf16.gmra.mxu2 %v2648_v57  ;;  %v2991_v56 = vld [vmem:[%s4515_s0 + $0x4c] sm:$0xf0] }
  0x52   :  { %v2376_v57 = vor.u32 %v2991_v56, %v2375_v55 }
  0x54   :  { %1316 = vmatmul.bf16.gmra.mxu3 %v2776_v58  ;;  %v2348_v58 = vor.u32 %v2981_v49, %v2345_v50  ;;  %1191 = vmatmul.bf16.gmra.mxu0 %v2376_v57  ;;  %v2423_v49 = vld [vmem:[%s4515_s0 + $0xa0] sm:$0xf]  ;;  %v3003_v50 = vld [vmem:[%s4515_s0 + $0xac] sm:$0xf0]  ;;  %v2404_v57 = vor.u32 %v2994_v47, %v2401_v48 }
  0x55   :  { %v2424_v52 = vor.u32 %v3003_v50, %v2423_v49  ;;  %v2046_v50 = vld [vmem:[%s4516_s2 + $0x10] sm:$0xff] }
  0x61   :  { %1241 = vmatmul.bf16.gmra.mxu1 %v2536_v4  ;;  %1281 = vmatmul.bf16.gmra.mxu2 %v2664_v5  ;;  %v2361_v4 = vld [vmem:[%s4515_s0 + $0x30] sm:$0xf0]  ;;  %v2367_v5 = vld [vmem:[%s4515_s0 + $0x28] sm:$0xf] }
  0x62   :  { %v2364_v14 = vor.u32 %v2985_v3, %v2361_v4  ;;  %v2997_v3 = vld [vmem:[%s4515_s0 + $0x84] sm:$0xf]  ;;  %v2409_v4 = vld [vmem:[%s4515_s0 + $0x90] sm:$0xf0] }
  0x64   :  { %1321 = vmatmul.bf16.gmra.mxu3 %v2792_v6  ;;  %v2988_v6 = vld [vmem:[%s4515_s0 + $0x34] sm:$0xf0]  ;;  %1196 = vmatmul.bf16.gmra.mxu0 %v2392_v12 }
  0x65   :  { %v2368_v15 = vor.u32 %v2988_v6, %v2367_v5  ;;  %v2415_v5 = vld [vmem:[%s4515_s0 + $0x88] sm:$0xf]  ;;  %v3000_v6 = vld [vmem:[%s4515_s0 + $0x94] sm:$0xf0] }
  0x71   :  { %1246 = vmatmul.bf16.gmra.mxu1 %v2552_v16  ;;  %1286 = vmatmul.bf16.gmra.mxu2 %v2680_v17  ;;  %v2372_v17 = vor.u32 %v2986_v7, %v2369_v8  ;;  %v2998_v7 = vld [vmem:[%s4515_s0 + $0x8c] sm:$0xf]  ;;  %v2417_v8 = vld [vmem:[%s4515_s0 + $0x98] sm:$0xf0] }
  0x72   :  { %v2420_v23 = vor.u32 %v2998_v7, %v2417_v8 }
  0x74   :  { %1326 = vmatmul.bf16.gmra.mxu3 %v2808_v18  ;;  %v2054_v18 = vld [vmem:[%s4516_s2 + $0x50] sm:$0xff] }
  0x75   :  { %2069 = vmatpush.msrb.mxu0 %v2054_v18  ;;  %v2416_v18 = vor.u32 %v3000_v6, %v2415_v5  ;;  %v3006_v5 = vld [vmem:[%s4515_s0 + $0xcc] sm:$0xf]  ;;  %v2449_v6 = vld [vmem:[%s4515_s0 + $0xd8] sm:$0xf0] }
  0x77   :  { %2070 = vmatpush.msrb.mxu0 %v2053_v22 }
  0x79   :  { %2071 = vmatpush.msrb.mxu0 %v2052_v38  ;;  %v2455_v38 = vld [vmem:[%s4515_s0 + $0xe0] sm:$0xf] }
  0x7b   :  { %2072 = vmatpush.msrb.mxu0 %v2051_v42  ;;  %v3011_v42 = vld [vmem:[%s4515_s0 + $0xec] sm:$0xf0] }
  0x81   :  { %1251 = vmatmul.bf16.gmra.mxu1 %v2568_v31  ;;  %1291 = vmatmul.bf16.gmra.mxu2 %v2696_v32  ;;  %v2408_v32 = vor.u32 %v2999_v30, %v2407_v29  ;;  %v3001_v29 = vld [vmem:[%s4515_s0 + $0xa4] sm:$0xf]  ;;  %v2425_v30 = vld [vmem:[%s4515_s0 + $0xb0] sm:$0xf0] }
  0x83   :  { %1201 = vmatmul.bf16.gmra.mxu0 %v2408_v32  ;;  %v2431_v32 = vld [vmem:[%s4515_s0 + $0xa8] sm:$0xf] }
  0x84   :  { %1331 = vmatmul.bf16.gmra.mxu3 %v2824_v33 }
  0x91   :  { %1256 = vmatmul.bf16.gmra.mxu1 %v2584_v44  ;;  %1296 = vmatmul.bf16.gmra.mxu2 %v2712_v45  ;;  %v2393_v44 = vld [vmem:[%s4515_s0 + $0x70] sm:$0xf0]  ;;  %v2399_v45 = vld [vmem:[%s4515_s0 + $0x68] sm:$0xf] }
  0x92   :  { %v2396_v54 = vor.u32 %v2993_v43, %v2393_v44  ;;  %v2456_v44 = vor.u32 %v3011_v42, %v2455_v38  ;;  %v2465_v38 = vld [vmem:[%s4515_s0 + $0xf8] sm:$0xf0] }
  0x93   :  { %1206 = vmatmul.bf16.gmra.mxu0 %v2424_v52 }
  0x94   :  { %1336 = vmatmul.bf16.gmra.mxu3 %v2840_v46  ;;  %v2996_v46 = vld [vmem:[%s4515_s0 + $0x74] sm:$0xf0] }
  0x95   :  { %v2400_v55 = vor.u32 %v2996_v46, %v2399_v45  ;;  %v2428_v46 = vor.u32 %v3001_v29, %v2425_v30  ;;  %v3009_v30 = vld [vmem:[%s4515_s0 + $0xe4] sm:$0xf] }
  0x9e   :  { %v3477_v60 = vpop.f32.mrf.mxu1 }
  0xa1   :  { %1350 = vmatmul.bf16.vlgmr.msrb.gmra.mxu1 %v2348_v58  ;;  %1519 = vmatmul.bf16.vlgmr.msrb.gmra.mxu2 %v2352_v59  ;;  %v2050_v58 = vld [vmem:[%s4516_s2 + $0x30] sm:$0xff] }
  0xa2   :  { %2073 = vmatpush.msrb.mxu0 %v2050_v58  ;;  %v3005_v58 = vld [vmem:[%s4515_s0 + $0xc4] sm:$0xf] }
  0xa4   :  { %1688 = vmatmul.bf16.vlgmr.msrb.gmra.mxu3 %v2356_v61  ;;  %v3482_v63 = vpop.f32.mrf.mxu2  ;;  %2074 = vmatpush.msrb.mxu0 %v2049_v2  ;;  %v2441_v2 = vld [vmem:[%s4515_s0 + $0xd0] sm:$0xf0] }
  0xa6   :  { %v3486_v1 = vpop.f32.mrf.mxu1  ;;  %2075 = vmatpush.msrb.mxu0 %v2048_v24 }
  0xa7   :  { %v3484_v0 = vpop.f32.mrf.mxu3 }
  0xa8   :  { %2076 = vmatpush.msrb.mxu0 %v2047_v28 }
  0xaa   :  { %2077 = vmatpush.msrb.mxu0 %v2046_v50  ;;  %v1182_v24 = vpop.f32.mrf.mxu0 }
  0xac   :  { %v3515_v11 = vpop.f32.mrf.mxu2 }
  0xae   :  { %v3519_v16 = vpop.f32.mrf.mxu1 }
  0xaf   :  { %v3517_v13 = vpop.f32.mrf.mxu3 }
  0xb1   :  { %1355 = vmatmul.bf16.gmra.mxu1 %v2364_v14  ;;  %1524 = vmatmul.bf16.gmra.mxu2 %v2368_v15  ;;  %v2440_v14 = vor.u32 %v3007_v10, %v2439_v9  ;;  %v2444_v9 = vor.u32 %v3005_v58, %v2441_v2 }
  0xb3   :  { %1211 = vmatmul.bf16.gmra.mxu0 %v2440_v14 }
  0xb4   :  { %1693 = vmatmul.bf16.gmra.mxu3 %v2372_v17  ;;  %v3524_v19 = vpop.f32.mrf.mxu2  ;;  %v2412_v17 = vor.u32 %v2997_v3, %v2409_v4  ;;  %v2447_v3 = vld [vmem:[%s4515_s0 + $0xc8] sm:$0xf]  ;;  %v3008_v4 = vld [vmem:[%s4515_s0 + $0xd4] sm:$0xf0] }
  0xb5   :  { %v2448_v10 = vor.u32 %v3008_v4, %v2447_v3 }
  0xb6   :  { %v3528_v21 = vpop.f32.mrf.mxu1 }
  0xb7   :  { %v3526_v20 = vpop.f32.mrf.mxu3 }
  0xbc   :  { %v3557_v31 = vpop.f32.mrf.mxu2 }
  0xbe   :  { %v3561_v36 = vpop.f32.mrf.mxu1 }
  0xbf   :  { %v3559_v33 = vpop.f32.mrf.mxu3 }
  0xc1   :  { %1360 = vmatmul.bf16.gmra.mxu1 %v2380_v34  ;;  %1529 = vmatmul.bf16.gmra.mxu2 %v2384_v35  ;;  %v3004_v34 = vld [vmem:[%s4515_s0 + $0xb4] sm:$0xf0]  ;;  %v3002_v35 = vld [vmem:[%s4515_s0 + $0xac] sm:$0xf] }
  0xc2   :  { %v2432_v47 = vor.u32 %v3004_v34, %v2431_v32  ;;  %v2457_v32 = vld [vmem:[%s4515_s0 + $0xf0] sm:$0xf0]  ;;  %v2463_v34 = vld [vmem:[%s4515_s0 + $0xe8] sm:$0xf] }
  0xc3   :  { %1216 = vmatmul.bf16.gmra.mxu0 %v2456_v44 }
  0xc4   :  { %1698 = vmatmul.bf16.gmra.mxu3 %v2388_v37  ;;  %v3566_v39 = vpop.f32.mrf.mxu2  ;;  %v2433_v37 = vld [vmem:[%s4515_s0 + $0xb8] sm:$0xf0] }
  0xc5   :  { %v2436_v49 = vor.u32 %v3002_v35, %v2433_v37  ;;  %v3012_v35 = vld [vmem:[%s4515_s0 + $0xf4] sm:$0xf0]  ;;  %v3010_v37 = vld [vmem:[%s4515_s0 + $0xec] sm:$0xf] }
  0xc6   :  { %v3570_v41 = vpop.f32.mrf.mxu1  ;;  %v2468_v50 = vor.u32 %v3010_v37, %v2465_v38 }
  0xc7   :  { %v3568_v40 = vpop.f32.mrf.mxu3 }
  0xcc   :  { %v3599_v51 = vpop.f32.mrf.mxu2 }
  0xce   :  { %v3603_v56 = vpop.f32.mrf.mxu1 }
  0xcf   :  { %v3601_v53 = vpop.f32.mrf.mxu3 }
  0xd1   :  { %1365 = vmatmul.bf16.gmra.mxu1 %v2396_v54  ;;  %1534 = vmatmul.bf16.gmra.mxu2 %v2400_v55 }
  0xd4   :  { %1703 = vmatmul.bf16.gmra.mxu3 %v2404_v57  ;;  %v3608_v59 = vpop.f32.mrf.mxu2  ;;  %v2045_v57 = vld [vmem:[%s4516_s2 + $0x8] sm:$0xff] }
  0xd5   :  { %2078 = vmatpush.msrb.mxu0 %v2045_v57  ;;  %v1184_v57 = vpop.f32.mrf.mxu0 }
  0xd6   :  { %v3612_v62 = vpop.f32.mrf.mxu1 }
  0xd7   :  { %v3610_v61 = vpop.f32.mrf.mxu3 }
  0xdc   :  { %v3641_v12 = vpop.f32.mrf.mxu2 }
  0xdd   :  { %v1187_v4 = vpop.f32.mrf.mxu0 }
  0xde   :  { %v3645_v22 = vpop.f32.mrf.mxu1 }
  0xdf   :  { %v3643_v15 = vpop.f32.mrf.mxu3 }
  0xe0   :  { %4519 = vst [vmem:[#allocation3_spill] sm:$0xff] %v3643_v15 }
  0xe1   :  { %1370 = vmatmul.bf16.gmra.mxu1 %v2412_v17  ;;  %1539 = vmatmul.bf16.gmra.mxu2 %v2416_v18  ;;  %v2452_v17 = vor.u32 %v3006_v5, %v2449_v6  ;;  %v2044_v18 = vld [vmem:[%s4516_s2] sm:$0xff]  ;;  %v2473_v6 = vld [vmem:[%s4515_s0 + $0x110] sm:$0xf0] }
  0xe2   :  { %2079 = vmatpush.msrb.mxu0 %v2044_v18  ;;  %v3013_v5 = vld [vmem:[%s4515_s0 + $0x104] sm:$0xf]  ;;  %v2481_v18 = vld [vmem:[%s4515_s0 + $0x118] sm:$0xf0] }
  0xe4   :  { %1708 = vmatmul.bf16.gmra.mxu3 %v2420_v23  ;;  %v3650_v25 = vpop.f32.mrf.mxu2 }
  0xe6   :  { %v3654_v27 = vpop.f32.mrf.mxu1 }
  0xe7   :  { %v3652_v26 = vpop.f32.mrf.mxu3 }
  0xe8   :  { %4520 = vst [vmem:[#allocation4_spill] sm:$0xff] %v3652_v26 }
  0xec   :  { %v3683_v43 = vpop.f32.mrf.mxu2 }
  0xee   :  { %v3687_v48 = vpop.f32.mrf.mxu1 }
  0xef   :  { %v3685_v45 = vpop.f32.mrf.mxu3 }
  0xf0   :  { %4521 = vst [vmem:[#allocation5_spill] sm:$0xff] %v3685_v45 }
  0xf1   :  { %1375 = vmatmul.bf16.gmra.mxu1 %v2428_v46  ;;  %1544 = vmatmul.bf16.gmra.mxu2 %v2432_v47  ;;  %v2460_v46 = vor.u32 %v3009_v30, %v2457_v32  ;;  %v2464_v47 = vor.u32 %v3012_v35, %v2463_v34  ;;  %v2476_v34 = vor.u32 %v3013_v5, %v2473_v6  ;;  %v2489_v5 = vld [vmem:[%s4515_s0 + $0x130] sm:$0xf0]  ;;  %v3020_v6 = vld [vmem:[%s4515_s0 + $0x134] sm:$0xf0] }
  0xf4   :  { %1713 = vmatmul.bf16.gmra.mxu3 %v2436_v49  ;;  %v3692_v52 = vpop.f32.mrf.mxu2 }
  0xf6   :  { %v3696_v55 = vpop.f32.mrf.mxu1 }
  0xf7   :  { %v3694_v54 = vpop.f32.mrf.mxu3 }
  0xf8   :  { %4522 = vst [vmem:[#allocation6_spill] sm:$0xff] %v3694_v54  ;;  %v3017_v54 = vld [vmem:[%s4515_s0 + $0x124] sm:$0xf] }
  0xfc   :  { %v3719_v7 = vpop.f32.mrf.mxu2 }
  0xfe   :  { %v3723_v14 = vpop.f32.mrf.mxu1 }
  0xff   :  { %v3721_v8 = vpop.f32.mrf.mxu3 }
 0x100   :  { %4523 = vst [vmem:[#allocation7_spill] sm:$0xff] %v3721_v8 }
 0x101   :  { %1380 = vmatmul.bf16.gmra.mxu1 %v2444_v9  ;;  %1549 = vmatmul.bf16.gmra.mxu2 %v2448_v10  ;;  %v2479_v9 = vld [vmem:[%s4515_s0 + $0x108] sm:$0xf]  ;;  %v3016_v10 = vld [vmem:[%s4515_s0 + $0x114] sm:$0xf0] }
 0x102   :  { %v2480_v35 = vor.u32 %v3016_v10, %v2479_v9 }
 0x104   :  { %1718 = vmatmul.bf16.gmra.mxu3 %v2452_v17  ;;  %v3728_v23 = vpop.f32.mrf.mxu2  ;;  %v3014_v17 = vld [vmem:[%s4515_s0 + $0x10c] sm:$0xf] }
 0x105   :  { %v2484_v38 = vor.u32 %v3014_v17, %v2481_v18 }
 0x106   :  { %v3732_v29 = vpop.f32.mrf.mxu1 }
 0x107   :  { %v3730_v28 = vpop.f32.mrf.mxu3 }
 0x108   :  { %4524 = vst [vmem:[#allocation8_spill] sm:$0xff] %v3730_v28 }
 0x10c   :  { %v3752_v42 = vpop.f32.mrf.mxu2 }
 0x10e   :  { %v3756_v49 = vpop.f32.mrf.mxu1 }
 0x10f   :  { %v3754_v44 = vpop.f32.mrf.mxu3 }
 0x110   :  { %4525 = vst [vmem:[#allocation9_spill] sm:$0xff] %v3754_v44 }
 0x111   :  { %1385 = vmatmul.bf16.gmra.mxu1 %v2460_v46  ;;  %1554 = vmatmul.bf16.gmra.mxu2 %v2464_v47  ;;  %v1189_v47 = vpop.f32.mrf.mxu0 }
 0x114   :  { %1723 = vmatmul.bf16.gmra.mxu3 %v2468_v50  ;;  %v3758_v58 = vpop.f32.mrf.mxu2 }
 0x116   :  { %v3762_v3 = vpop.f32.mrf.mxu1 }
 0x117   :  { %v3760_v2 = vpop.f32.mrf.mxu3 }
 0x118   :  { %4526 = vst [vmem:[#allocation10_spill] sm:$0xff] %v3760_v2 }
 0x119   :  { %v1192_v10 = vpop.f32.mrf.mxu0 }
 0x11c   :  { %v3782_v30 = vpop.f32.mrf.mxu2 }
 0x11e   :  { %v1351_v37 = vpop.f32.mrf.mxu1 }
 0x11f   :  { %v3784_v32 = vpop.f32.mrf.mxu3  ;;  %v1352_v46 = vadd.f32 %v1351_v37, %v1182_v24  ;;  %v2495_v24 = vld [vmem:[%s4515_s0 + $0x128] sm:$0xf] }
 0x120   :  { %4527 = vst [vmem:[#allocation11_spill] sm:$0xff] %v3784_v32 }
 0x121   :  { %1390 = vmatmul.bf16.gmra.mxu1 %v2476_v34  ;;  %1559 = vmatmul.bf16.gmra.mxu2 %v2480_v35  ;;  %v2492_v34 = vor.u32 %v3017_v54, %v2489_v5  ;;  %v2496_v35 = vor.u32 %v3020_v6, %v2495_v24  ;;  %v1194_v26 = vpop.f32.mrf.mxu0  ;;  %v2505_v54 = vld [vmem:[%s4515_s0 + $0x150] sm:$0xf0]  ;;  %v3024_v5 = vld [vmem:[%s4515_s0 + $0x154] sm:$0xf0] }
 0x124   :  { %1728 = vmatmul.bf16.gmra.mxu3 %v2484_v38  ;;  %v1520_v50 = vpop.f32.mrf.mxu2 }
 0x125   :  { %v1521_v2 = vadd.f32 %v1520_v50, %v1352_v46 }
 0x126   :  { %v1353_v28 = vpop.f32.mrf.mxu1 }
 0x127   :  { %v1689_v44 = vpop.f32.mrf.mxu3  ;;  %v1354_v9 = vadd.f32 %v1353_v28, %v1184_v57 }
 0x128   :  { %v1690_v8 = vadd.f32 %v1689_v44, %v1521_v2  ;;  %v2497_v44 = vld [vmem:[%s4515_s0 + $0x138] sm:$0xf0] }
 0x12a   :  { %2080 = vmatmul.f32.vlgmr.msrb.gmra.mxu0 %v1690_v8  ;;  %v3018_v8 = vld [vmem:[%s4515_s0 + $0x12c] sm:$0xf] }
 0x12b   :  { %v2500_v38 = vor.u32 %v3018_v8, %v2497_v44 }
 0x12c   :  { %v1522_v2 = vpop.f32.mrf.mxu2 }
 0x12d   :  { %v1523_v17 = vadd.f32 %v1522_v2, %v1354_v9  ;;  %v3021_v9 = vld [vmem:[%s4515_s0 + $0x144] sm:$0xf] }
 0x12e   :  { %v1356_v37 = vpop.f32.mrf.mxu1  ;;  %v2508_v2 = vor.u32 %v3021_v9, %v2505_v54  ;;  %v2521_v9 = vld [vmem:[%s4515_s0 + $0x170] sm:$0xf0]  ;;  %v3028_v54 = vld [vmem:[%s4515_s0 + $0x174] sm:$0xf0] }
 0x12f   :  { %v1691_v18 = vpop.f32.mrf.mxu3  ;;  %v1357_v50 = vadd.f32 %v1356_v37, %v1187_v4  ;;  %v2511_v4 = vld [vmem:[%s4515_s0 + $0x148] sm:$0xf]  ;;  %v1197_v37 = vpop.f32.mrf.mxu0 }
 0x130   :  { %v1692_v46 = vadd.f32 %v1691_v18, %v1523_v17  ;;  %v2512_v17 = vor.u32 %v3024_v5, %v2511_v4 }
 0x131   :  { %1395 = vmatmul.bf16.gmra.mxu1 %v2492_v34  ;;  %1564 = vmatmul.bf16.gmra.mxu2 %v2496_v35 }
 0x132   :  { %2083 = vmatmul.f32.gmra.mxu0 %v1692_v46 }
 0x134   :  { %1733 = vmatmul.bf16.gmra.mxu3 %v2500_v38  ;;  %v1525_v28 = vpop.f32.mrf.mxu2 }
 0x135   :  { %v1526_v57 = vadd.f32 %v1525_v28, %v1357_v50 }
 0x136   :  { %v1358_v45 = vpop.f32.mrf.mxu1 }
 0x137   :  { %v1694_v32 = vpop.f32.mrf.mxu3  ;;  %v1359_v24 = vadd.f32 %v1358_v45, %v1189_v47  ;;  %v1199_v4 = vpop.f32.mrf.mxu0 }
 0x138   :  { %v1695_v15 = vadd.f32 %v1694_v32, %v1526_v57  ;;  %v3022_v32 = vld [vmem:[%s4515_s0 + $0x14c] sm:$0xf]  ;;  %v3025_v57 = vld [vmem:[%s4515_s0 + $0x164] sm:$0xf] }
 0x13a   :  { %2086 = vmatmul.f32.gmra.mxu0 %v1695_v15  ;;  %v2513_v15 = vld [vmem:[%s4515_s0 + $0x158] sm:$0xf0] }
 0x13b   :  { %v2516_v34 = vor.u32 %v3022_v32, %v2513_v15  ;;  %v2529_v32 = vld [vmem:[%s4515_s0 + $0x178] sm:$0xf0] }
 0x13c   :  { %v1527_v6 = vpop.f32.mrf.mxu2 }
 0x13d   :  { %v1528_v8 = vadd.f32 %v1527_v6, %v1359_v24  ;;  %v3026_v24 = vld [vmem:[%s4515_s0 + $0x16c] sm:$0xf] }
 0x13e   :  { %v1361_v18 = vpop.f32.mrf.mxu1 }
 0x13f   :  { %v1696_v44 = vpop.f32.mrf.mxu3  ;;  %v1362_v38 = vadd.f32 %v1361_v18, %v1192_v10  ;;  %v2527_v10 = vld [vmem:[%s4515_s0 + $0x168] sm:$0xf]  ;;  %v2532_v18 = vor.u32 %v3026_v24, %v2529_v32 }
 0x140   :  { %v1697_v35 = vadd.f32 %v1696_v44, %v1528_v8  ;;  %v2524_v44 = vor.u32 %v3025_v57, %v2521_v9  ;;  %v2537_v57 = vld [vmem:[%s4515_s0 + $0x190] sm:$0xf0]  ;;  %v3032_v9 = vld [vmem:[%s4515_s0 + $0x194] sm:$0xf0] }
 0x141   :  { %1400 = vmatmul.bf16.gmra.mxu1 %v2508_v2  ;;  %1569 = vmatmul.bf16.gmra.mxu2 %v2512_v17  ;;  %v2528_v2 = vor.u32 %v3028_v54, %v2527_v10  ;;  %v3030_v54 = vld [vmem:[%s4515_s0 + $0x18c] sm:$0xf] }
 0x142   :  { %2089 = vmatmul.f32.gmra.mxu0 %v1697_v35 }
 0x144   :  { %1738 = vmatmul.bf16.gmra.mxu3 %v2516_v34  ;;  %v1530_v45 = vpop.f32.mrf.mxu2 }
 0x145   :  { %v1531_v47 = vadd.f32 %v1530_v45, %v1362_v38  ;;  %v1202_v38 = vpop.f32.mrf.mxu0 }
 0x146   :  { %v1363_v50 = vpop.f32.mrf.mxu1 }
 0x147   :  { %v1699_v46 = vpop.f32.mrf.mxu3  ;;  %v1364_v5 = vadd.f32 %v1363_v50, %v1194_v26 }
 0x148   :  { %v1700_v28 = vadd.f32 %v1699_v46, %v1531_v47 }
 0x14a   :  { %2092 = vmatmul.f32.gmra.mxu0 %v1700_v28  ;;  %v3029_v28 = vld [vmem:[%s4515_s0 + $0x184] sm:$0xf] }
 0x14c   :  { %v1532_v15 = vpop.f32.mrf.mxu2 }
 0x14d   :  { %v1533_v6 = vadd.f32 %v1532_v15, %v1364_v5  ;;  %v2545_v5 = vld [vmem:[%s4515_s0 + $0x198] sm:$0xf0] }
 0x14e   :  { %v1366_v17 = vpop.f32.mrf.mxu1 }
 0x14f   :  { %v1701_v8 = vpop.f32.mrf.mxu3  ;;  %v1367_v35 = vadd.f32 %v1366_v17, %v1197_v37  ;;  %v2543_v37 = vld [vmem:[%s4515_s0 + $0x188] sm:$0xf]  ;;  %v1204_v17 = vpop.f32.mrf.mxu0 }
 0x150   :  { %v1702_v34 = vadd.f32 %v1701_v8, %v1533_v6  ;;  %v2540_v6 = vor.u32 %v3029_v28, %v2537_v57  ;;  %v2544_v8 = vor.u32 %v3032_v9, %v2543_v37  ;;  %v2553_v28 = vld [vmem:[%s4515_s0 + $0x1b0] sm:$0xf0]  ;;  %v3036_v57 = vld [vmem:[%s4515_s0 + $0x1b4] sm:$0xf0]  ;;  %v3034_v9 = vld [vmem:[%s4515_s0 + $0x1ac] sm:$0xf] }
 0x151   :  { %1405 = vmatmul.bf16.gmra.mxu1 %v2524_v44  ;;  %1574 = vmatmul.bf16.gmra.mxu2 %v2528_v2  ;;  %v2548_v2 = vor.u32 %v3030_v54, %v2545_v5 }
 0x152   :  { %2095 = vmatmul.f32.gmra.mxu0 %v1702_v34 }
 0x154   :  { %1743 = vmatmul.bf16.gmra.mxu3 %v2532_v18  ;;  %v1535_v26 = vpop.f32.mrf.mxu2 }
 0x155   :  { %v1536_v45 = vadd.f32 %v1535_v26, %v1367_v35 }
 0x156   :  { %v1368_v46 = vpop.f32.mrf.mxu1 }
 0x157   :  { %v1704_v47 = vpop.f32.mrf.mxu3  ;;  %v1369_v10 = vadd.f32 %v1368_v46, %v1199_v4  ;;  %v1207_v46 = vpop.f32.mrf.mxu0 }
 0x158   :  { %v1705_v50 = vadd.f32 %v1704_v47, %v1536_v45 }
 0x15a   :  { %2098 = vmatmul.f32.gmra.mxu0 %v1705_v50  ;;  %v3033_v50 = vld [vmem:[%s4515_s0 + $0x1a4] sm:$0xf] }
 0x15c   :  { %v1537_v24 = vpop.f32.mrf.mxu2 }
 0x15d   :  { %v1538_v32 = vadd.f32 %v1537_v24, %v1369_v10  ;;  %v2561_v10 = vld [vmem:[%s4515_s0 + $0x1b8] sm:$0xf0] }
 0x15e   :  { %v1371_v44 = vpop.f32.mrf.mxu1 }
 0x15f   :  { %v1706_v15 = vpop.f32.mrf.mxu3  ;;  %v1372_v34 = vadd.f32 %v1371_v44, %v1202_v38  ;;  %v2559_v38 = vld [vmem:[%s4515_s0 + $0x1a8] sm:$0xf] }
 0x160   :  { %v1707_v18 = vadd.f32 %v1706_v15, %v1538_v32  ;;  %v2556_v32 = vor.u32 %v3033_v50, %v2553_v28  ;;  %v2560_v15 = vor.u32 %v3036_v57, %v2559_v38  ;;  %v3040_v50 = vld [vmem:[%s4515_s0 + $0x1d4] sm:$0xf0]  ;;  %v3038_v38 = vld [vmem:[%s4515_s0 + $0x1cc] sm:$0xf]  ;;  %v2577_v57 = vld [vmem:[%s4515_s0 + $0x1d8] sm:$0xf0] }
 0x161   :  { %1410 = vmatmul.bf16.gmra.mxu1 %v2540_v6  ;;  %1579 = vmatmul.bf16.gmra.mxu2 %v2544_v8  ;;  %v2564_v8 = vor.u32 %v3034_v9, %v2561_v10 }
 0x162   :  { %2101 = vmatmul.f32.gmra.mxu0 %v1707_v18 }
 0x164   :  { %1748 = vmatmul.bf16.gmra.mxu3 %v2548_v2  ;;  %v1540_v4 = vpop.f32.mrf.mxu2 }
 0x165   :  { %v1541_v35 = vadd.f32 %v1540_v4, %v1372_v34 }
 0x166   :  { %v1373_v45 = vpop.f32.mrf.mxu1 }
 0x167   :  { %v1709_v26 = vpop.f32.mrf.mxu3  ;;  %v1374_v37 = vadd.f32 %v1373_v45, %v1204_v17  ;;  %v1209_v17 = vpop.f32.mrf.mxu0  ;;  %v3037_v45 = vld [vmem:[%s4515_s0 + $0x1c4] sm:$0xf] }
 0x168   :  { %v1710_v47 = vadd.f32 %v1709_v26, %v1541_v35 }
 0x16a   :  { %2104 = vmatmul.f32.gmra.mxu0 %v1710_v47  ;;  %v2569_v47 = vld [vmem:[%s4515_s0 + $0x1d0] sm:$0xf0] }
 0x16c   :  { %v1542_v54 = vpop.f32.mrf.mxu2 }
 0x16d   :  { %v1543_v5 = vadd.f32 %v1542_v54, %v1374_v37 }
 0x16e   :  { %v1376_v6 = vpop.f32.mrf.mxu1 }
 0x16f   :  { %v1711_v24 = vpop.f32.mrf.mxu3  ;;  %v1377_v2 = vadd.f32 %v1376_v6, %v1207_v46  ;;  %v2575_v46 = vld [vmem:[%s4515_s0 + $0x1c8] sm:$0xf]  ;;  %v1212_v37 = vpop.f32.mrf.mxu0 }
 0x170   :  { %v1712_v44 = vadd.f32 %v1711_v24, %v1543_v5  ;;  %v2572_v5 = vor.u32 %v3037_v45, %v2569_v47  ;;  %v2576_v24 = vor.u32 %v3040_v50, %v2575_v46  ;;  %v2591_v45 = vld [vmem:[%s4515_s0 + $0x1e8] sm:$0xf]  ;;  %v3044_v47 = vld [vmem:[%s4515_s0 + $0x1f4] sm:$0xf0]  ;;  %v3042_v50 = vld [vmem:[%s4515_s0 + $0x1ec] sm:$0xf] }
 0x171   :  { %1415 = vmatmul.bf16.gmra.mxu1 %v2556_v32  ;;  %1584 = vmatmul.bf16.gmra.mxu2 %v2560_v15  ;;  %v2580_v15 = vor.u32 %v3038_v38, %v2577_v57 }
 0x172   :  { %2107 = vmatmul.f32.gmra.mxu0 %v1712_v44 }
 0x174   :  { %1753 = vmatmul.bf16.gmra.mxu3 %v2564_v8  ;;  %v1545_v18 = vpop.f32.mrf.mxu2 }
 0x175   :  { %v1546_v34 = vadd.f32 %v1545_v18, %v1377_v2 }
 0x176   :  { %v1378_v35 = vpop.f32.mrf.mxu1 }
 0x177   :  { %v1714_v4 = vpop.f32.mrf.mxu3  ;;  %v1379_v28 = vadd.f32 %v1378_v35, %v1209_v17  ;;  %v1214_v18 = vpop.f32.mrf.mxu0  ;;  %v3041_v35 = vld [vmem:[%s4515_s0 + $0x1e4] sm:$0xf] }
 0x178   :  { %v1715_v26 = vadd.f32 %v1714_v4, %v1546_v34 }
 0x17a   :  { %2110 = vmatmul.f32.gmra.mxu0 %v1715_v26  ;;  %v2585_v26 = vld [vmem:[%s4515_s0 + $0x1f0] sm:$0xf0] }
 0x17c   :  { %v1547_v9 = vpop.f32.mrf.mxu2 }
 0x17d   :  { %v1548_v10 = vadd.f32 %v1547_v9, %v1379_v28  ;;  %v2593_v28 = vld [vmem:[%s4515_s0 + $0x1f8] sm:$0xf0]  ;;  %v2588_v9 = vor.u32 %v3041_v35, %v2585_v26  ;;  %v2607_v35 = vld [vmem:[%s4515_s0 + $0x208] sm:$0xf]  ;;  %v3048_v26 = vld [vmem:[%s4515_s0 + $0x214] sm:$0xf0] }
 0x17e   :  { %v1381_v32 = vpop.f32.mrf.mxu1 }
 0x17f   :  { %v1716_v54 = vpop.f32.mrf.mxu3  ;;  %v1382_v8 = vadd.f32 %v1381_v32, %v1212_v37  ;;  %v1217_v32 = vpop.f32.mrf.mxu0 }
 0x180   :  { %v1717_v6 = vadd.f32 %v1716_v54, %v1548_v10  ;;  %v2592_v10 = vor.u32 %v3044_v47, %v2591_v45  ;;  %v3046_v47 = vld [vmem:[%s4515_s0 + $0x20c] sm:$0xf] }
 0x181   :  { %1420 = vmatmul.bf16.gmra.mxu1 %v2572_v5  ;;  %1589 = vmatmul.bf16.gmra.mxu2 %v2576_v24  ;;  %v2596_v5 = vor.u32 %v3042_v50, %v2593_v28 }
 0x182   :  { %2113 = vmatmul.f32.gmra.mxu0 %v1717_v6 }
 0x184   :  { %1758 = vmatmul.bf16.gmra.mxu3 %v2580_v15  ;;  %v1550_v44 = vpop.f32.mrf.mxu2 }
 0x185   :  { %v1551_v2 = vadd.f32 %v1550_v44, %v1382_v8 }
 0x186   :  { %v1383_v34 = vpop.f32.mrf.mxu1 }
 0x187   :  { %v1719_v17 = vpop.f32.mrf.mxu3  ;;  %v1384_v46 = vadd.f32 %v1383_v34, %v1214_v18  ;;  %v3045_v18 = vld [vmem:[%s4515_s0 + $0x204] sm:$0xf]  ;;  %v1219_v34 = vpop.f32.mrf.mxu0 }
 0x188   :  { %v1720_v4 = vadd.f32 %v1719_v17, %v1551_v2 }
 0x18a   :  { %2116 = vmatmul.f32.gmra.mxu0 %v1720_v4  ;;  %v2601_v4 = vld [vmem:[%s4515_s0 + $0x210] sm:$0xf0] }
 0x18c   :  { %v1552_v38 = vpop.f32.mrf.mxu2 }
 0x18d   :  { %v1553_v57 = vadd.f32 %v1552_v38, %v1384_v46  ;;  %v2609_v46 = vld [vmem:[%s4515_s0 + $0x218] sm:$0xf0] }
 0x18e   :  { %v1386_v54 = vpop.f32.mrf.mxu1 }
 0x18f   :  { %v1721_v37 = vpop.f32.mrf.mxu3  ;;  %v1387_v15 = vadd.f32 %v1386_v54, %v1217_v32 }
 0x190   :  { %v1722_v24 = vadd.f32 %v1721_v37, %v1553_v57  ;;  %v2604_v57 = vor.u32 %v3045_v18, %v2601_v4  ;;  %v2608_v37 = vor.u32 %v3048_v26, %v2607_v35  ;;  %v2617_v18 = vld [vmem:[%s4515_s0 + $0x230] sm:$0xf0]  ;;  %v3052_v4 = vld [vmem:[%s4515_s0 + $0x234] sm:$0xf0]  ;;  %v3050_v26 = vld [vmem:[%s4515_s0 + $0x22c] sm:$0xf] }
 0x191   :  { %1425 = vmatmul.bf16.gmra.mxu1 %v2588_v9  ;;  %1594 = vmatmul.bf16.gmra.mxu2 %v2592_v10  ;;  %v2612_v10 = vor.u32 %v3046_v47, %v2609_v46 }
 0x192   :  { %2119 = vmatmul.f32.gmra.mxu0 %v1722_v24  ;;  %v3934_v24 = vld [vmem:[%s4517_s3] ss:$0 sm:$0xff] }
 0x194   :  { %1763 = vmatmul.bf16.gmra.mxu3 %v2596_v5  ;;  %v1555_v6 = vpop.f32.mrf.mxu2 }
 0x195   :  { %v1556_v8 = vadd.f32 %v1555_v6, %v1387_v15 }
 0x196   :  { %v1388_v2 = vpop.f32.mrf.mxu1 }
 0x197   :  { %v1724_v44 = vpop.f32.mrf.mxu3  ;;  %v1389_v45 = vadd.f32 %v1388_v2, %v1219_v34  ;;  %v2623_v34 = vld [vmem:[%s4515_s0 + $0x228] sm:$0xf] }
 0x198   :  { %v1725_v17 = vadd.f32 %v1724_v44, %v1556_v8 }
 0x19a   :  { %2122 = vmatmul.f32.gmra.mxu0 %v1725_v17 }
 0x19c   :  { %v1557_v50 = vpop.f32.mrf.mxu2 }
 0x19d   :  { %v1558_v28 = vadd.f32 %v1557_v50, %v1389_v45  ;;  %v2625_v45 = vld [vmem:[%s4515_s0 + $0x238] sm:$0xf0] }
 0x19e   :  { %v1391_v9 = vpop.f32.mrf.mxu1 }
 0x19f   :  { %v1726_v38 = vpop.f32.mrf.mxu3  ;;  %v1392_v5 = vadd.f32 %v1391_v9, %v3477_v60  ;;  %v3049_v60 = vld [vmem:[%s4515_s0 + $0x224] sm:$0xf] }
 0x1a0   :  { %v1727_v54 = vadd.f32 %v1726_v38, %v1558_v28  ;;  %v2620_v28 = vor.u32 %v3049_v60, %v2617_v18  ;;  %v2624_v38 = vor.u32 %v3052_v4, %v2623_v34  ;;  %v2633_v60 = vld [vmem:[%s4515_s0 + $0x250] sm:$0xf0]  ;;  %v3056_v18 = vld [vmem:[%s4515_s0 + $0x254] sm:$0xf0]  ;;  %v3054_v4 = vld [vmem:[%s4515_s0 + $0x24c] sm:$0xf] }
 0x1a1   :  { %1430 = vmatmul.bf16.gmra.mxu1 %v2604_v57  ;;  %1599 = vmatmul.bf16.gmra.mxu2 %v2608_v37  ;;  %v2628_v37 = vor.u32 %v3050_v26, %v2625_v45 }
 0x1a2   :  { %2125 = vmatmul.f32.gmra.mxu0 %v1727_v54 }
 0x1a4   :  { %1768 = vmatmul.bf16.gmra.mxu3 %v2612_v10  ;;  %v1560_v32 = vpop.f32.mrf.mxu2 }
 0x1a5   :  { %v1561_v15 = vadd.f32 %v1560_v32, %v1392_v5 }
 0x1a6   :  { %v1393_v8 = vpop.f32.mrf.mxu1 }
 0x1a7   :  { %v1729_v6 = vpop.f32.mrf.mxu3  ;;  %v2081_v44 = vpop.f32.mrf.mxu0  ;;  %v1394_v35 = vadd.f32 %v1393_v8, %v3486_v1 }
 0x1a8   :  { %v1730_v2 = vadd.f32 %v1729_v6, %v1561_v15  ;;  %v2082_v17 = vadd.f32 %v3934_v24, %v2081_v44 }
 0x1aa   :  { %2273 = vst [vmem:[%s4518_s4] sm:$0xff] %v2082_v17  ;;  %2128 = vmatmul.f32.gmra.mxu0 %v1730_v2  ;;  %v3053_v17 = vld [vmem:[%s4515_s0 + $0x244] sm:$0xf] }
 0x1ac   :  { %v1562_v47 = vpop.f32.mrf.mxu2 }
 0x1ad   :  { %v1563_v46 = vadd.f32 %v1562_v47, %v1394_v35  ;;  %v2641_v35 = vld [vmem:[%s4515_s0 + $0x258] sm:$0xf0] }
 0x1ae   :  { %v1396_v57 = vpop.f32.mrf.mxu1 }
 0x1af   :  { %v1731_v50 = vpop.f32.mrf.mxu3  ;;  %v2084_v10 = vpop.f32.mrf.mxu0  ;;  %v1397_v1 = vadd.f32 %v1396_v57, %v3519_v16  ;;  %v2639_v16 = vld [vmem:[%s4515_s0 + $0x248] sm:$0xf] }
 0x1b0   :  { %v1732_v9 = vadd.f32 %v1731_v50, %v1563_v46  ;;  %v2085_v54 = vadd.f32 %v3934_v24, %v2084_v10  ;;  %v2636_v46 = vor.u32 %v3053_v17, %v2633_v60  ;;  %v2640_v50 = vor.u32 %v3056_v18, %v2639_v16  ;;  %v3058_v60 = vld [vmem:[%s4515_s0 + $0x26c] sm:$0xf]  ;;  %v2657_v16 = vld [vmem:[%s4515_s0 + $0x278] sm:$0xf0] }
 0x1b1   :  { %1435 = vmatmul.bf16.gmra.mxu1 %v2620_v28  ;;  %1604 = vmatmul.bf16.gmra.mxu2 %v2624_v38  ;;  %v2644_v38 = vor.u32 %v3054_v4, %v2641_v35 }
 0x1b2   :  { %2274 = vst [vmem:[%s4518_s4 + $0x8] sm:$0xff] %v2085_v54  ;;  %2131 = vmatmul.f32.gmra.mxu0 %v1732_v9 }
 0x1b4   :  { %1773 = vmatmul.bf16.gmra.mxu3 %v2628_v37  ;;  %v1565_v5 = vpop.f32.mrf.mxu2 }
 0x1b5   :  { %v1566_v32 = vadd.f32 %v1565_v5, %v1397_v1 }
 0x1b6   :  { %v1398_v6 = vpop.f32.mrf.mxu1 }
 0x1b7   :  { %v1734_v15 = vpop.f32.mrf.mxu3  ;;  %v2087_v44 = vpop.f32.mrf.mxu0  ;;  %v1399_v34 = vadd.f32 %v1398_v6, %v3528_v21 }
 0x1b8   :  { %v1735_v8 = vadd.f32 %v1734_v15, %v1566_v32  ;;  %v2088_v2 = vadd.f32 %v3934_v24, %v2087_v44  ;;  %v2649_v44 = vld [vmem:[%s4515_s0 + $0x270] sm:$0xf0] }
 0x1ba   :  { %2275 = vst [vmem:[%s4518_s4 + $0x10] sm:$0xff] %v2088_v2  ;;  %2134 = vmatmul.f32.gmra.mxu0 %v1735_v8  ;;  %v3057_v8 = vld [vmem:[%s4515_s0 + $0x264] sm:$0xf]  ;;  %v3060_v2 = vld [vmem:[%s4515_s0 + $0x274] sm:$0xf0] }
 0x1bb   :  { %v2652_v35 = vor.u32 %v3057_v8, %v2649_v44  ;;  %v2673_v8 = vld [vmem:[%s4515_s0 + $0x298] sm:$0xf0] }
 0x1bc   :  { %v1567_v26 = vpop.f32.mrf.mxu2 }
 0x1bd   :  { %v1568_v45 = vadd.f32 %v1567_v26, %v1399_v34 }
 0x1be   :  { %v1401_v28 = vpop.f32.mrf.mxu1 }
 0x1bf   :  { %v1736_v47 = vpop.f32.mrf.mxu3  ;;  %v2090_v37 = vpop.f32.mrf.mxu0  ;;  %v1402_v21 = vadd.f32 %v1401_v28, %v3561_v36  ;;  %v2655_v36 = vld [vmem:[%s4515_s0 + $0x268] sm:$0xf] }
 0x1c0   :  { %v1737_v57 = vadd.f32 %v1736_v47, %v1568_v45  ;;  %v2091_v9 = vadd.f32 %v3934_v24, %v2090_v37  ;;  %v2656_v26 = vor.u32 %v3060_v2, %v2655_v36  ;;  %v2660_v47 = vor.u32 %v3058_v60, %v2657_v16 }
 0x1c1   :  { %1440 = vmatmul.bf16.gmra.mxu1 %v2636_v46  ;;  %1609 = vmatmul.bf16.gmra.mxu2 %v2640_v50 }
 0x1c2   :  { %2276 = vst [vmem:[%s4518_s4 + $0x18] sm:$0xff] %v2091_v9  ;;  %2137 = vmatmul.f32.gmra.mxu0 %v1737_v57 }
 0x1c4   :  { %1778 = vmatmul.bf16.gmra.mxu3 %v2644_v38  ;;  %v1570_v10 = vpop.f32.mrf.mxu2 }
 0x1c5   :  { %v1571_v54 = vadd.f32 %v1570_v10, %v1402_v21 }
 0x1c6   :  { %v1403_v5 = vpop.f32.mrf.mxu1 }
 0x1c7   :  { %v1739_v1 = vpop.f32.mrf.mxu3  ;;  %v2093_v15 = vpop.f32.mrf.mxu0  ;;  %v1404_v17 = vadd.f32 %v1403_v5, %v3570_v41  ;;  %v2665_v5 = vld [vmem:[%s4515_s0 + $0x290] sm:$0xf0] }
 0x1c8   :  { %v1740_v32 = vadd.f32 %v1739_v1, %v1571_v54  ;;  %v2094_v6 = vadd.f32 %v3934_v24, %v2093_v15  ;;  %v3061_v1 = vld [vmem:[%s4515_s0 + $0x284] sm:$0xf] }
 0x1ca   :  { %2277 = vst [vmem:[%s4518_s4 + $0x20] sm:$0xff] %v2094_v6  ;;  %2140 = vmatmul.f32.gmra.mxu0 %v1740_v32  ;;  %v3064_v32 = vld [vmem:[%s4515_s0 + $0x294] sm:$0xf0]  ;;  %v3062_v6 = vld [vmem:[%s4515_s0 + $0x28c] sm:$0xf] }
 0x1cc   :  { %v1572_v18 = vpop.f32.mrf.mxu2 }
 0x1cd   :  { %v1573_v34 = vadd.f32 %v1572_v18, %v1404_v17  ;;  %v2668_v17 = vor.u32 %v3061_v1, %v2665_v5  ;;  %v2676_v18 = vor.u32 %v3062_v6, %v2673_v8 }
 0x1ce   :  { %v1406_v45 = vpop.f32.mrf.mxu1 }
 0x1cf   :  { %v1741_v4 = vpop.f32.mrf.mxu3  ;;  %v2096_v50 = vpop.f32.mrf.mxu0  ;;  %v1407_v41 = vadd.f32 %v1406_v45, %v3603_v56  ;;  %v2671_v56 = vld [vmem:[%s4515_s0 + $0x288] sm:$0xf] }
 0x1d0   :  { %v1742_v46 = vadd.f32 %v1741_v4, %v1573_v34  ;;  %v2097_v28 = vadd.f32 %v3934_v24, %v2096_v50  ;;  %v2672_v60 = vor.u32 %v3064_v32, %v2671_v56 }
 0x1d1   :  { %1445 = vmatmul.bf16.gmra.mxu1 %v2652_v35  ;;  %1614 = vmatmul.bf16.gmra.mxu2 %v2656_v26 }
 0x1d2   :  { %2278 = vst [vmem:[%s4518_s4 + $0x28] sm:$0xff] %v2097_v28  ;;  %2143 = vmatmul.f32.gmra.mxu0 %v1742_v46 }
 0x1d4   :  { %1783 = vmatmul.bf16.gmra.mxu3 %v2660_v47  ;;  %v1575_v38 = vpop.f32.mrf.mxu2 }
 0x1d5   :  { %v1576_v57 = vadd.f32 %v1575_v38, %v1407_v41  ;;  %v3065_v38 = vld [vmem:[%s4515_s0 + $0x2a4] sm:$0xf] }
 0x1d6   :  { %v1408_v9 = vpop.f32.mrf.mxu1 }
 0x1d7   :  { %v1744_v37 = vpop.f32.mrf.mxu3  ;;  %v2099_v10 = vpop.f32.mrf.mxu0  ;;  %v1409_v15 = vadd.f32 %v1408_v9, %v3612_v62 }
 0x1d8   :  { %v1745_v21 = vadd.f32 %v1744_v37, %v1576_v57  ;;  %v2100_v54 = vadd.f32 %v3934_v24, %v2099_v10  ;;  %v2681_v57 = vld [vmem:[%s4515_s0 + $0x2b0] sm:$0xf0]  ;;  %v3068_v37 = vld [vmem:[%s4515_s0 + $0x2b4] sm:$0xf0]  ;;  %v2689_v10 = vld [vmem:[%s4515_s0 + $0x2b8] sm:$0xf0] }
 0x1d9   :  { %v2684_v56 = vor.u32 %v3065_v38, %v2681_v57 }
 0x1da   :  { %2279 = vst [vmem:[%s4518_s4 + $0x30] sm:$0xff] %v2100_v54  ;;  %2146 = vmatmul.f32.gmra.mxu0 %v1745_v21  ;;  %v3066_v21 = vld [vmem:[%s4515_s0 + $0x2ac] sm:$0xf] }
 0x1db   :  { %v2692_v6 = vor.u32 %v3066_v21, %v2689_v10 }
 0x1dc   :  { %v1577_v44 = vpop.f32.mrf.mxu2 }
 0x1dd   :  { %v1578_v36 = vadd.f32 %v1577_v44, %v1409_v15 }
 0x1de   :  { %v1411_v16 = vpop.f32.mrf.mxu1 }
 0x1df   :  { %v1746_v2 = vpop.f32.mrf.mxu3  ;;  %v2102_v4 = vpop.f32.mrf.mxu0  ;;  %v1412_v62 = vadd.f32 %v1411_v16, %v3645_v22  ;;  %v2687_v22 = vld [vmem:[%s4515_s0 + $0x2a8] sm:$0xf] }
 0x1e0   :  { %v1747_v34 = vadd.f32 %v1746_v2, %v1578_v36  ;;  %v2103_v35 = vadd.f32 %v3934_v24, %v2102_v4  ;;  %v2688_v32 = vor.u32 %v3068_v37, %v2687_v22 }
 0x1e1   :  { %1450 = vmatmul.bf16.gmra.mxu1 %v2668_v17  ;;  %1619 = vmatmul.bf16.gmra.mxu2 %v2672_v60 }
 0x1e2   :  { %2280 = vst [vmem:[%s4518_s4 + $0x38] sm:$0xff] %v2103_v35  ;;  %2149 = vmatmul.f32.gmra.mxu0 %v1747_v34  ;;  %v3069_v35 = vld [vmem:[%s4515_s0 + $0x2c4] sm:$0xf] }
 0x1e4   :  { %1788 = vmatmul.bf16.gmra.mxu3 %v2676_v18  ;;  %v1580_v26 = vpop.f32.mrf.mxu2 }
 0x1e5   :  { %v1581_v45 = vadd.f32 %v1580_v26, %v1412_v62  ;;  %v2697_v62 = vld [vmem:[%s4515_s0 + $0x2d0] sm:$0xf0]  ;;  %v3072_v26 = vld [vmem:[%s4515_s0 + $0x2d4] sm:$0xf0] }
 0x1e6   :  { %v1413_v46 = vpop.f32.mrf.mxu1  ;;  %v2700_v38 = vor.u32 %v3069_v35, %v2697_v62 }
 0x1e7   :  { %v1749_v47 = vpop.f32.mrf.mxu3  ;;  %v2105_v28 = vpop.f32.mrf.mxu0  ;;  %v1414_v9 = vadd.f32 %v1413_v46, %v3654_v27  ;;  %v2705_v46 = vld [vmem:[%s4515_s0 + $0x2d8] sm:$0xf0] }
 0x1e8   :  { %v1750_v50 = vadd.f32 %v1749_v47, %v1581_v45  ;;  %v2106_v41 = vadd.f32 %v3934_v24, %v2105_v28  ;;  %v3070_v47 = vld [vmem:[%s4515_s0 + $0x2cc] sm:$0xf] }
 0x1e9   :  { %v2708_v37 = vor.u32 %v3070_v47, %v2705_v46 }
 0x1ea   :  { %2281 = vst [vmem:[%s4518_s4 + $0x40] sm:$0xff] %v2106_v41  ;;  %2152 = vmatmul.f32.gmra.mxu0 %v1750_v50 }
 0x1ec   :  { %v1582_v54 = vpop.f32.mrf.mxu2 }
 0x1ed   :  { %v1583_v1 = vadd.f32 %v1582_v54, %v1414_v9 }
 0x1ee   :  { %v1416_v15 = vpop.f32.mrf.mxu1 }
 0x1ef   :  { %v1751_v5 = vpop.f32.mrf.mxu3  ;;  %v2108_v44 = vpop.f32.mrf.mxu0  ;;  %v1417_v27 = vadd.f32 %v1416_v15, %v3687_v48  ;;  %v2703_v48 = vld [vmem:[%s4515_s0 + $0x2c8] sm:$0xf] }
 0x1f0   :  { %v1752_v8 = vadd.f32 %v1751_v5, %v1583_v1  ;;  %v2109_v36 = vadd.f32 %v3934_v24, %v2108_v44  ;;  %v2704_v57 = vor.u32 %v3072_v26, %v2703_v48  ;;  %v2713_v44 = vld [vmem:[%s4515_s0 + $0x2f0] sm:$0xf0] }
 0x1f1   :  { %1455 = vmatmul.bf16.gmra.mxu1 %v2684_v56  ;;  %1624 = vmatmul.bf16.gmra.mxu2 %v2688_v32 }
 0x1f2   :  { %2282 = vst [vmem:[%s4518_s4 + $0x48] sm:$0xff] %v2109_v36  ;;  %2155 = vmatmul.f32.gmra.mxu0 %v1752_v8  ;;  %v3073_v8 = vld [vmem:[%s4515_s0 + $0x2e4] sm:$0xf]  ;;  %v3076_v36 = vld [vmem:[%s4515_s0 + $0x2f4] sm:$0xf0] }
 0x1f4   :  { %1793 = vmatmul.bf16.gmra.mxu3 %v2692_v6  ;;  %v1585_v2 = vpop.f32.mrf.mxu2 }
 0x1f5   :  { %v1586_v17 = vadd.f32 %v1585_v2, %v1417_v27  ;;  %v3074_v2 = vld [vmem:[%s4515_s0 + $0x2ec] sm:$0xf] }
 0x1f6   :  { %v1418_v16 = vpop.f32.mrf.mxu1 }
 0x1f7   :  { %v1754_v60 = vpop.f32.mrf.mxu3  ;;  %v2111_v34 = vpop.f32.mrf.mxu0  ;;  %v1419_v45 = vadd.f32 %v1418_v16, %v3696_v55 }
 0x1f8   :  { %v1755_v18 = vadd.f32 %v1754_v60, %v1586_v17  ;;  %v2112_v4 = vadd.f32 %v3934_v24, %v2111_v34  ;;  %v2721_v17 = vld [vmem:[%s4515_s0 + $0x2f8] sm:$0xf0]  ;;  %v2716_v34 = vor.u32 %v3073_v8, %v2713_v44 }
 0x1f9   :  { %v2724_v62 = vor.u32 %v3074_v2, %v2721_v17 }
 0x1fa   :  { %2283 = vst [vmem:[%s4518_s4 + $0x50] sm:$0xff] %v2112_v4  ;;  %2158 = vmatmul.f32.gmra.mxu0 %v1755_v18 }
 0x1fc   :  { %v1587_v50 = vpop.f32.mrf.mxu2 }
 0x1fd   :  { %v1588_v28 = vadd.f32 %v1587_v50, %v1419_v45 }
 0x1fe   :  { %v1421_v22 = vpop.f32.mrf.mxu1 }
 0x1ff   :  { %v1756_v41 = vpop.f32.mrf.mxu3  ;;  %v2114_v21 = vpop.f32.mrf.mxu0  ;;  %v1422_v55 = vadd.f32 %v1421_v22, %v3723_v14  ;;  %v2719_v14 = vld [vmem:[%s4515_s0 + $0x2e8] sm:$0xf]  ;;  %v3077_v22 = vld [vmem:[%s4515_s0 + $0x304] sm:$0xf] }
 0x200   :  { %v1757_v9 = vadd.f32 %v1756_v41, %v1588_v28  ;;  %v2115_v10 = vadd.f32 %v3934_v24, %v2114_v21  ;;  %v2720_v4 = vor.u32 %v3076_v36, %v2719_v14 }
 0x201   :  { %1460 = vmatmul.bf16.gmra.mxu1 %v2700_v38  ;;  %1629 = vmatmul.bf16.gmra.mxu2 %v2704_v57 }
 0x202   :  { %2284 = vst [vmem:[%s4518_s4 + $0x58] sm:$0xff] %v2115_v10  ;;  %2161 = vmatmul.f32.gmra.mxu0 %v1757_v9  ;;  %v3080_v9 = vld [vmem:[%s4515_s0 + $0x314] sm:$0xf0]  ;;  %v3078_v10 = vld [vmem:[%s4515_s0 + $0x30c] sm:$0xf] }
 0x204   :  { %1798 = vmatmul.bf16.gmra.mxu3 %v2708_v37  ;;  %v1590_v54 = vpop.f32.mrf.mxu2  ;;  %v2729_v37 = vld [vmem:[%s4515_s0 + $0x310] sm:$0xf0] }
 0x205   :  { %v1591_v1 = vadd.f32 %v1590_v54, %v1422_v55  ;;  %v2737_v55 = vld [vmem:[%s4515_s0 + $0x318] sm:$0xf0] }
 0x206   :  { %v1423_v56 = vpop.f32.mrf.mxu1 }
 0x207   :  { %v1759_v5 = vpop.f32.mrf.mxu3  ;;  %v2117_v15 = vpop.f32.mrf.mxu0  ;;  %v1424_v27 = vadd.f32 %v1423_v56, %v3732_v29  ;;  %v2732_v56 = vor.u32 %v3077_v22, %v2729_v37 }
 0x208   :  { %v1760_v32 = vadd.f32 %v1759_v5, %v1591_v1  ;;  %v2118_v6 = vadd.f32 %v3934_v24, %v2117_v15 }
 0x20a   :  { %2285 = vst [vmem:[%s4518_s4 + $0x60] sm:$0xff] %v2118_v6  ;;  %2164 = vmatmul.f32.gmra.mxu0 %v1760_v32  ;;  %v2740_v6 = vor.u32 %v3078_v10, %v2737_v55 }
 0x20c   :  { %v1592_v60 = vpop.f32.mrf.mxu2 }
 0x20d   :  { %v1593_v16 = vadd.f32 %v1592_v60, %v1424_v27 }
 0x20e   :  { %v1426_v35 = vpop.f32.mrf.mxu1 }
 0x20f   :  { %v1761_v18 = vpop.f32.mrf.mxu3  ;;  %v2120_v26 = vpop.f32.mrf.mxu0  ;;  %v1427_v29 = vadd.f32 %v1426_v35, %v3756_v49  ;;  %v2735_v49 = vld [vmem:[%s4515_s0 + $0x308] sm:$0xf]  ;;  %v3084_v35 = vld [vmem:[%s4515_s0 + $0x334] sm:$0xf0] }
 0x210   :  { %v1762_v48 = vadd.f32 %v1761_v18, %v1593_v16  ;;  %v2121_v45 = vadd.f32 %v3934_v24, %v2120_v26  ;;  %v2736_v32 = vor.u32 %v3080_v9, %v2735_v49  ;;  %v2753_v26 = vld [vmem:[%s4515_s0 + $0x338] sm:$0xf0] }
 0x211   :  { %1465 = vmatmul.bf16.gmra.mxu1 %v2716_v34  ;;  %1634 = vmatmul.bf16.gmra.mxu2 %v2720_v4  ;;  %v3081_v34 = vld [vmem:[%s4515_s0 + $0x324] sm:$0xf]  ;;  %v2745_v4 = vld [vmem:[%s4515_s0 + $0x330] sm:$0xf0] }
 0x212   :  { %2286 = vst [vmem:[%s4518_s4 + $0x68] sm:$0xff] %v2121_v45  ;;  %2167 = vmatmul.f32.gmra.mxu0 %v1762_v48  ;;  %v3082_v48 = vld [vmem:[%s4515_s0 + $0x32c] sm:$0xf] }
 0x214   :  { %1803 = vmatmul.bf16.gmra.mxu3 %v2724_v62  ;;  %v1595_v47 = vpop.f32.mrf.mxu2 }
 0x215   :  { %v1596_v46 = vadd.f32 %v1595_v47, %v1427_v29 }
 0x216   :  { %v1428_v28 = vpop.f32.mrf.mxu1 }
 0x217   :  { %v1764_v50 = vpop.f32.mrf.mxu3  ;;  %v2123_v38 = vpop.f32.mrf.mxu0  ;;  %v1429_v21 = vadd.f32 %v1428_v28, %v3762_v3 }
 0x218   :  { %v1765_v41 = vadd.f32 %v1764_v50, %v1596_v46  ;;  %v2124_v57 = vadd.f32 %v3934_v24, %v2123_v38  ;;  %v2748_v46 = vor.u32 %v3081_v34, %v2745_v4 }
 0x21a   :  { %2287 = vst [vmem:[%s4518_s4 + $0x70] sm:$0xff] %v2124_v57  ;;  %2170 = vmatmul.f32.gmra.mxu0 %v1765_v41  ;;  %v2756_v41 = vor.u32 %v3082_v48, %v2753_v26  ;;  %v3089_v26 = vld [vmem:[%s4515_s0 + $0x364] sm:$0xf] }
 0x21c   :  { %v1597_v54 = vpop.f32.mrf.mxu2 }
 0x21d   :  { %v1598_v1 = vadd.f32 %v1597_v54, %v1429_v21 }
 0x21e   :  { %v1431_v15 = vpop.f32.mrf.mxu1 }
 0x21f   :  { %v1766_v5 = vpop.f32.mrf.mxu3  ;;  %v2126_v44 = vpop.f32.mrf.mxu0  ;;  %v1432_v3 = vadd.f32 %v1431_v15, %v3482_v63  ;;  %v2751_v63 = vld [vmem:[%s4515_s0 + $0x328] sm:$0xf]  ;;  %v3086_v15 = vld [vmem:[%s4515_s0 + $0x34c] sm:$0xf] }
 0x220   :  { %v1767_v8 = vadd.f32 %v1766_v5, %v1598_v1  ;;  %v2127_v14 = vadd.f32 %v3934_v24, %v2126_v44  ;;  %v2752_v50 = vor.u32 %v3084_v35, %v2751_v63  ;;  %v3085_v1 = vld [vmem:[%s4515_s0 + $0x344] sm:$0xf]  ;;  %v2761_v5 = vld [vmem:[%s4515_s0 + $0x350] sm:$0xf0] }
 0x221   :  { %1470 = vmatmul.bf16.gmra.mxu1 %v2732_v56  ;;  %1639 = vmatmul.bf16.gmra.mxu2 %v2736_v32  ;;  %v3088_v56 = vld [vmem:[%s4515_s0 + $0x354] sm:$0xf0] }
 0x222   :  { %2288 = vst [vmem:[%s4518_s4 + $0x78] sm:$0xff] %v2127_v14  ;;  %2173 = vmatmul.f32.gmra.mxu0 %v1767_v8 }
 0x224   :  { %1808 = vmatmul.bf16.gmra.mxu3 %v2740_v6  ;;  %v1600_v36 = vpop.f32.mrf.mxu2  ;;  %v2769_v6 = vld [vmem:[%s4515_s0 + $0x358] sm:$0xf0] }
 0x225   :  { %v1601_v27 = vadd.f32 %v1600_v36, %v1432_v3  ;;  %v2764_v3 = vor.u32 %v3085_v1, %v2761_v5 }
 0x226   :  { %v1433_v17 = vpop.f32.mrf.mxu1 }
 0x227   :  { %v1769_v2 = vpop.f32.mrf.mxu3  ;;  %v2129_v16 = vpop.f32.mrf.mxu0  ;;  %v1434_v62 = vadd.f32 %v1433_v17, %v3515_v11 }
 0x228   :  { %v1770_v60 = vadd.f32 %v1769_v2, %v1601_v27  ;;  %v2130_v18 = vadd.f32 %v3934_v24, %v2129_v16  ;;  %v2772_v2 = vor.u32 %v3086_v15, %v2769_v6  ;;  %v2793_v15 = vld [vmem:[%s4515_s0 + $0x390] sm:$0xf0]  ;;  %v3096_v6 = vld [vmem:[%s4515_s0 + $0x394] sm:$0xf0] }
 0x22a   :  { %2289 = vst [vmem:[%s4518_s4 + $0x80] sm:$0xff] %v2130_v18  ;;  %2176 = vmatmul.f32.gmra.mxu0 %v1770_v60 }
 0x22c   :  { %v1602_v45 = vpop.f32.mrf.mxu2 }
 0x22d   :  { %v1603_v29 = vadd.f32 %v1602_v45, %v1434_v62  ;;  %v2777_v45 = vld [vmem:[%s4515_s0 + $0x370] sm:$0xf0] }
 0x22e   :  { %v1436_v28 = vpop.f32.mrf.mxu1 }
 0x22f   :  { %v1771_v47 = vpop.f32.mrf.mxu3  ;;  %v2132_v57 = vpop.f32.mrf.mxu0  ;;  %v1437_v11 = vadd.f32 %v1436_v28, %v3524_v19  ;;  %v2767_v19 = vld [vmem:[%s4515_s0 + $0x348] sm:$0xf] }
 0x230   :  { %v1772_v38 = vadd.f32 %v1771_v47, %v1603_v29  ;;  %v2133_v22 = vadd.f32 %v3934_v24, %v2132_v57  ;;  %v2768_v36 = vor.u32 %v3088_v56, %v2767_v19  ;;  %v3092_v29 = vld [vmem:[%s4515_s0 + $0x374] sm:$0xf0]  ;;  %v2780_v57 = vor.u32 %v3089_v26, %v2777_v45 }
 0x231   :  { %1475 = vmatmul.bf16.gmra.mxu1 %v2748_v46  ;;  %1644 = vmatmul.bf16.gmra.mxu2 %v2752_v50  ;;  %v3090_v46 = vld [vmem:[%s4515_s0 + $0x36c] sm:$0xf]  ;;  %v2785_v50 = vld [vmem:[%s4515_s0 + $0x378] sm:$0xf0] }
 0x232   :  { %2290 = vst [vmem:[%s4518_s4 + $0x88] sm:$0xff] %v2133_v22  ;;  %2179 = vmatmul.f32.gmra.mxu0 %v1772_v38 }
 0x234   :  { %1813 = vmatmul.bf16.gmra.mxu3 %v2756_v41  ;;  %v1605_v37 = vpop.f32.mrf.mxu2 }
 0x235   :  { %v1606_v49 = vadd.f32 %v1605_v37, %v1437_v11  ;;  %v2788_v37 = vor.u32 %v3090_v46, %v2785_v50  ;;  %v3098_v50 = vld [vmem:[%s4515_s0 + $0x3ac] sm:$0xf] }
 0x236   :  { %v1438_v21 = vpop.f32.mrf.mxu1 }
 0x237   :  { %v1774_v9 = vpop.f32.mrf.mxu3  ;;  %v2135_v55 = vpop.f32.mrf.mxu0  ;;  %v1439_v32 = vadd.f32 %v1438_v21, %v3557_v31 }
 0x238   :  { %v1775_v10 = vadd.f32 %v1774_v9, %v1606_v49  ;;  %v2136_v54 = vadd.f32 %v3934_v24, %v2135_v55 }
 0x23a   :  { %2291 = vst [vmem:[%s4518_s4 + $0x90] sm:$0xff] %v2136_v54  ;;  %2182 = vmatmul.f32.gmra.mxu0 %v1775_v10 }
 0x23c   :  { %v1607_v8 = vpop.f32.mrf.mxu2 }
 0x23d   :  { %v1608_v44 = vadd.f32 %v1607_v8, %v1439_v32  ;;  %v3093_v32 = vld [vmem:[%s4515_s0 + $0x384] sm:$0xf] }
 0x23e   :  { %v1441_v27 = vpop.f32.mrf.mxu1 }
 0x23f   :  { %v1776_v14 = vpop.f32.mrf.mxu3  ;;  %v2138_v60 = vpop.f32.mrf.mxu0  ;;  %v1442_v31 = vadd.f32 %v1441_v27, %v3566_v39  ;;  %v2783_v39 = vld [vmem:[%s4515_s0 + $0x368] sm:$0xf] }
 0x240   :  { %v1777_v17 = vadd.f32 %v1776_v14, %v1608_v44  ;;  %v2139_v16 = vadd.f32 %v3934_v24, %v2138_v60  ;;  %v2784_v22 = vor.u32 %v3092_v29, %v2783_v39  ;;  %v3094_v44 = vld [vmem:[%s4515_s0 + $0x38c] sm:$0xf]  ;;  %v2801_v14 = vld [vmem:[%s4515_s0 + $0x398] sm:$0xf0]  ;;  %v3097_v39 = vld [vmem:[%s4515_s0 + $0x3a4] sm:$0xf] }
 0x241   :  { %1480 = vmatmul.bf16.gmra.mxu1 %v2764_v3  ;;  %1649 = vmatmul.bf16.gmra.mxu2 %v2768_v36  ;;  %v2809_v29 = vld [vmem:[%s4515_s0 + $0x3b0] sm:$0xf0] }
 0x242   :  { %2292 = vst [vmem:[%s4518_s4 + $0x98] sm:$0xff] %v2139_v16  ;;  %2185 = vmatmul.f32.gmra.mxu0 %v1777_v17  ;;  %v2804_v16 = vor.u32 %v3094_v44, %v2801_v14  ;;  %v2833_v44 = vld [vmem:[%s4515_s0 + $0x3d8] sm:$0xf0] }
 0x244   :  { %1818 = vmatmul.bf16.gmra.mxu3 %v2772_v2  ;;  %v1610_v18 = vpop.f32.mrf.mxu2  ;;  %v2796_v2 = vor.u32 %v3093_v32, %v2793_v15  ;;  %v3101_v32 = vld [vmem:[%s4515_s0 + $0x3c4] sm:$0xf]  ;;  %v2825_v15 = vld [vmem:[%s4515_s0 + $0x3d0] sm:$0xf0] }
 0x245   :  { %v1611_v34 = vadd.f32 %v1610_v18, %v1442_v31 }
 0x246   :  { %v1443_v63 = vpop.f32.mrf.mxu1 }
 0x247   :  { %v1779_v4 = vpop.f32.mrf.mxu3  ;;  %v2141_v62 = vpop.f32.mrf.mxu0  ;;  %v1444_v47 = vadd.f32 %v1443_v63, %v3599_v51 }
 0x248   :  { %v1780_v35 = vadd.f32 %v1779_v4, %v1611_v34  ;;  %v2142_v48 = vadd.f32 %v3934_v24, %v2141_v62 }
 0x24a   :  { %2293 = vst [vmem:[%s4518_s4 + $0xa0] sm:$0xff] %v2142_v48  ;;  %2188 = vmatmul.f32.gmra.mxu0 %v1780_v35 }
 0x24c   :  { %v1612_v28 = vpop.f32.mrf.mxu2 }
 0x24d   :  { %v1613_v41 = vadd.f32 %v1612_v28, %v1444_v47  ;;  %v3100_v47 = vld [vmem:[%s4515_s0 + $0x3b4] sm:$0xf0]  ;;  %v2817_v28 = vld [vmem:[%s4515_s0 + $0x3b8] sm:$0xf0] }
 0x24e   :  { %v1446_v11 = vpop.f32.mrf.mxu1 }
 0x24f   :  { %v1781_v38 = vpop.f32.mrf.mxu3  ;;  %v2144_v9 = vpop.f32.mrf.mxu0  ;;  %v1447_v51 = vadd.f32 %v1446_v11, %v3608_v59  ;;  %v2799_v59 = vld [vmem:[%s4515_s0 + $0x388] sm:$0xf] }
 0x250   :  { %v1782_v49 = vadd.f32 %v1781_v38, %v1613_v41  ;;  %v2145_v21 = vadd.f32 %v3934_v24, %v2144_v9  ;;  %v2800_v17 = vor.u32 %v3096_v6, %v2799_v59  ;;  %v3104_v59 = vld [vmem:[%s4515_s0 + $0x3d4] sm:$0xf0] }
 0x251   :  { %1485 = vmatmul.bf16.gmra.mxu1 %v2780_v57  ;;  %1654 = vmatmul.bf16.gmra.mxu2 %v2784_v22  ;;  %v2812_v22 = vor.u32 %v3097_v39, %v2809_v29  ;;  %v3108_v39 = vld [vmem:[%s4515_s0 + $0x3f4] sm:$0xf0] }
 0x252   :  { %2294 = vst [vmem:[%s4518_s4 + $0xa8] sm:$0xff] %v2145_v21  ;;  %2191 = vmatmul.f32.gmra.mxu0 %v1782_v49  ;;  %v2820_v49 = vor.u32 %v3098_v50, %v2817_v28 }
 0x254   :  { %1823 = vmatmul.bf16.gmra.mxu3 %v2788_v37  ;;  %v1615_v10 = vpop.f32.mrf.mxu2 }
 0x255   :  { %v1616_v55 = vadd.f32 %v1615_v10, %v1447_v51 }
 0x256   :  { %v1448_v1 = vpop.f32.mrf.mxu1 }
 0x257   :  { %v1784_v54 = vpop.f32.mrf.mxu3  ;;  %v2147_v19 = vpop.f32.mrf.mxu0  ;;  %v1449_v8 = vadd.f32 %v1448_v1, %v3641_v12 }
 0x258   :  { %v1785_v5 = vadd.f32 %v1784_v54, %v1616_v55  ;;  %v2148_v56 = vadd.f32 %v3934_v24, %v2147_v19 }
 0x25a   :  { %2295 = vst [vmem:[%s4518_s4 + $0xb0] sm:$0xff] %v2148_v56  ;;  %2194 = vmatmul.f32.gmra.mxu0 %v1785_v5 }
 0x25c   :  { %v1617_v3 = vpop.f32.mrf.mxu2 }
 0x25d   :  { %v1618_v36 = vadd.f32 %v1617_v3, %v1449_v8  ;;  %v3102_v8 = vld [vmem:[%s4515_s0 + $0x3cc] sm:$0xf] }
 0x25e   :  { %v1451_v60 = vpop.f32.mrf.mxu1 }
 0x25f   :  { %v1786_v27 = vpop.f32.mrf.mxu3  ;;  %v2150_v18 = vpop.f32.mrf.mxu0  ;;  %v1452_v12 = vadd.f32 %v1451_v60, %v3650_v25  ;;  %v2815_v25 = vld [vmem:[%s4515_s0 + $0x3a8] sm:$0xf]  ;;  %v2836_v60 = vor.u32 %v3102_v8, %v2833_v44 }
 0x260   :  { %v1787_v31 = vadd.f32 %v1786_v27, %v1618_v36  ;;  %v2151_v34 = vadd.f32 %v3934_v24, %v2150_v18  ;;  %v2816_v11 = vor.u32 %v3100_v47, %v2815_v25  ;;  %v2828_v27 = vor.u32 %v3101_v32, %v2825_v15  ;;  %v3106_v25 = vld [vmem:[%s4515_s0 + $0x3ec] sm:$0xf]  ;;  %v2849_v47 = vld [vmem:[%s4515_s0 + $0x3f8] sm:$0xf0] }
 0x261   :  { %1490 = vmatmul.bf16.gmra.mxu1 %v2796_v2  ;;  %1659 = vmatmul.bf16.gmra.mxu2 %v2800_v17 }
 0x262   :  { %2296 = vst [vmem:[%s4518_s4 + $0xb8] sm:$0xff] %v2151_v34  ;;  %2197 = vmatmul.f32.gmra.mxu0 %v1787_v31 }
 0x264   :  { %1828 = vmatmul.bf16.gmra.mxu3 %v2804_v16  ;;  %v1620_v4 = vpop.f32.mrf.mxu2 }
 0x265   :  { %v1621_v63 = vadd.f32 %v1620_v4, %v1452_v12 }
 0x266   :  { %v1453_v62 = vpop.f32.mrf.mxu1 }
 0x267   :  { %v1789_v35 = vpop.f32.mrf.mxu3  ;;  %v2153_v26 = vpop.f32.mrf.mxu0  ;;  %v1454_v46 = vadd.f32 %v1453_v62, %v3683_v43 }
 0x268   :  { %v1790_v48 = vadd.f32 %v1789_v35, %v1621_v63  ;;  %v2154_v45 = vadd.f32 %v3934_v24, %v2153_v26  ;;  %v3105_v26 = vld [vmem:[%s4515_s0 + $0x3e4] sm:$0xf] }
 0x26a   :  { %2297 = vst [vmem:[%s4518_s4 + $0xc0] sm:$0xff] %v2154_v45  ;;  %2200 = vmatmul.f32.gmra.mxu0 %v1790_v48  ;;  %v2841_v45 = vld [vmem:[%s4515_s0 + $0x3f0] sm:$0xf0] }
 0x26c   :  { %v1622_v41 = vpop.f32.mrf.mxu2 }
 0x26d   :  { %v1623_v38 = vadd.f32 %v1622_v41, %v1454_v46  ;;  %v2844_v41 = vor.u32 %v3105_v26, %v2841_v45 }
 0x26e   :  { %v1456_v37 = vpop.f32.mrf.mxu1 }
 0x26f   :  { %v1791_v57 = vpop.f32.mrf.mxu3  ;;  %v2156_v21 = vpop.f32.mrf.mxu0  ;;  %v1457_v43 = vadd.f32 %v1456_v37, %v3692_v52  ;;  %v2831_v52 = vld [vmem:[%s4515_s0 + $0x3c8] sm:$0xf] }
 0x270   :  { %v1792_v9 = vadd.f32 %v1791_v57, %v1623_v38  ;;  %v2157_v51 = vadd.f32 %v3934_v24, %v2156_v21  ;;  %v2832_v2 = vor.u32 %v3104_v59, %v2831_v52 }
 0x271   :  { %1495 = vmatmul.bf16.gmra.mxu1 %v2812_v22  ;;  %1664 = vmatmul.bf16.gmra.mxu2 %v2816_v11  ;;  %v2852_v22 = vor.u32 %v3106_v25, %v2849_v47 }
 0x272   :  { %2298 = vst [vmem:[%s4518_s4 + $0xc8] sm:$0xff] %v2157_v51  ;;  %2203 = vmatmul.f32.gmra.mxu0 %v1792_v9 }
 0x274   :  { %1833 = vmatmul.bf16.gmra.mxu3 %v2820_v49  ;;  %v1625_v10 = vpop.f32.mrf.mxu2 }
 0x275   :  { %v1626_v55 = vadd.f32 %v1625_v10, %v1457_v43 }
 0x276   :  { %v1458_v1 = vpop.f32.mrf.mxu1 }
 0x277   :  { %v1794_v54 = vpop.f32.mrf.mxu3  ;;  %v2159_v19 = vpop.f32.mrf.mxu0  ;;  %v1459_v6 = vadd.f32 %v1458_v1, %v3719_v7 }
 0x278   :  { %v1795_v5 = vadd.f32 %v1794_v54, %v1626_v55  ;;  %v2160_v56 = vadd.f32 %v3934_v24, %v2159_v19 }
 0x27a   :  { %2299 = vst [vmem:[%s4518_s4 + $0xd0] sm:$0xff] %v2160_v56  ;;  %2206 = vmatmul.f32.gmra.mxu0 %v1795_v5 }
 0x27c   :  { %v1627_v14 = vpop.f32.mrf.mxu2 }
 0x27d   :  { %v1628_v3 = vadd.f32 %v1627_v14, %v1459_v6 }
 0x27e   :  { %v1461_v17 = vpop.f32.mrf.mxu1 }
 0x27f   :  { %v1796_v36 = vpop.f32.mrf.mxu3  ;;  %v2162_v31 = vpop.f32.mrf.mxu0  ;;  %v1462_v7 = vadd.f32 %v1461_v17, %v3728_v23  ;;  %v2847_v23 = vld [vmem:[%s4515_s0 + $0x3e8] sm:$0xf] }
 0x280   :  { %v1797_v16 = vadd.f32 %v1796_v36, %v1628_v3  ;;  %v2163_v18 = vadd.f32 %v3934_v24, %v2162_v31  ;;  %v2848_v38 = vor.u32 %v3108_v39, %v2847_v23 }
 0x281   :  { %1500 = vmatmul.bf16.gmra.mxu1 %v2828_v27  ;;  %1669 = vmatmul.bf16.gmra.mxu2 %v2832_v2 }
 0x282   :  { %2300 = vst [vmem:[%s4518_s4 + $0xd8] sm:$0xff] %v2163_v18  ;;  %2209 = vmatmul.f32.gmra.mxu0 %v1797_v16  ;;  %v4374_v18 = vld [vmem:[%s4517_s3] ss:$0 sm:$0xff] }
 0x284   :  { %1838 = vmatmul.bf16.gmra.mxu3 %v2836_v60  ;;  %v1630_v34 = vpop.f32.mrf.mxu2 }
 0x285   :  { %v1631_v12 = vadd.f32 %v1630_v34, %v1462_v7 }
 0x286   :  { %v1463_v63 = vpop.f32.mrf.mxu1 }
 0x287   :  { %v1799_v4 = vpop.f32.mrf.mxu3  ;;  %v2165_v62 = vpop.f32.mrf.mxu0  ;;  %v1464_v29 = vadd.f32 %v1463_v63, %v3752_v42 }
 0x288   :  { %v1800_v35 = vadd.f32 %v1799_v4, %v1631_v12  ;;  %v2166_v48 = vadd.f32 %v3934_v24, %v2165_v62 }
 0x28a   :  { %2301 = vst [vmem:[%s4518_s4 + $0xe0] sm:$0xff] %v2166_v48  ;;  %2212 = vmatmul.f32.gmra.mxu0 %v1800_v35 }
 0x28c   :  { %v1632_v46 = vpop.f32.mrf.mxu2 }
 0x28d   :  { %v1633_v50 = vadd.f32 %v1632_v46, %v1464_v29 }
 0x28e   :  { %v1466_v57 = vpop.f32.mrf.mxu1 }
 0x28f   :  { %v1801_v28 = vpop.f32.mrf.mxu3  ;;  %v2168_v37 = vpop.f32.mrf.mxu0  ;;  %v1467_v42 = vadd.f32 %v1466_v57, %v3758_v58 }
 0x290   :  { %v1802_v11 = vadd.f32 %v1801_v28, %v1633_v50  ;;  %v2169_v49 = vadd.f32 %v3934_v24, %v2168_v37 }
 0x291   :  { %1505 = vmatmul.bf16.gmra.mxu1 %v2844_v41  ;;  %1674 = vmatmul.bf16.gmra.mxu2 %v2848_v38 }
 0x292   :  { %2302 = vst [vmem:[%s4518_s4 + $0xe8] sm:$0xff] %v2169_v49  ;;  %2215 = vmatmul.f32.gmra.mxu0 %v1802_v11 }
 0x294   :  { %1843 = vmatmul.bf16.gmra.mxu3 %v2852_v22  ;;  %v1635_v9 = vpop.f32.mrf.mxu2 }
 0x295   :  { %v1636_v21 = vadd.f32 %v1635_v9, %v1467_v42 }
 0x296   :  { %v1468_v43 = vpop.f32.mrf.mxu1 }
 0x297   :  { %v1804_v51 = vpop.f32.mrf.mxu3  ;;  %v2171_v55 = vpop.f32.mrf.mxu0  ;;  %v1469_v1 = vadd.f32 %v1468_v43, %v3782_v30 }
 0x298   :  { %v1805_v10 = vadd.f32 %v1804_v51, %v1636_v21  ;;  %v2172_v54 = vadd.f32 %v3934_v24, %v2171_v55 }
 0x29a   :  { %2303 = vst [vmem:[%s4518_s4 + $0xf0] sm:$0xff] %v2172_v54  ;;  %2218 = vmatmul.f32.gmra.mxu0 %v1805_v10 }
 0x29c   :  { %v1637_v5 = vpop.f32.mrf.mxu2 }
 0x29d   :  { %v1638_v19 = vadd.f32 %v1637_v5, %v1469_v1 }
 0x29e   :  { %v1471_v32 = vpop.f32.mrf.mxu1 }
 0x29f   :  { %v1806_v56 = vpop.f32.mrf.mxu3  ;;  %v2174_v15 = vpop.f32.mrf.mxu0  ;;  %v1472_v59 = vadd.f32 %v1471_v32, %v3484_v0 }
 0x2a0   :  { %v1807_v58 = vadd.f32 %v1806_v56, %v1638_v19  ;;  %v2175_v52 = vadd.f32 %v3934_v24, %v2174_v15  ;;  %v4528_v19 = vld [vmem:[#allocation3_spill] sm:$0xff] }
 0x2a2   :  { %2304 = vst [vmem:[%s4518_s4 + $0xf8] sm:$0xff] %v2175_v52  ;;  %2221 = vmatmul.f32.gmra.mxu0 %v1807_v58 }
 0x2a4   :  { %v1640_v6 = vpop.f32.mrf.mxu2 }
 0x2a5   :  { %v1641_v8 = vadd.f32 %v1640_v6, %v1472_v59 }
 0x2a6   :  { %v1473_v14 = vpop.f32.mrf.mxu1 }
 0x2a7   :  { %v1809_v44 = vpop.f32.mrf.mxu3  ;;  %v2177_v3 = vpop.f32.mrf.mxu0  ;;  %v1474_v27 = vadd.f32 %v1473_v14, %v3517_v13 }
 0x2a8   :  { %v1810_v30 = vadd.f32 %v1809_v44, %v1641_v8  ;;  %v2178_v36 = vadd.f32 %v3934_v24, %v2177_v3  ;;  %v4529_v8 = vld [vmem:[#allocation4_spill] sm:$0xff] }
 0x2aa   :  { %2305 = vst [vmem:[%s4518_s4 + $0x100] sm:$0xff] %v2178_v36  ;;  %2224 = vmatmul.f32.gmra.mxu0 %v1810_v30 }
 0x2ac   :  { %v1642_v2 = vpop.f32.mrf.mxu2 }
 0x2ad   :  { %v1643_v17 = vadd.f32 %v1642_v2, %v1474_v27 }
 0x2ae   :  { %v1476_v16 = vpop.f32.mrf.mxu1 }
 0x2af   :  { %v1811_v60 = vpop.f32.mrf.mxu3  ;;  %v2180_v31 = vpop.f32.mrf.mxu0  ;;  %v1477_v13 = vadd.f32 %v1476_v16, %v3526_v20 }
 0x2b0   :  { %v1812_v0 = vadd.f32 %v1811_v60, %v1643_v17  ;;  %v2181_v24 = vadd.f32 %v4374_v18, %v2180_v31  ;;  %v4530_v60 = vld [vmem:[#allocation5_spill] sm:$0xff] }
 0x2b2   :  { %2306 = vst [vmem:[%s4518_s4 + $0x108] sm:$0xff] %v2181_v24  ;;  %2227 = vmatmul.f32.gmra.mxu0 %v1812_v0 }
 0x2b4   :  { %v1645_v7 = vpop.f32.mrf.mxu2 }
 0x2b5   :  { %v1646_v34 = vadd.f32 %v1645_v7, %v1477_v13 }
 0x2b6   :  { %v1478_v4 = vpop.f32.mrf.mxu1 }
 0x2b7   :  { %v1814_v12 = vpop.f32.mrf.mxu3  ;;  %v2183_v35 = vpop.f32.mrf.mxu0  ;;  %v1479_v48 = vadd.f32 %v1478_v4, %v3559_v33  ;;  %v4531_v4 = vld [vmem:[#allocation6_spill] sm:$0xff] }
 0x2b8   :  { %v1815_v63 = vadd.f32 %v1814_v12, %v1646_v34  ;;  %v2184_v62 = vadd.f32 %v4374_v18, %v2183_v35 }
 0x2ba   :  { %2307 = vst [vmem:[%s4518_s4 + $0x110] sm:$0xff] %v2184_v62  ;;  %2230 = vmatmul.f32.gmra.mxu0 %v1815_v63 }
 0x2bc   :  { %v1647_v26 = vpop.f32.mrf.mxu2 }
 0x2bd   :  { %v1648_v45 = vadd.f32 %v1647_v26, %v1479_v48 }
 0x2be   :  { %v1481_v39 = vpop.f32.mrf.mxu1 }
 0x2bf   :  { %v1816_v23 = vpop.f32.mrf.mxu3  ;;  %v2186_v29 = vpop.f32.mrf.mxu0  ;;  %v1482_v47 = vadd.f32 %v1481_v39, %v3568_v40 }
 0x2c0   :  { %v1817_v20 = vadd.f32 %v1816_v23, %v1648_v45  ;;  %v2187_v25 = vadd.f32 %v4374_v18, %v2186_v29 }
 0x2c2   :  { %2308 = vst [vmem:[%s4518_s4 + $0x118] sm:$0xff] %v2187_v25  ;;  %2233 = vmatmul.f32.gmra.mxu0 %v1817_v20  ;;  %v4532_v20 = vld [vmem:[#allocation7_spill] sm:$0xff] }
 0x2c4   :  { %v1650_v46 = vpop.f32.mrf.mxu2 }
 0x2c5   :  { %v1651_v50 = vadd.f32 %v1650_v46, %v1482_v47 }
 0x2c6   :  { %v1483_v41 = vpop.f32.mrf.mxu1 }
 0x2c7   :  { %v1819_v28 = vpop.f32.mrf.mxu3  ;;  %v2189_v38 = vpop.f32.mrf.mxu0  ;;  %v1484_v22 = vadd.f32 %v1483_v41, %v3601_v53 }
 0x2c8   :  { %v1820_v33 = vadd.f32 %v1819_v28, %v1651_v50  ;;  %v2190_v57 = vadd.f32 %v4374_v18, %v2189_v38  ;;  %v4533_v38 = vld [vmem:[#allocation8_spill] sm:$0xff] }
 0x2ca   :  { %2309 = vst [vmem:[%s4518_s4 + $0x120] sm:$0xff] %v2190_v57  ;;  %2236 = vmatmul.f32.gmra.mxu0 %v1820_v33 }
 0x2cc   :  { %v1652_v11 = vpop.f32.mrf.mxu2 }
 0x2cd   :  { %v1653_v37 = vadd.f32 %v1652_v11, %v1484_v22 }
 0x2ce   :  { %v1486_v42 = vpop.f32.mrf.mxu1 }
 0x2cf   :  { %v1821_v49 = vpop.f32.mrf.mxu3  ;;  %v2192_v9 = vpop.f32.mrf.mxu0  ;;  %v1487_v51 = vadd.f32 %v1486_v42, %v3610_v61 }
 0x2d0   :  { %v1822_v40 = vadd.f32 %v1821_v49, %v1653_v37  ;;  %v2193_v21 = vadd.f32 %v4374_v18, %v2192_v9 }
 0x2d2   :  { %2310 = vst [vmem:[%s4518_s4 + $0x128] sm:$0xff] %v2193_v21  ;;  %2239 = vmatmul.f32.gmra.mxu0 %v1822_v40  ;;  %v4534_v21 = vld [vmem:[#allocation9_spill] sm:$0xff] }
 0x2d4   :  { %v1655_v43 = vpop.f32.mrf.mxu2 }
 0x2d5   :  { %v1656_v10 = vadd.f32 %v1655_v43, %v1487_v51 }
 0x2d6   :  { %v1488_v54 = vpop.f32.mrf.mxu1 }
 0x2d7   :  { %v1824_v55 = vpop.f32.mrf.mxu3  ;;  %v2195_v1 = vpop.f32.mrf.mxu0  ;;  %v1489_v56 = vadd.f32 %v1488_v54, %v4528_v19  ;;  %v4535_v19 = vld [vmem:[#allocation10_spill] sm:$0xff] }
 0x2d8   :  { %v1825_v53 = vadd.f32 %v1824_v55, %v1656_v10  ;;  %v2196_v5 = vadd.f32 %v4374_v18, %v2195_v1 }
 0x2da   :  { %2311 = vst [vmem:[%s4518_s4 + $0x130] sm:$0xff] %v2196_v5  ;;  %2242 = vmatmul.f32.gmra.mxu0 %v1825_v53 }
 0x2dc   :  { %v1657_v32 = vpop.f32.mrf.mxu2 }
 0x2dd   :  { %v1658_v58 = vadd.f32 %v1657_v32, %v1489_v56 }
 0x2de   :  { %v1491_v52 = vpop.f32.mrf.mxu1 }
 0x2df   :  { %v1826_v15 = vpop.f32.mrf.mxu3  ;;  %v2198_v59 = vpop.f32.mrf.mxu0  ;;  %v1492_v44 = vadd.f32 %v1491_v52, %v4529_v8  ;;  %v4536_v8 = vld [vmem:[#allocation11_spill] sm:$0xff] }
 0x2e0   :  { %v1827_v61 = vadd.f32 %v1826_v15, %v1658_v58  ;;  %v2199_v6 = vadd.f32 %v4374_v18, %v2198_v59 }
 0x2e2   :  { %2312 = vst [vmem:[%s4518_s4 + $0x138] sm:$0xff] %v2199_v6  ;;  %2245 = vmatmul.f32.gmra.mxu0 %v1827_v61 }
 0x2e4   :  { %v1660_v14 = vpop.f32.mrf.mxu2 }
 0x2e5   :  { %v1661_v30 = vadd.f32 %v1660_v14, %v1492_v44 }
 0x2e6   :  { %v1493_v36 = vpop.f32.mrf.mxu1 }
 0x2e7   :  { %v1829_v3 = vpop.f32.mrf.mxu3  ;;  %v2201_v2 = vpop.f32.mrf.mxu0  ;;  %v1494_v16 = vadd.f32 %v1493_v36, %v4530_v60 }
 0x2e8   :  { %v1830_v27 = vadd.f32 %v1829_v3, %v1661_v30  ;;  %v2202_v17 = vadd.f32 %v4374_v18, %v2201_v2 }
 0x2ea   :  { %2313 = vst [vmem:[%s4518_s4 + $0x140] sm:$0xff] %v2202_v17  ;;  %2248 = vmatmul.f32.gmra.mxu0 %v1830_v27 }
 0x2ec   :  { %v1662_v0 = vpop.f32.mrf.mxu2 }
 0x2ed   :  { %v1663_v31 = vadd.f32 %v1662_v0, %v1494_v16 }
 0x2ee   :  { %v1496_v13 = vpop.f32.mrf.mxu1 }
 0x2ef   :  { %v1831_v24 = vpop.f32.mrf.mxu3  ;;  %v2204_v34 = vpop.f32.mrf.mxu0  ;;  %v1497_v63 = vadd.f32 %v1496_v13, %v4531_v4 }
 0x2f0   :  { %v1832_v7 = vadd.f32 %v1831_v24, %v1663_v31  ;;  %v2205_v12 = vadd.f32 %v4374_v18, %v2204_v34 }
 0x2f2   :  { %2314 = vst [vmem:[%s4518_s4 + $0x148] sm:$0xff] %v2205_v12  ;;  %2251 = vmatmul.f32.gmra.mxu0 %v1832_v7 }
 0x2f4   :  { %v1665_v35 = vpop.f32.mrf.mxu2 }
 0x2f5   :  { %v1666_v62 = vadd.f32 %v1665_v35, %v1497_v63 }
 0x2f6   :  { %v1498_v26 = vpop.f32.mrf.mxu1 }
 0x2f7   :  { %v1834_v48 = vpop.f32.mrf.mxu3  ;;  %v2207_v23 = vpop.f32.mrf.mxu0  ;;  %v1499_v29 = vadd.f32 %v1498_v26, %v4532_v20 }
 0x2f8   :  { %v1835_v45 = vadd.f32 %v1834_v48, %v1666_v62  ;;  %v2208_v39 = vadd.f32 %v4374_v18, %v2207_v23 }
 0x2fa   :  { %2315 = vst [vmem:[%s4518_s4 + $0x150] sm:$0xff] %v2208_v39  ;;  %2254 = vmatmul.f32.gmra.mxu0 %v1835_v45 }
 0x2fc   :  { %v1667_v25 = vpop.f32.mrf.mxu2 }
 0x2fd   :  { %v1668_v47 = vadd.f32 %v1667_v25, %v1499_v29 }
 0x2fe   :  { %v1501_v50 = vpop.f32.mrf.mxu1 }
 0x2ff   :  { %v1836_v46 = vpop.f32.mrf.mxu3  ;;  %v2210_v41 = vpop.f32.mrf.mxu0  ;;  %v1502_v57 = vadd.f32 %v1501_v50, %v4533_v38 }
 0x300   :  { %v1837_v28 = vadd.f32 %v1836_v46, %v1668_v47  ;;  %v2211_v33 = vadd.f32 %v4374_v18, %v2210_v41 }
 0x302   :  { %2316 = vst [vmem:[%s4518_s4 + $0x158] sm:$0xff] %v2211_v33  ;;  %2257 = vmatmul.f32.gmra.mxu0 %v1837_v28 }
 0x304   :  { %v1670_v22 = vpop.f32.mrf.mxu2 }
 0x305   :  { %v1671_v11 = vadd.f32 %v1670_v22, %v1502_v57 }
 0x306   :  { %v1503_v49 = vpop.f32.mrf.mxu1 }
 0x307   :  { %v1839_v37 = vpop.f32.mrf.mxu3  ;;  %v2213_v40 = vpop.f32.mrf.mxu0  ;;  %v1504_v51 = vadd.f32 %v1503_v49, %v4534_v21 }
 0x308   :  { %v1840_v42 = vadd.f32 %v1839_v37, %v1671_v11  ;;  %v2214_v9 = vadd.f32 %v4374_v18, %v2213_v40 }
 0x30a   :  { %2317 = vst [vmem:[%s4518_s4 + $0x160] sm:$0xff] %v2214_v9  ;;  %2260 = vmatmul.f32.gmra.mxu0 %v1840_v42 }
 0x30c   :  { %v1672_v43 = vpop.f32.mrf.mxu2 }
 0x30d   :  { %v1673_v10 = vadd.f32 %v1672_v43, %v1504_v51 }
 0x30e   :  { %v1506_v54 = vpop.f32.mrf.mxu1 }
 0x30f   :  { %v1841_v55 = vpop.f32.mrf.mxu3  ;;  %v2216_v1 = vpop.f32.mrf.mxu0  ;;  %v1507_v56 = vadd.f32 %v1506_v54, %v4535_v19 }
 0x310   :  { %v1842_v53 = vadd.f32 %v1841_v55, %v1673_v10  ;;  %v2217_v5 = vadd.f32 %v4374_v18, %v2216_v1 }
 0x312   :  { %2318 = vst [vmem:[%s4518_s4 + $0x168] sm:$0xff] %v2217_v5  ;;  %2263 = vmatmul.f32.gmra.mxu0 %v1842_v53 }
 0x314   :  { %v1675_v32 = vpop.f32.mrf.mxu2 }
 0x315   :  { %v1676_v58 = vadd.f32 %v1675_v32, %v1507_v56 }
 0x316   :  { %v1508_v59 = vpop.f32.mrf.mxu1 }
 0x317   :  { %v1844_v15 = vpop.f32.mrf.mxu3  ;;  %v2219_v61 = vpop.f32.mrf.mxu0  ;;  %v1509_v44 = vadd.f32 %v1508_v59, %v4536_v8 }
 0x318   :  { %v1845_v52 = vadd.f32 %v1844_v15, %v1676_v58  ;;  %v2220_v6 = vadd.f32 %v4374_v18, %v2219_v61 }
 0x31a   :  { %2319 = vst [vmem:[%s4518_s4 + $0x170] sm:$0xff] %v2220_v6  ;;  %2266 = vmatmul.f32.gmra.mxu0 %v1845_v52 }
 0x31c   :  { %v1677_v14 = vpop.f32.mrf.mxu2 }
 0x31d   :  { %v1678_v30 = vadd.f32 %v1677_v14, %v1509_v44 }
 0x31f   :  { %v1846_v3 = vpop.f32.mrf.mxu3  ;;  %v2222_v27 = vpop.f32.mrf.mxu0 }
 0x320   :  { %v1847_v36 = vadd.f32 %v1846_v3, %v1678_v30  ;;  %v2223_v2 = vadd.f32 %v4374_v18, %v2222_v27 }
 0x322   :  { %2320 = vst [vmem:[%s4518_s4 + $0x178] sm:$0xff] %v2223_v2  ;;  %2269 = vmatmul.f32.gmra.mxu0 %v1847_v36 }
 0x327   :  { %v2225_v17 = vpop.f32.mrf.mxu0 }
 0x328   :  { %v2226_v60 = vadd.f32 %v4374_v18, %v2225_v17 }
 0x32a   :  { %2321 = vst [vmem:[%s4518_s4 + $0x180] sm:$0xff] %v2226_v60 }
 0x32f   :  { %v2228_v16 = vpop.f32.mrf.mxu0 }
 0x330   :  { %v2229_v0 = vadd.f32 %v4374_v18, %v2228_v16 }
 0x332   :  { %2322 = vst [vmem:[%s4518_s4 + $0x188] sm:$0xff] %v2229_v0 }
 0x337   :  { %v2231_v31 = vpop.f32.mrf.mxu0 }
 0x338   :  { %v2232_v24 = vadd.f32 %v4374_v18, %v2231_v31 }
 0x33a   :  { %2323 = vst [vmem:[%s4518_s4 + $0x190] sm:$0xff] %v2232_v24 }
 0x33f   :  { %v2234_v13 = vpop.f32.mrf.mxu0 }
 0x340   :  { %v2235_v7 = vadd.f32 %v4374_v18, %v2234_v13 }
 0x342   :  { %2324 = vst [vmem:[%s4518_s4 + $0x198] sm:$0xff] %v2235_v7 }
 0x347   :  { %v2237_v34 = vpop.f32.mrf.mxu0 }
 0x348   :  { %v2238_v12 = vadd.f32 %v4374_v18, %v2237_v34 }
 0x34a   :  { %2325 = vst [vmem:[%s4518_s4 + $0x1a0] sm:$0xff] %v2238_v12 }
 0x34f   :  { %v2240_v4 = vpop.f32.mrf.mxu0 }
 0x350   :  { %v2241_v63 = vadd.f32 %v4374_v18, %v2240_v4 }
 0x352   :  { %2326 = vst [vmem:[%s4518_s4 + $0x1a8] sm:$0xff] %v2241_v63 }
 0x357   :  { %v2243_v35 = vpop.f32.mrf.mxu0 }
 0x358   :  { %v2244_v62 = vadd.f32 %v4374_v18, %v2243_v35 }
 0x35a   :  { %2327 = vst [vmem:[%s4518_s4 + $0x1b0] sm:$0xff] %v2244_v62 }
 0x35f   :  { %v2246_v48 = vpop.f32.mrf.mxu0 }
 0x360   :  { %v2247_v26 = vadd.f32 %v4374_v18, %v2246_v48 }
 0x362   :  { %2328 = vst [vmem:[%s4518_s4 + $0x1b8] sm:$0xff] %v2247_v26 }
 0x367   :  { %v2249_v45 = vpop.f32.mrf.mxu0 }
 0x368   :  { %v2250_v23 = vadd.f32 %v4374_v18, %v2249_v45 }
 0x36a   :  { %2329 = vst [vmem:[%s4518_s4 + $0x1c0] sm:$0xff] %v2250_v23 }
 0x36f   :  { %v2252_v39 = vpop.f32.mrf.mxu0 }
 0x370   :  { %v2253_v20 = vadd.f32 %v4374_v18, %v2252_v39 }
 0x372   :  { %2330 = vst [vmem:[%s4518_s4 + $0x1c8] sm:$0xff] %v2253_v20 }
 0x377   :  { %v2255_v29 = vpop.f32.mrf.mxu0 }
 0x378   :  { %v2256_v25 = vadd.f32 %v4374_v18, %v2255_v29 }
 0x37a   :  { %2331 = vst [vmem:[%s4518_s4 + $0x1d0] sm:$0xff] %v2256_v25 }
 0x37f   :  { %v2258_v47 = vpop.f32.mrf.mxu0 }
 0x380   :  { %v2259_v46 = vadd.f32 %v4374_v18, %v2258_v47 }
 0x382   :  { %2332 = vst [vmem:[%s4518_s4 + $0x1d8] sm:$0xff] %v2259_v46 }
 0x387   :  { %v2261_v50 = vpop.f32.mrf.mxu0 }
 0x388   :  { %v2262_v28 = vadd.f32 %v4374_v18, %v2261_v50 }
 0x38a   :  { %2333 = vst [vmem:[%s4518_s4 + $0x1e0] sm:$0xff] %v2262_v28 }
 0x38f   :  { %v2264_v41 = vpop.f32.mrf.mxu0 }
 0x390   :  { %v2265_v33 = vadd.f32 %v4374_v18, %v2264_v41 }
 0x392   :  { %2334 = vst [vmem:[%s4518_s4 + $0x1e8] sm:$0xff] %v2265_v33 }
 0x397   :  { %v2267_v38 = vpop.f32.mrf.mxu0 }
 0x398   :  { %v2268_v57 = vadd.f32 %v4374_v18, %v2267_v38 }
 0x39a   :  { %2335 = vst [vmem:[%s4518_s4 + $0x1f0] sm:$0xff] %v2268_v57 }
 0x39f   :  { %v2270_v22 = vpop.f32.mrf.mxu0 }
 0x3a0   :  { %v2271_v11 = vadd.f32 %v4374_v18, %v2270_v22 }
 0x3a2   :  { %2336 = vst [vmem:[%s4518_s4 + $0x1f8] sm:$0xff] %v2271_v11 }

// kernel: gcn_forward.2
= control target key start
LH: loop header
LB: loop body
LE: loop exit
PB: predicated region body
PF: predicated region fallthrough
CT: control target
= control target key end

     0   :  { %s4737_s1 = inlined_call_operand.vmem [shape: bf16[512,128], index: 1, kind: input, shape index: {}]   ;;  %s4738_s0 = inlined_call_operand.vmem [shape: bf16[512,512], index: 0, kind: input, shape index: {}]   ;;  %s4739_s2 = inlined_call_operand.vmem [shape: f32[128,128], index: 2, kind: input, shape index: {}]   ;;  %s4740_s3 = inlined_call_operand.vmem [shape: f32[1,128], index: 3, kind: input, shape index: {}]   ;;  %s4741_s4 = inlined_call_operand.vmem [shape: bf16[512,128], index: 4, kind: output, shape index: {}]  }
   0x1   :  { %v3244_v0 = vld [vmem:[%s4737_s1 + $0x38] sm:$0xff]  ;;  %v3243_v1 = vld [vmem:[%s4737_s1 + $0x30] sm:$0xff]  ;;  %v3242_v2 = vld [vmem:[%s4737_s1 + $0x28] sm:$0xff] }
   0x2   :  { %3460 = vmatpush.bf16.msra.mxu1 %v3244_v0  ;;  %3461 = vmatpush.bf16.msra.mxu2 %v3244_v0  ;;  %v3241_v3 = vld [vmem:[%s4737_s1 + $0x20] sm:$0xff]  ;;  %v3240_v4 = vld [vmem:[%s4737_s1 + $0x18] sm:$0xff]  ;;  %v3239_v5 = vld [vmem:[%s4737_s1 + $0x10] sm:$0xff] }
   0x3   :  { %3462 = vmatpush.bf16.msra.mxu3 %v3244_v0  ;;  %1173 = vmatpush.bf16.msra.mxu0 %v3244_v0  ;;  %v3238_v6 = vld [vmem:[%s4737_s1 + $0x8] sm:$0xff]  ;;  %v3237_v7 = vld [vmem:[%s4737_s1] sm:$0xff]  ;;  %v3143_v9 = vld [vmem:[%s4738_s0 + $0x10c] sm:$0xf0] }
   0x4   :  { %v2599_v8 = vld [vmem:[%s4738_s0 + $0x100] sm:$0xf]  ;;  %v3175_v11 = vld [vmem:[%s4738_s0 + $0x20c] sm:$0xf0]  ;;  %v3260_v14 = vld [vmem:[%s4737_s1 + $0xb8] sm:$0xff] }
   0x5   :  { %v2727_v10 = vld [vmem:[%s4738_s0 + $0x200] sm:$0xf]  ;;  %v3207_v13 = vld [vmem:[%s4738_s0 + $0x30c] sm:$0xf0]  ;;  %v3268_v15 = vld [vmem:[%s4737_s1 + $0xf8] sm:$0xff]  ;;  %v2600_v17 = vor.u32 %v3143_v9, %v2599_v8 }
   0x6   :  { %3463 = vmatpush.bf16.msra.mxu1 %v3243_v1  ;;  %3464 = vmatpush.bf16.msra.mxu2 %v3243_v1  ;;  %v2855_v12 = vld [vmem:[%s4738_s0 + $0x300] sm:$0xf]  ;;  %v3252_v16 = vld [vmem:[%s4737_s1 + $0x78] sm:$0xff]  ;;  %v2728_v18 = vor.u32 %v3175_v11, %v2727_v10  ;;  %v3259_v20 = vld [vmem:[%s4737_s1 + $0xb0] sm:$0xff] }
   0x7   :  { %3465 = vmatpush.bf16.msra.mxu3 %v3243_v1  ;;  %1174 = vmatpush.bf16.msra.mxu0 %v3243_v1  ;;  %v2856_v19 = vor.u32 %v3207_v13, %v2855_v12  ;;  %v3267_v21 = vld [vmem:[%s4737_s1 + $0xf0] sm:$0xff]  ;;  %v3258_v23 = vld [vmem:[%s4737_s1 + $0xa8] sm:$0xff]  ;;  %v2615_v26 = vld [vmem:[%s4738_s0 + $0x120] sm:$0xf] }
   0x8   :  { %v3251_v22 = vld [vmem:[%s4737_s1 + $0x70] sm:$0xff]  ;;  %v3266_v24 = vld [vmem:[%s4737_s1 + $0xe8] sm:$0xff]  ;;  %v2743_v28 = vld [vmem:[%s4738_s0 + $0x220] sm:$0xf] }
   0x9   :  { %v3250_v25 = vld [vmem:[%s4737_s1 + $0x68] sm:$0xff]  ;;  %v3147_v27 = vld [vmem:[%s4738_s0 + $0x12c] sm:$0xf0]  ;;  %v2871_v30 = vld [vmem:[%s4738_s0 + $0x320] sm:$0xf] }
   0xa   :  { %3466 = vmatpush.bf16.msra.mxu1 %v3242_v2  ;;  %3467 = vmatpush.bf16.msra.mxu2 %v3242_v2  ;;  %v3179_v29 = vld [vmem:[%s4738_s0 + $0x22c] sm:$0xf0]  ;;  %v2616_v32 = vor.u32 %v3147_v27, %v2615_v26  ;;  %v3257_v35 = vld [vmem:[%s4737_s1 + $0xa0] sm:$0xff]  ;;  %v3256_v47 = vld [vmem:[%s4737_s1 + $0x98] sm:$0xff] }
   0xb   :  { %3468 = vmatpush.bf16.msra.mxu3 %v3242_v2  ;;  %1175 = vmatpush.bf16.msra.mxu0 %v3242_v2  ;;  %v3211_v31 = vld [vmem:[%s4738_s0 + $0x32c] sm:$0xf0]  ;;  %v2744_v33 = vor.u32 %v3179_v29, %v2743_v28  ;;  %v3265_v36 = vld [vmem:[%s4737_s1 + $0xe0] sm:$0xff]  ;;  %v3264_v48 = vld [vmem:[%s4737_s1 + $0xd8] sm:$0xff] }
   0xc   :  { %v2872_v34 = vor.u32 %v3211_v31, %v2871_v30  ;;  %v3249_v37 = vld [vmem:[%s4737_s1 + $0x60] sm:$0xff]  ;;  %v3151_v39 = vld [vmem:[%s4738_s0 + $0x14c] sm:$0xf0]  ;;  %v3248_v49 = vld [vmem:[%s4737_s1 + $0x58] sm:$0xff] }
   0xd   :  { %v2631_v38 = vld [vmem:[%s4738_s0 + $0x140] sm:$0xf]  ;;  %v3183_v41 = vld [vmem:[%s4738_s0 + $0x24c] sm:$0xf0]  ;;  %v3262_v8 = vld [vmem:[%s4737_s1 + $0xc8] sm:$0xff] }
   0xe   :  { %3469 = vmatpush.bf16.msra.mxu1 %v3241_v3  ;;  %3470 = vmatpush.bf16.msra.mxu2 %v3241_v3  ;;  %v2759_v40 = vld [vmem:[%s4738_s0 + $0x240] sm:$0xf]  ;;  %v3215_v43 = vld [vmem:[%s4738_s0 + $0x34c] sm:$0xf0]  ;;  %v2632_v44 = vor.u32 %v3151_v39, %v2631_v38  ;;  %v3246_v9 = vld [vmem:[%s4737_s1 + $0x48] sm:$0xff] }
   0xf   :  { %3471 = vmatpush.bf16.msra.mxu3 %v3241_v3  ;;  %1176 = vmatpush.bf16.msra.mxu0 %v3241_v3  ;;  %v2887_v42 = vld [vmem:[%s4738_s0 + $0x340] sm:$0xf]  ;;  %v2760_v45 = vor.u32 %v3183_v41, %v2759_v40  ;;  %v3155_v51 = vld [vmem:[%s4738_s0 + $0x16c] sm:$0xf0] }
  0x10   :  { %v2888_v46 = vor.u32 %v3215_v43, %v2887_v42  ;;  %v2647_v50 = vld [vmem:[%s4738_s0 + $0x160] sm:$0xf]  ;;  %v3187_v53 = vld [vmem:[%s4738_s0 + $0x26c] sm:$0xf0] }
  0x11   :  { %v2775_v52 = vld [vmem:[%s4738_s0 + $0x260] sm:$0xf]  ;;  %v3219_v55 = vld [vmem:[%s4738_s0 + $0x36c] sm:$0xf0]  ;;  %v2648_v56 = vor.u32 %v3155_v51, %v2647_v50  ;;  %v2473_v50 = vld [vmem:[%s4738_s0 + $0x10] sm:$0xf0] }
  0x12   :  { %3472 = vmatpush.bf16.msra.mxu1 %v3240_v4  ;;  %3473 = vmatpush.bf16.msra.mxu2 %v3240_v4  ;;  %v2903_v54 = vld [vmem:[%s4738_s0 + $0x360] sm:$0xf]  ;;  %v2776_v57 = vor.u32 %v3187_v53, %v2775_v52  ;;  %v3255_v59 = vld [vmem:[%s4737_s1 + $0x90] sm:$0xff]  ;;  %v2479_v51 = vld [vmem:[%s4738_s0 + $0x8] sm:$0xf] }
  0x13   :  { %3474 = vmatpush.bf16.msra.mxu3 %v3240_v4  ;;  %1177 = vmatpush.bf16.msra.mxu0 %v3240_v4  ;;  %v2904_v58 = vor.u32 %v3219_v55, %v2903_v54  ;;  %v3263_v60 = vld [vmem:[%s4737_s1 + $0xd0] sm:$0xff]  ;;  %v2663_v62 = vld [vmem:[%s4738_s0 + $0x180] sm:$0xf]  ;;  %v3112_v52 = vld [vmem:[%s4738_s0 + $0x14] sm:$0xf0] }
  0x14   :  { %v3247_v61 = vld [vmem:[%s4737_s1 + $0x50] sm:$0xff]  ;;  %v2791_v0 = vld [vmem:[%s4738_s0 + $0x280] sm:$0xf]  ;;  %v3110_v53 = vld [vmem:[%s4738_s0 + $0xc] sm:$0xf] }
  0x15   :  { %v3159_v63 = vld [vmem:[%s4738_s0 + $0x18c] sm:$0xf0]  ;;  %v2919_v2 = vld [vmem:[%s4738_s0 + $0x380] sm:$0xf]  ;;  %v2481_v54 = vld [vmem:[%s4738_s0 + $0x18] sm:$0xf0] }
  0x16   :  { %3475 = vmatpush.bf16.msra.mxu1 %v3239_v5  ;;  %3476 = vmatpush.bf16.msra.mxu2 %v3239_v5  ;;  %v3191_v1 = vld [vmem:[%s4738_s0 + $0x28c] sm:$0xf0]  ;;  %v2664_v4 = vor.u32 %v3159_v63, %v2663_v62  ;;  %v2679_v10 = vld [vmem:[%s4738_s0 + $0x1a0] sm:$0xf] }
  0x17   :  { %3477 = vmatpush.bf16.msra.mxu3 %v3239_v5  ;;  %1178 = vmatpush.bf16.msra.mxu0 %v3239_v5  ;;  %v3223_v3 = vld [vmem:[%s4738_s0 + $0x38c] sm:$0xf0]  ;;  %v2792_v5 = vor.u32 %v3191_v1, %v2791_v0  ;;  %v2807_v12 = vld [vmem:[%s4738_s0 + $0x2a0] sm:$0xf] }
  0x18   :  { %v3163_v11 = vld [vmem:[%s4738_s0 + $0x1ac] sm:$0xf0]  ;;  %v2823_v27 = vld [vmem:[%s4738_s0 + $0x2c0] sm:$0xf] }
  0x19   :  { %v3195_v13 = vld [vmem:[%s4738_s0 + $0x2ac] sm:$0xf0]  ;;  %v2951_v29 = vld [vmem:[%s4738_s0 + $0x3c0] sm:$0xf] }
  0x1a   :  { %3478 = vmatpush.bf16.msra.mxu1 %v3238_v6  ;;  %3479 = vmatpush.bf16.msra.mxu2 %v3238_v6  ;;  %v3167_v26 = vld [vmem:[%s4738_s0 + $0x1cc] sm:$0xf0]  ;;  %v2967_v39 = vld [vmem:[%s4738_s0 + $0x3e0] sm:$0xf] }
  0x1b   :  { %3480 = vmatpush.bf16.msra.mxu3 %v3238_v6  ;;  %1179 = vmatpush.bf16.msra.mxu0 %v3238_v6  ;;  %v2920_v6 = vor.u32 %v3223_v3, %v2919_v2  ;;  %v3199_v28 = vld [vmem:[%s4738_s0 + $0x2cc] sm:$0xf0]  ;;  %v2487_v41 = vld [vmem:[%s4738_s0 + $0x20] sm:$0xf]  ;;  %v2055_v2 = vld [vmem:[%s4739_s2 + $0x58] sm:$0xff] }
  0x1c   :  { %v3231_v30 = vld [vmem:[%s4738_s0 + $0x3cc] sm:$0xf0]  ;;  %v2503_v55 = vld [vmem:[%s4738_s0 + $0x40] sm:$0xf]  ;;  %v3113_v3 = vld [vmem:[%s4738_s0 + $0x24] sm:$0xf] }
  0x1d   :  { %v3203_v38 = vld [vmem:[%s4738_s0 + $0x2ec] sm:$0xf0]  ;;  %v2056_v62 = vld [vmem:[%s4739_s2 + $0x60] sm:$0xff] }
  0x1e   :  { %3481 = vmatpush.bf16.msra.mxu1 %v3237_v7  ;;  %3482 = vmatpush.bf16.msra.mxu2 %v3237_v7  ;;  %v3235_v40 = vld [vmem:[%s4738_s0 + $0x3ec] sm:$0xf0] }
  0x1f   :  { %3483 = vmatpush.bf16.msra.mxu3 %v3237_v7  ;;  %1180 = vmatpush.bf16.msra.mxu0 %v3237_v7  ;;  %v3254_v7 = vld [vmem:[%s4737_s1 + $0x88] sm:$0xff]  ;;  %v3115_v42 = vld [vmem:[%s4738_s0 + $0x2c] sm:$0xf0] }
  0x20   :  { %v2488_v43 = vor.u32 %v3115_v42, %v2487_v41  ;;  %v2051_v42 = vld [vmem:[%s4739_s2 + $0x38] sm:$0xff] }
  0x21   :  { %1221 = vmatmul.bf16.vlgmr.msra.gmra.mxu1 %v2600_v17  ;;  %1261 = vmatmul.bf16.vlgmr.msra.gmra.mxu2 %v2728_v18  ;;  %v2808_v17 = vor.u32 %v3195_v13, %v2807_v12 }
  0x22   :  { %1511 = vmatpush.bf16.msrb.mxu2 %v3260_v14  ;;  %1342 = vmatpush.bf16.msrb.mxu1 %v3252_v16  ;;  %v2935_v14 = vld [vmem:[%s4738_s0 + $0x3a0] sm:$0xf]  ;;  %v2680_v16 = vor.u32 %v3163_v11, %v2679_v10  ;;  %v3123_v10 = vld [vmem:[%s4738_s0 + $0x6c] sm:$0xf0] }
  0x23   :  { %1680 = vmatpush.bf16.msrb.mxu3 %v3268_v15  ;;  %v3227_v15 = vld [vmem:[%s4738_s0 + $0x3ac] sm:$0xf0] }
  0x24   :  { %1301 = vmatmul.bf16.vlgmr.msra.gmra.mxu3 %v2856_v19  ;;  %v2936_v18 = vor.u32 %v3227_v15, %v2935_v14  ;;  %v3253_v19 = vld [vmem:[%s4737_s1 + $0x80] sm:$0xff] }
  0x26   :  { %1512 = vmatpush.bf16.msrb.mxu2 %v3259_v20  ;;  %1343 = vmatpush.bf16.msrb.mxu1 %v3251_v22  ;;  %v3261_v20 = vld [vmem:[%s4737_s1 + $0xc0] sm:$0xff] }
  0x27   :  { %1681 = vmatpush.bf16.msrb.mxu3 %v3267_v21  ;;  %v3245_v21 = vld [vmem:[%s4737_s1 + $0x40] sm:$0xff] }
  0x28   :  { %v2471_v22 = vld [vmem:[%s4738_s0] sm:$0xf] }
  0x2a   :  { %1513 = vmatpush.bf16.msrb.mxu2 %v3258_v23  ;;  %1344 = vmatpush.bf16.msrb.mxu1 %v3250_v25  ;;  %v3111_v23 = vld [vmem:[%s4738_s0 + $0xc] sm:$0xf0]  ;;  %v2695_v25 = vld [vmem:[%s4738_s0 + $0x1c0] sm:$0xf] }
  0x2b   :  { %1682 = vmatpush.bf16.msrb.mxu3 %v3266_v24  ;;  %v2472_v24 = vor.u32 %v3111_v23, %v2471_v22  ;;  %v2696_v31 = vor.u32 %v3167_v26, %v2695_v25  ;;  %v2053_v22 = vld [vmem:[%s4739_s2 + $0x48] sm:$0xff]  ;;  %v3117_v23 = vld [vmem:[%s4738_s0 + $0x44] sm:$0xf]  ;;  %v3120_v26 = vld [vmem:[%s4738_s0 + $0x54] sm:$0xf0] }
  0x2c   :  { %v2511_v25 = vld [vmem:[%s4738_s0 + $0x48] sm:$0xf] }
  0x2d   :  { %1181 = vmatmul.bf16.vlgmr.msra.gmra.mxu0 %v2472_v24  ;;  %v2505_v24 = vld [vmem:[%s4738_s0 + $0x50] sm:$0xf0] }
  0x2e   :  { %1514 = vmatpush.bf16.msrb.mxu2 %v3257_v35  ;;  %1345 = vmatpush.bf16.msrb.mxu1 %v3249_v37  ;;  %v2711_v35 = vld [vmem:[%s4738_s0 + $0x1e0] sm:$0xf] }
  0x2f   :  { %1683 = vmatpush.bf16.msrb.mxu3 %v3265_v36  ;;  %v3171_v36 = vld [vmem:[%s4738_s0 + $0x1ec] sm:$0xf0]  ;;  %v2839_v37 = vld [vmem:[%s4738_s0 + $0x2e0] sm:$0xf] }
  0x31   :  { %1226 = vmatmul.bf16.gmra.mxu1 %v2616_v32  ;;  %1266 = vmatmul.bf16.gmra.mxu2 %v2744_v33  ;;  %v2824_v32 = vor.u32 %v3199_v28, %v2823_v27  ;;  %v2952_v33 = vor.u32 %v3231_v30, %v2951_v29  ;;  %v3118_v27 = vld [vmem:[%s4738_s0 + $0x4c] sm:$0xf]  ;;  %v2513_v28 = vld [vmem:[%s4738_s0 + $0x58] sm:$0xf0]  ;;  %v2535_v29 = vld [vmem:[%s4738_s0 + $0x80] sm:$0xf] }
  0x32   :  { %1515 = vmatpush.bf16.msrb.mxu2 %v3256_v47  ;;  %1346 = vmatpush.bf16.msrb.mxu1 %v3248_v49  ;;  %v2058_v47 = vld [vmem:[%s4739_s2 + $0x70] sm:$0xff]  ;;  %v3109_v49 = vld [vmem:[%s4738_s0 + $0x4] sm:$0xf] }
  0x33   :  { %1684 = vmatpush.bf16.msrb.mxu3 %v3264_v48  ;;  %v2057_v48 = vld [vmem:[%s4739_s2 + $0x68] sm:$0xff]  ;;  %v3127_v30 = vld [vmem:[%s4738_s0 + $0x8c] sm:$0xf0] }
  0x34   :  { %1306 = vmatmul.bf16.gmra.mxu3 %v2872_v34  ;;  %v2059_v34 = vld [vmem:[%s4739_s2 + $0x78] sm:$0xff] }
  0x35   :  { %2064 = vmatpush.msrb.mxu0 %v2059_v34  ;;  %v2508_v34 = vor.u32 %v3117_v23, %v2505_v24  ;;  %v2048_v24 = vld [vmem:[%s4739_s2 + $0x20] sm:$0xff] }
  0x36   :  { %1516 = vmatpush.bf16.msrb.mxu2 %v3255_v59  ;;  %1347 = vmatpush.bf16.msrb.mxu1 %v3247_v61  ;;  %v2480_v59 = vor.u32 %v3112_v52, %v2479_v51  ;;  %v2484_v61 = vor.u32 %v3110_v53, %v2481_v54 }
  0x37   :  { %1685 = vmatpush.bf16.msrb.mxu3 %v3263_v60  ;;  %2065 = vmatpush.msrb.mxu0 %v2058_v47  ;;  %v3122_v47 = vld [vmem:[%s4738_s0 + $0x6c] sm:$0xf] }
  0x39   :  { %2066 = vmatpush.msrb.mxu0 %v2057_v48  ;;  %v2529_v48 = vld [vmem:[%s4738_s0 + $0x78] sm:$0xf0] }
  0x3a   :  { %1517 = vmatpush.bf16.msrb.mxu2 %v3254_v7  ;;  %1348 = vmatpush.bf16.msrb.mxu1 %v3246_v9  ;;  %v3114_v7 = vld [vmem:[%s4738_s0 + $0x2c] sm:$0xf]  ;;  %v2519_v9 = vld [vmem:[%s4738_s0 + $0x60] sm:$0xf] }
  0x3b   :  { %1686 = vmatpush.bf16.msrb.mxu3 %v3262_v8  ;;  %2067 = vmatpush.msrb.mxu0 %v2056_v62  ;;  %v2497_v8 = vld [vmem:[%s4738_s0 + $0x38] sm:$0xf0]  ;;  %v2520_v12 = vor.u32 %v3123_v10, %v2519_v9  ;;  %v2567_v9 = vld [vmem:[%s4738_s0 + $0xc0] sm:$0xf]  ;;  %v3135_v10 = vld [vmem:[%s4738_s0 + $0xcc] sm:$0xf0] }
  0x3d   :  { %1186 = vmatmul.bf16.gmra.mxu0 %v2488_v43  ;;  %v3121_v43 = vld [vmem:[%s4738_s0 + $0x64] sm:$0xf] }
  0x3e   :  { %1518 = vmatpush.bf16.msrb.mxu2 %v3253_v19  ;;  %1349 = vmatpush.bf16.msrb.mxu1 %v3245_v21 }
  0x3f   :  { %1687 = vmatpush.bf16.msrb.mxu3 %v3261_v20  ;;  %2068 = vmatpush.msrb.mxu0 %v2055_v2  ;;  %v2049_v2 = vld [vmem:[%s4739_s2 + $0x28] sm:$0xff] }
  0x41   :  { %1231 = vmatmul.bf16.gmra.mxu1 %v2632_v44  ;;  %1271 = vmatmul.bf16.gmra.mxu2 %v2760_v45  ;;  %v2712_v44 = vor.u32 %v3171_v36, %v2711_v35  ;;  %v2840_v45 = vor.u32 %v3203_v38, %v2839_v37  ;;  %v2512_v35 = vor.u32 %v3120_v26, %v2511_v25  ;;  %v2052_v38 = vld [vmem:[%s4739_s2 + $0x40] sm:$0xff] }
  0x42   :  { %v2516_v37 = vor.u32 %v3118_v27, %v2513_v28  ;;  %v2047_v28 = vld [vmem:[%s4739_s2 + $0x18] sm:$0xff] }
  0x44   :  { %1311 = vmatmul.bf16.gmra.mxu3 %v2888_v46  ;;  %v2968_v46 = vor.u32 %v3235_v40, %v2967_v39 }
  0x51   :  { %1236 = vmatmul.bf16.gmra.mxu1 %v2648_v56  ;;  %1276 = vmatmul.bf16.gmra.mxu2 %v2776_v57  ;;  %v3119_v56 = vld [vmem:[%s4738_s0 + $0x4c] sm:$0xf0] }
  0x52   :  { %v2504_v57 = vor.u32 %v3119_v56, %v2503_v55 }
  0x54   :  { %1316 = vmatmul.bf16.gmra.mxu3 %v2904_v58  ;;  %v2476_v58 = vor.u32 %v3109_v49, %v2473_v50  ;;  %1191 = vmatmul.bf16.gmra.mxu0 %v2504_v57  ;;  %v2551_v49 = vld [vmem:[%s4738_s0 + $0xa0] sm:$0xf]  ;;  %v3131_v50 = vld [vmem:[%s4738_s0 + $0xac] sm:$0xf0]  ;;  %v2532_v57 = vor.u32 %v3122_v47, %v2529_v48 }
  0x55   :  { %v2552_v52 = vor.u32 %v3131_v50, %v2551_v49  ;;  %v2046_v50 = vld [vmem:[%s4739_s2 + $0x10] sm:$0xff] }
  0x61   :  { %1241 = vmatmul.bf16.gmra.mxu1 %v2664_v4  ;;  %1281 = vmatmul.bf16.gmra.mxu2 %v2792_v5  ;;  %v2489_v4 = vld [vmem:[%s4738_s0 + $0x30] sm:$0xf0]  ;;  %v2495_v5 = vld [vmem:[%s4738_s0 + $0x28] sm:$0xf] }
  0x62   :  { %v2492_v14 = vor.u32 %v3113_v3, %v2489_v4  ;;  %v3125_v3 = vld [vmem:[%s4738_s0 + $0x84] sm:$0xf]  ;;  %v2537_v4 = vld [vmem:[%s4738_s0 + $0x90] sm:$0xf0] }
  0x64   :  { %1321 = vmatmul.bf16.gmra.mxu3 %v2920_v6  ;;  %v3116_v6 = vld [vmem:[%s4738_s0 + $0x34] sm:$0xf0]  ;;  %1196 = vmatmul.bf16.gmra.mxu0 %v2520_v12 }
  0x65   :  { %v2496_v15 = vor.u32 %v3116_v6, %v2495_v5  ;;  %v2543_v5 = vld [vmem:[%s4738_s0 + $0x88] sm:$0xf]  ;;  %v3128_v6 = vld [vmem:[%s4738_s0 + $0x94] sm:$0xf0] }
  0x71   :  { %1246 = vmatmul.bf16.gmra.mxu1 %v2680_v16  ;;  %1286 = vmatmul.bf16.gmra.mxu2 %v2808_v17  ;;  %v2500_v17 = vor.u32 %v3114_v7, %v2497_v8  ;;  %v3126_v7 = vld [vmem:[%s4738_s0 + $0x8c] sm:$0xf]  ;;  %v2545_v8 = vld [vmem:[%s4738_s0 + $0x98] sm:$0xf0] }
  0x72   :  { %v2548_v23 = vor.u32 %v3126_v7, %v2545_v8 }
  0x74   :  { %1326 = vmatmul.bf16.gmra.mxu3 %v2936_v18  ;;  %v2054_v18 = vld [vmem:[%s4739_s2 + $0x50] sm:$0xff] }
  0x75   :  { %2069 = vmatpush.msrb.mxu0 %v2054_v18  ;;  %v2544_v18 = vor.u32 %v3128_v6, %v2543_v5  ;;  %v3134_v5 = vld [vmem:[%s4738_s0 + $0xcc] sm:$0xf]  ;;  %v2577_v6 = vld [vmem:[%s4738_s0 + $0xd8] sm:$0xf0] }
  0x77   :  { %2070 = vmatpush.msrb.mxu0 %v2053_v22 }
  0x79   :  { %2071 = vmatpush.msrb.mxu0 %v2052_v38  ;;  %v2583_v38 = vld [vmem:[%s4738_s0 + $0xe0] sm:$0xf] }
  0x7b   :  { %2072 = vmatpush.msrb.mxu0 %v2051_v42  ;;  %v3139_v42 = vld [vmem:[%s4738_s0 + $0xec] sm:$0xf0] }
  0x81   :  { %1251 = vmatmul.bf16.gmra.mxu1 %v2696_v31  ;;  %1291 = vmatmul.bf16.gmra.mxu2 %v2824_v32  ;;  %v2536_v32 = vor.u32 %v3127_v30, %v2535_v29  ;;  %v3129_v29 = vld [vmem:[%s4738_s0 + $0xa4] sm:$0xf]  ;;  %v2553_v30 = vld [vmem:[%s4738_s0 + $0xb0] sm:$0xf0] }
  0x83   :  { %1201 = vmatmul.bf16.gmra.mxu0 %v2536_v32  ;;  %v2559_v32 = vld [vmem:[%s4738_s0 + $0xa8] sm:$0xf] }
  0x84   :  { %1331 = vmatmul.bf16.gmra.mxu3 %v2952_v33 }
  0x91   :  { %1256 = vmatmul.bf16.gmra.mxu1 %v2712_v44  ;;  %1296 = vmatmul.bf16.gmra.mxu2 %v2840_v45  ;;  %v2521_v44 = vld [vmem:[%s4738_s0 + $0x70] sm:$0xf0]  ;;  %v2527_v45 = vld [vmem:[%s4738_s0 + $0x68] sm:$0xf] }
  0x92   :  { %v2524_v54 = vor.u32 %v3121_v43, %v2521_v44  ;;  %v2584_v44 = vor.u32 %v3139_v42, %v2583_v38  ;;  %v2593_v38 = vld [vmem:[%s4738_s0 + $0xf8] sm:$0xf0] }
  0x93   :  { %1206 = vmatmul.bf16.gmra.mxu0 %v2552_v52 }
  0x94   :  { %1336 = vmatmul.bf16.gmra.mxu3 %v2968_v46  ;;  %v3124_v46 = vld [vmem:[%s4738_s0 + $0x74] sm:$0xf0] }
  0x95   :  { %v2528_v55 = vor.u32 %v3124_v46, %v2527_v45  ;;  %v2556_v46 = vor.u32 %v3129_v29, %v2553_v30  ;;  %v3137_v30 = vld [vmem:[%s4738_s0 + $0xe4] sm:$0xf] }
  0x9e   :  { %v3796_v60 = vpop.f32.mrf.mxu1 }
  0xa1   :  { %1350 = vmatmul.bf16.vlgmr.msrb.gmra.mxu1 %v2476_v58  ;;  %1519 = vmatmul.bf16.vlgmr.msrb.gmra.mxu2 %v2480_v59  ;;  %v2050_v58 = vld [vmem:[%s4739_s2 + $0x30] sm:$0xff] }
  0xa2   :  { %2073 = vmatpush.msrb.mxu0 %v2050_v58  ;;  %v3133_v58 = vld [vmem:[%s4738_s0 + $0xc4] sm:$0xf] }
  0xa4   :  { %1688 = vmatmul.bf16.vlgmr.msrb.gmra.mxu3 %v2484_v61  ;;  %v3801_v63 = vpop.f32.mrf.mxu2  ;;  %2074 = vmatpush.msrb.mxu0 %v2049_v2  ;;  %v2569_v2 = vld [vmem:[%s4738_s0 + $0xd0] sm:$0xf0] }
  0xa6   :  { %v3805_v1 = vpop.f32.mrf.mxu1  ;;  %2075 = vmatpush.msrb.mxu0 %v2048_v24 }
  0xa7   :  { %v3803_v0 = vpop.f32.mrf.mxu3 }
  0xa8   :  { %2076 = vmatpush.msrb.mxu0 %v2047_v28 }
  0xaa   :  { %2077 = vmatpush.msrb.mxu0 %v2046_v50  ;;  %v1182_v24 = vpop.f32.mrf.mxu0 }
  0xac   :  { %v3834_v11 = vpop.f32.mrf.mxu2 }
  0xae   :  { %v3838_v16 = vpop.f32.mrf.mxu1 }
  0xaf   :  { %v3836_v13 = vpop.f32.mrf.mxu3 }
  0xb1   :  { %1355 = vmatmul.bf16.gmra.mxu1 %v2492_v14  ;;  %1524 = vmatmul.bf16.gmra.mxu2 %v2496_v15  ;;  %v2568_v14 = vor.u32 %v3135_v10, %v2567_v9  ;;  %v2572_v9 = vor.u32 %v3133_v58, %v2569_v2 }
  0xb3   :  { %1211 = vmatmul.bf16.gmra.mxu0 %v2568_v14 }
  0xb4   :  { %1693 = vmatmul.bf16.gmra.mxu3 %v2500_v17  ;;  %v3843_v19 = vpop.f32.mrf.mxu2  ;;  %v2540_v17 = vor.u32 %v3125_v3, %v2537_v4  ;;  %v2575_v3 = vld [vmem:[%s4738_s0 + $0xc8] sm:$0xf]  ;;  %v3136_v4 = vld [vmem:[%s4738_s0 + $0xd4] sm:$0xf0] }
  0xb5   :  { %v2576_v10 = vor.u32 %v3136_v4, %v2575_v3 }
  0xb6   :  { %v3847_v21 = vpop.f32.mrf.mxu1 }
  0xb7   :  { %v3845_v20 = vpop.f32.mrf.mxu3 }
  0xbc   :  { %v3876_v31 = vpop.f32.mrf.mxu2 }
  0xbe   :  { %v3880_v36 = vpop.f32.mrf.mxu1 }
  0xbf   :  { %v3878_v33 = vpop.f32.mrf.mxu3 }
  0xc1   :  { %1360 = vmatmul.bf16.gmra.mxu1 %v2508_v34  ;;  %1529 = vmatmul.bf16.gmra.mxu2 %v2512_v35  ;;  %v3132_v34 = vld [vmem:[%s4738_s0 + $0xb4] sm:$0xf0]  ;;  %v3130_v35 = vld [vmem:[%s4738_s0 + $0xac] sm:$0xf] }
  0xc2   :  { %v2560_v47 = vor.u32 %v3132_v34, %v2559_v32  ;;  %v2585_v32 = vld [vmem:[%s4738_s0 + $0xf0] sm:$0xf0]  ;;  %v2591_v34 = vld [vmem:[%s4738_s0 + $0xe8] sm:$0xf] }
  0xc3   :  { %1216 = vmatmul.bf16.gmra.mxu0 %v2584_v44 }
  0xc4   :  { %1698 = vmatmul.bf16.gmra.mxu3 %v2516_v37  ;;  %v3885_v39 = vpop.f32.mrf.mxu2  ;;  %v2561_v37 = vld [vmem:[%s4738_s0 + $0xb8] sm:$0xf0] }
  0xc5   :  { %v2564_v49 = vor.u32 %v3130_v35, %v2561_v37  ;;  %v3140_v35 = vld [vmem:[%s4738_s0 + $0xf4] sm:$0xf0]  ;;  %v3138_v37 = vld [vmem:[%s4738_s0 + $0xec] sm:$0xf] }
  0xc6   :  { %v3889_v41 = vpop.f32.mrf.mxu1  ;;  %v2596_v50 = vor.u32 %v3138_v37, %v2593_v38 }
  0xc7   :  { %v3887_v40 = vpop.f32.mrf.mxu3 }
  0xcc   :  { %v3918_v51 = vpop.f32.mrf.mxu2 }
  0xce   :  { %v3922_v56 = vpop.f32.mrf.mxu1 }
  0xcf   :  { %v3920_v53 = vpop.f32.mrf.mxu3 }
  0xd1   :  { %1365 = vmatmul.bf16.gmra.mxu1 %v2524_v54  ;;  %1534 = vmatmul.bf16.gmra.mxu2 %v2528_v55 }
  0xd4   :  { %1703 = vmatmul.bf16.gmra.mxu3 %v2532_v57  ;;  %v3927_v59 = vpop.f32.mrf.mxu2  ;;  %v2045_v57 = vld [vmem:[%s4739_s2 + $0x8] sm:$0xff] }
  0xd5   :  { %2078 = vmatpush.msrb.mxu0 %v2045_v57  ;;  %v1184_v57 = vpop.f32.mrf.mxu0 }
  0xd6   :  { %v3931_v62 = vpop.f32.mrf.mxu1 }
  0xd7   :  { %v3929_v61 = vpop.f32.mrf.mxu3 }
  0xdc   :  { %v3960_v12 = vpop.f32.mrf.mxu2 }
  0xdd   :  { %v1187_v4 = vpop.f32.mrf.mxu0 }
  0xde   :  { %v3964_v22 = vpop.f32.mrf.mxu1 }
  0xdf   :  { %v3962_v15 = vpop.f32.mrf.mxu3 }
  0xe0   :  { %4742 = vst [vmem:[#allocation3_spill] sm:$0xff] %v3962_v15 }
  0xe1   :  { %1370 = vmatmul.bf16.gmra.mxu1 %v2540_v17  ;;  %1539 = vmatmul.bf16.gmra.mxu2 %v2544_v18  ;;  %v2580_v17 = vor.u32 %v3134_v5, %v2577_v6  ;;  %v2044_v18 = vld [vmem:[%s4739_s2] sm:$0xff]  ;;  %v2601_v6 = vld [vmem:[%s4738_s0 + $0x110] sm:$0xf0] }
  0xe2   :  { %2079 = vmatpush.msrb.mxu0 %v2044_v18  ;;  %v3141_v5 = vld [vmem:[%s4738_s0 + $0x104] sm:$0xf]  ;;  %v2609_v18 = vld [vmem:[%s4738_s0 + $0x118] sm:$0xf0] }
  0xe4   :  { %1708 = vmatmul.bf16.gmra.mxu3 %v2548_v23  ;;  %v3969_v25 = vpop.f32.mrf.mxu2 }
  0xe6   :  { %v3973_v27 = vpop.f32.mrf.mxu1 }
  0xe7   :  { %v3971_v26 = vpop.f32.mrf.mxu3 }
  0xe8   :  { %4743 = vst [vmem:[#allocation4_spill] sm:$0xff] %v3971_v26 }
  0xec   :  { %v4002_v43 = vpop.f32.mrf.mxu2 }
  0xee   :  { %v4006_v48 = vpop.f32.mrf.mxu1 }
  0xef   :  { %v4004_v45 = vpop.f32.mrf.mxu3 }
  0xf0   :  { %4744 = vst [vmem:[#allocation5_spill] sm:$0xff] %v4004_v45 }
  0xf1   :  { %1375 = vmatmul.bf16.gmra.mxu1 %v2556_v46  ;;  %1544 = vmatmul.bf16.gmra.mxu2 %v2560_v47  ;;  %v2588_v46 = vor.u32 %v3137_v30, %v2585_v32  ;;  %v2592_v47 = vor.u32 %v3140_v35, %v2591_v34  ;;  %v2604_v34 = vor.u32 %v3141_v5, %v2601_v6  ;;  %v2617_v5 = vld [vmem:[%s4738_s0 + $0x130] sm:$0xf0]  ;;  %v3148_v6 = vld [vmem:[%s4738_s0 + $0x134] sm:$0xf0] }
  0xf4   :  { %1713 = vmatmul.bf16.gmra.mxu3 %v2564_v49  ;;  %v4011_v52 = vpop.f32.mrf.mxu2 }
  0xf6   :  { %v4015_v55 = vpop.f32.mrf.mxu1 }
  0xf7   :  { %v4013_v54 = vpop.f32.mrf.mxu3 }
  0xf8   :  { %4745 = vst [vmem:[#allocation6_spill] sm:$0xff] %v4013_v54  ;;  %v3145_v54 = vld [vmem:[%s4738_s0 + $0x124] sm:$0xf] }
  0xfc   :  { %v4038_v7 = vpop.f32.mrf.mxu2 }
  0xfe   :  { %v4042_v14 = vpop.f32.mrf.mxu1 }
  0xff   :  { %v4040_v8 = vpop.f32.mrf.mxu3 }
 0x100   :  { %4746 = vst [vmem:[#allocation7_spill] sm:$0xff] %v4040_v8 }
 0x101   :  { %1380 = vmatmul.bf16.gmra.mxu1 %v2572_v9  ;;  %1549 = vmatmul.bf16.gmra.mxu2 %v2576_v10  ;;  %v2607_v9 = vld [vmem:[%s4738_s0 + $0x108] sm:$0xf]  ;;  %v3144_v10 = vld [vmem:[%s4738_s0 + $0x114] sm:$0xf0] }
 0x102   :  { %v2608_v35 = vor.u32 %v3144_v10, %v2607_v9 }
 0x104   :  { %1718 = vmatmul.bf16.gmra.mxu3 %v2580_v17  ;;  %v4047_v23 = vpop.f32.mrf.mxu2  ;;  %v3142_v17 = vld [vmem:[%s4738_s0 + $0x10c] sm:$0xf] }
 0x105   :  { %v2612_v38 = vor.u32 %v3142_v17, %v2609_v18 }
 0x106   :  { %v4051_v29 = vpop.f32.mrf.mxu1 }
 0x107   :  { %v4049_v28 = vpop.f32.mrf.mxu3 }
 0x108   :  { %4747 = vst [vmem:[#allocation8_spill] sm:$0xff] %v4049_v28 }
 0x10c   :  { %v4071_v42 = vpop.f32.mrf.mxu2 }
 0x10e   :  { %v4075_v49 = vpop.f32.mrf.mxu1 }
 0x10f   :  { %v4073_v44 = vpop.f32.mrf.mxu3 }
 0x110   :  { %4748 = vst [vmem:[#allocation9_spill] sm:$0xff] %v4073_v44 }
 0x111   :  { %1385 = vmatmul.bf16.gmra.mxu1 %v2588_v46  ;;  %1554 = vmatmul.bf16.gmra.mxu2 %v2592_v47  ;;  %v1189_v47 = vpop.f32.mrf.mxu0 }
 0x114   :  { %1723 = vmatmul.bf16.gmra.mxu3 %v2596_v50  ;;  %v4077_v58 = vpop.f32.mrf.mxu2 }
 0x116   :  { %v4081_v3 = vpop.f32.mrf.mxu1 }
 0x117   :  { %v4079_v2 = vpop.f32.mrf.mxu3 }
 0x118   :  { %4749 = vst [vmem:[#allocation10_spill] sm:$0xff] %v4079_v2 }
 0x119   :  { %v1192_v10 = vpop.f32.mrf.mxu0 }
 0x11c   :  { %v4101_v30 = vpop.f32.mrf.mxu2 }
 0x11e   :  { %v1351_v37 = vpop.f32.mrf.mxu1 }
 0x11f   :  { %v4103_v32 = vpop.f32.mrf.mxu3  ;;  %v1352_v46 = vadd.f32 %v1351_v37, %v1182_v24  ;;  %v2623_v24 = vld [vmem:[%s4738_s0 + $0x128] sm:$0xf] }
 0x120   :  { %4750 = vst [vmem:[#allocation11_spill] sm:$0xff] %v4103_v32 }
 0x121   :  { %1390 = vmatmul.bf16.gmra.mxu1 %v2604_v34  ;;  %1559 = vmatmul.bf16.gmra.mxu2 %v2608_v35  ;;  %v2620_v34 = vor.u32 %v3145_v54, %v2617_v5  ;;  %v2624_v35 = vor.u32 %v3148_v6, %v2623_v24  ;;  %v1194_v26 = vpop.f32.mrf.mxu0  ;;  %v2633_v54 = vld [vmem:[%s4738_s0 + $0x150] sm:$0xf0]  ;;  %v3152_v5 = vld [vmem:[%s4738_s0 + $0x154] sm:$0xf0] }
 0x124   :  { %1728 = vmatmul.bf16.gmra.mxu3 %v2612_v38  ;;  %v1520_v50 = vpop.f32.mrf.mxu2 }
 0x125   :  { %v1521_v2 = vadd.f32 %v1520_v50, %v1352_v46 }
 0x126   :  { %v1353_v28 = vpop.f32.mrf.mxu1 }
 0x127   :  { %v1689_v44 = vpop.f32.mrf.mxu3  ;;  %v1354_v9 = vadd.f32 %v1353_v28, %v1184_v57 }
 0x128   :  { %v1690_v8 = vadd.f32 %v1689_v44, %v1521_v2  ;;  %v2625_v44 = vld [vmem:[%s4738_s0 + $0x138] sm:$0xf0] }
 0x12a   :  { %2080 = vmatmul.f32.vlgmr.msrb.gmra.mxu0 %v1690_v8  ;;  %v3146_v8 = vld [vmem:[%s4738_s0 + $0x12c] sm:$0xf] }
 0x12b   :  { %v2628_v38 = vor.u32 %v3146_v8, %v2625_v44 }
 0x12c   :  { %v1522_v2 = vpop.f32.mrf.mxu2 }
 0x12d   :  { %v1523_v17 = vadd.f32 %v1522_v2, %v1354_v9  ;;  %v3149_v9 = vld [vmem:[%s4738_s0 + $0x144] sm:$0xf] }
 0x12e   :  { %v1356_v37 = vpop.f32.mrf.mxu1  ;;  %v2636_v2 = vor.u32 %v3149_v9, %v2633_v54  ;;  %v2649_v9 = vld [vmem:[%s4738_s0 + $0x170] sm:$0xf0]  ;;  %v3156_v54 = vld [vmem:[%s4738_s0 + $0x174] sm:$0xf0] }
 0x12f   :  { %v1691_v18 = vpop.f32.mrf.mxu3  ;;  %v1357_v50 = vadd.f32 %v1356_v37, %v1187_v4  ;;  %v2639_v4 = vld [vmem:[%s4738_s0 + $0x148] sm:$0xf]  ;;  %v1197_v37 = vpop.f32.mrf.mxu0 }
 0x130   :  { %v1692_v46 = vadd.f32 %v1691_v18, %v1523_v17  ;;  %v2640_v17 = vor.u32 %v3152_v5, %v2639_v4 }
 0x131   :  { %1395 = vmatmul.bf16.gmra.mxu1 %v2620_v34  ;;  %1564 = vmatmul.bf16.gmra.mxu2 %v2624_v35 }
 0x132   :  { %2083 = vmatmul.f32.gmra.mxu0 %v1692_v46 }
 0x134   :  { %1733 = vmatmul.bf16.gmra.mxu3 %v2628_v38  ;;  %v1525_v28 = vpop.f32.mrf.mxu2 }
 0x135   :  { %v1526_v57 = vadd.f32 %v1525_v28, %v1357_v50 }
 0x136   :  { %v1358_v45 = vpop.f32.mrf.mxu1 }
 0x137   :  { %v1694_v32 = vpop.f32.mrf.mxu3  ;;  %v1359_v24 = vadd.f32 %v1358_v45, %v1189_v47  ;;  %v1199_v4 = vpop.f32.mrf.mxu0 }
 0x138   :  { %v1695_v15 = vadd.f32 %v1694_v32, %v1526_v57  ;;  %v3150_v32 = vld [vmem:[%s4738_s0 + $0x14c] sm:$0xf]  ;;  %v3153_v57 = vld [vmem:[%s4738_s0 + $0x164] sm:$0xf] }
 0x13a   :  { %2086 = vmatmul.f32.gmra.mxu0 %v1695_v15  ;;  %v2641_v15 = vld [vmem:[%s4738_s0 + $0x158] sm:$0xf0] }
 0x13b   :  { %v2644_v34 = vor.u32 %v3150_v32, %v2641_v15  ;;  %v2657_v32 = vld [vmem:[%s4738_s0 + $0x178] sm:$0xf0] }
 0x13c   :  { %v1527_v6 = vpop.f32.mrf.mxu2 }
 0x13d   :  { %v1528_v8 = vadd.f32 %v1527_v6, %v1359_v24  ;;  %v3154_v24 = vld [vmem:[%s4738_s0 + $0x16c] sm:$0xf] }
 0x13e   :  { %v1361_v18 = vpop.f32.mrf.mxu1 }
 0x13f   :  { %v1696_v44 = vpop.f32.mrf.mxu3  ;;  %v1362_v38 = vadd.f32 %v1361_v18, %v1192_v10  ;;  %v2655_v10 = vld [vmem:[%s4738_s0 + $0x168] sm:$0xf]  ;;  %v2660_v18 = vor.u32 %v3154_v24, %v2657_v32 }
 0x140   :  { %v1697_v35 = vadd.f32 %v1696_v44, %v1528_v8  ;;  %v2652_v44 = vor.u32 %v3153_v57, %v2649_v9  ;;  %v2665_v57 = vld [vmem:[%s4738_s0 + $0x190] sm:$0xf0]  ;;  %v3160_v9 = vld [vmem:[%s4738_s0 + $0x194] sm:$0xf0] }
 0x141   :  { %1400 = vmatmul.bf16.gmra.mxu1 %v2636_v2  ;;  %1569 = vmatmul.bf16.gmra.mxu2 %v2640_v17  ;;  %v2656_v2 = vor.u32 %v3156_v54, %v2655_v10  ;;  %v3158_v54 = vld [vmem:[%s4738_s0 + $0x18c] sm:$0xf] }
 0x142   :  { %2089 = vmatmul.f32.gmra.mxu0 %v1697_v35 }
 0x144   :  { %1738 = vmatmul.bf16.gmra.mxu3 %v2644_v34  ;;  %v1530_v45 = vpop.f32.mrf.mxu2 }
 0x145   :  { %v1531_v47 = vadd.f32 %v1530_v45, %v1362_v38  ;;  %v1202_v38 = vpop.f32.mrf.mxu0 }
 0x146   :  { %v1363_v50 = vpop.f32.mrf.mxu1 }
 0x147   :  { %v1699_v46 = vpop.f32.mrf.mxu3  ;;  %v1364_v5 = vadd.f32 %v1363_v50, %v1194_v26 }
 0x148   :  { %v1700_v28 = vadd.f32 %v1699_v46, %v1531_v47 }
 0x14a   :  { %2092 = vmatmul.f32.gmra.mxu0 %v1700_v28  ;;  %v3157_v28 = vld [vmem:[%s4738_s0 + $0x184] sm:$0xf] }
 0x14c   :  { %v1532_v15 = vpop.f32.mrf.mxu2 }
 0x14d   :  { %v1533_v6 = vadd.f32 %v1532_v15, %v1364_v5  ;;  %v2673_v5 = vld [vmem:[%s4738_s0 + $0x198] sm:$0xf0] }
 0x14e   :  { %v1366_v17 = vpop.f32.mrf.mxu1 }
 0x14f   :  { %v1701_v8 = vpop.f32.mrf.mxu3  ;;  %v1367_v35 = vadd.f32 %v1366_v17, %v1197_v37  ;;  %v2671_v37 = vld [vmem:[%s4738_s0 + $0x188] sm:$0xf]  ;;  %v1204_v17 = vpop.f32.mrf.mxu0 }
 0x150   :  { %v1702_v34 = vadd.f32 %v1701_v8, %v1533_v6  ;;  %v2668_v6 = vor.u32 %v3157_v28, %v2665_v57  ;;  %v2672_v8 = vor.u32 %v3160_v9, %v2671_v37  ;;  %v2681_v28 = vld [vmem:[%s4738_s0 + $0x1b0] sm:$0xf0]  ;;  %v3164_v57 = vld [vmem:[%s4738_s0 + $0x1b4] sm:$0xf0]  ;;  %v3162_v9 = vld [vmem:[%s4738_s0 + $0x1ac] sm:$0xf] }
 0x151   :  { %1405 = vmatmul.bf16.gmra.mxu1 %v2652_v44  ;;  %1574 = vmatmul.bf16.gmra.mxu2 %v2656_v2  ;;  %v2676_v2 = vor.u32 %v3158_v54, %v2673_v5 }
 0x152   :  { %2095 = vmatmul.f32.gmra.mxu0 %v1702_v34 }
 0x154   :  { %1743 = vmatmul.bf16.gmra.mxu3 %v2660_v18  ;;  %v1535_v26 = vpop.f32.mrf.mxu2 }
 0x155   :  { %v1536_v45 = vadd.f32 %v1535_v26, %v1367_v35 }
 0x156   :  { %v1368_v46 = vpop.f32.mrf.mxu1 }
 0x157   :  { %v1704_v47 = vpop.f32.mrf.mxu3  ;;  %v1369_v10 = vadd.f32 %v1368_v46, %v1199_v4  ;;  %v1207_v46 = vpop.f32.mrf.mxu0 }
 0x158   :  { %v1705_v50 = vadd.f32 %v1704_v47, %v1536_v45 }
 0x15a   :  { %2098 = vmatmul.f32.gmra.mxu0 %v1705_v50  ;;  %v3161_v50 = vld [vmem:[%s4738_s0 + $0x1a4] sm:$0xf] }
 0x15c   :  { %v1537_v24 = vpop.f32.mrf.mxu2 }
 0x15d   :  { %v1538_v32 = vadd.f32 %v1537_v24, %v1369_v10  ;;  %v2689_v10 = vld [vmem:[%s4738_s0 + $0x1b8] sm:$0xf0] }
 0x15e   :  { %v1371_v44 = vpop.f32.mrf.mxu1 }
 0x15f   :  { %v1706_v15 = vpop.f32.mrf.mxu3  ;;  %v1372_v34 = vadd.f32 %v1371_v44, %v1202_v38  ;;  %v2687_v38 = vld [vmem:[%s4738_s0 + $0x1a8] sm:$0xf] }
 0x160   :  { %v1707_v18 = vadd.f32 %v1706_v15, %v1538_v32  ;;  %v2684_v32 = vor.u32 %v3161_v50, %v2681_v28  ;;  %v2688_v15 = vor.u32 %v3164_v57, %v2687_v38  ;;  %v3168_v50 = vld [vmem:[%s4738_s0 + $0x1d4] sm:$0xf0]  ;;  %v3166_v38 = vld [vmem:[%s4738_s0 + $0x1cc] sm:$0xf]  ;;  %v2705_v57 = vld [vmem:[%s4738_s0 + $0x1d8] sm:$0xf0] }
 0x161   :  { %1410 = vmatmul.bf16.gmra.mxu1 %v2668_v6  ;;  %1579 = vmatmul.bf16.gmra.mxu2 %v2672_v8  ;;  %v2692_v8 = vor.u32 %v3162_v9, %v2689_v10 }
 0x162   :  { %2101 = vmatmul.f32.gmra.mxu0 %v1707_v18 }
 0x164   :  { %1748 = vmatmul.bf16.gmra.mxu3 %v2676_v2  ;;  %v1540_v4 = vpop.f32.mrf.mxu2 }
 0x165   :  { %v1541_v35 = vadd.f32 %v1540_v4, %v1372_v34 }
 0x166   :  { %v1373_v45 = vpop.f32.mrf.mxu1 }
 0x167   :  { %v1709_v26 = vpop.f32.mrf.mxu3  ;;  %v1374_v37 = vadd.f32 %v1373_v45, %v1204_v17  ;;  %v1209_v17 = vpop.f32.mrf.mxu0  ;;  %v3165_v45 = vld [vmem:[%s4738_s0 + $0x1c4] sm:$0xf] }
 0x168   :  { %v1710_v47 = vadd.f32 %v1709_v26, %v1541_v35 }
 0x16a   :  { %2104 = vmatmul.f32.gmra.mxu0 %v1710_v47  ;;  %v2697_v47 = vld [vmem:[%s4738_s0 + $0x1d0] sm:$0xf0] }
 0x16c   :  { %v1542_v54 = vpop.f32.mrf.mxu2 }
 0x16d   :  { %v1543_v5 = vadd.f32 %v1542_v54, %v1374_v37 }
 0x16e   :  { %v1376_v6 = vpop.f32.mrf.mxu1 }
 0x16f   :  { %v1711_v24 = vpop.f32.mrf.mxu3  ;;  %v1377_v2 = vadd.f32 %v1376_v6, %v1207_v46  ;;  %v2703_v46 = vld [vmem:[%s4738_s0 + $0x1c8] sm:$0xf]  ;;  %v1212_v37 = vpop.f32.mrf.mxu0 }
 0x170   :  { %v1712_v44 = vadd.f32 %v1711_v24, %v1543_v5  ;;  %v2700_v5 = vor.u32 %v3165_v45, %v2697_v47  ;;  %v2704_v24 = vor.u32 %v3168_v50, %v2703_v46  ;;  %v2719_v45 = vld [vmem:[%s4738_s0 + $0x1e8] sm:$0xf]  ;;  %v3172_v47 = vld [vmem:[%s4738_s0 + $0x1f4] sm:$0xf0]  ;;  %v3170_v50 = vld [vmem:[%s4738_s0 + $0x1ec] sm:$0xf] }
 0x171   :  { %1415 = vmatmul.bf16.gmra.mxu1 %v2684_v32  ;;  %1584 = vmatmul.bf16.gmra.mxu2 %v2688_v15  ;;  %v2708_v15 = vor.u32 %v3166_v38, %v2705_v57 }
 0x172   :  { %2107 = vmatmul.f32.gmra.mxu0 %v1712_v44 }
 0x174   :  { %1753 = vmatmul.bf16.gmra.mxu3 %v2692_v8  ;;  %v1545_v18 = vpop.f32.mrf.mxu2 }
 0x175   :  { %v1546_v34 = vadd.f32 %v1545_v18, %v1377_v2 }
 0x176   :  { %v1378_v35 = vpop.f32.mrf.mxu1 }
 0x177   :  { %v1714_v4 = vpop.f32.mrf.mxu3  ;;  %v1379_v28 = vadd.f32 %v1378_v35, %v1209_v17  ;;  %v1214_v18 = vpop.f32.mrf.mxu0  ;;  %v3169_v35 = vld [vmem:[%s4738_s0 + $0x1e4] sm:$0xf] }
 0x178   :  { %v1715_v26 = vadd.f32 %v1714_v4, %v1546_v34 }
 0x17a   :  { %2110 = vmatmul.f32.gmra.mxu0 %v1715_v26  ;;  %v2713_v26 = vld [vmem:[%s4738_s0 + $0x1f0] sm:$0xf0] }
 0x17c   :  { %v1547_v9 = vpop.f32.mrf.mxu2 }
 0x17d   :  { %v1548_v10 = vadd.f32 %v1547_v9, %v1379_v28  ;;  %v2721_v28 = vld [vmem:[%s4738_s0 + $0x1f8] sm:$0xf0]  ;;  %v2716_v9 = vor.u32 %v3169_v35, %v2713_v26  ;;  %v2735_v35 = vld [vmem:[%s4738_s0 + $0x208] sm:$0xf]  ;;  %v3176_v26 = vld [vmem:[%s4738_s0 + $0x214] sm:$0xf0] }
 0x17e   :  { %v1381_v32 = vpop.f32.mrf.mxu1 }
 0x17f   :  { %v1716_v54 = vpop.f32.mrf.mxu3  ;;  %v1382_v8 = vadd.f32 %v1381_v32, %v1212_v37  ;;  %v1217_v32 = vpop.f32.mrf.mxu0 }
 0x180   :  { %v1717_v6 = vadd.f32 %v1716_v54, %v1548_v10  ;;  %v2720_v10 = vor.u32 %v3172_v47, %v2719_v45  ;;  %v3174_v47 = vld [vmem:[%s4738_s0 + $0x20c] sm:$0xf] }
 0x181   :  { %1420 = vmatmul.bf16.gmra.mxu1 %v2700_v5  ;;  %1589 = vmatmul.bf16.gmra.mxu2 %v2704_v24  ;;  %v2724_v5 = vor.u32 %v3170_v50, %v2721_v28 }
 0x182   :  { %2113 = vmatmul.f32.gmra.mxu0 %v1717_v6 }
 0x184   :  { %1758 = vmatmul.bf16.gmra.mxu3 %v2708_v15  ;;  %v1550_v44 = vpop.f32.mrf.mxu2 }
 0x185   :  { %v1551_v2 = vadd.f32 %v1550_v44, %v1382_v8 }
 0x186   :  { %v1383_v34 = vpop.f32.mrf.mxu1 }
 0x187   :  { %v1719_v17 = vpop.f32.mrf.mxu3  ;;  %v1384_v46 = vadd.f32 %v1383_v34, %v1214_v18  ;;  %v3173_v18 = vld [vmem:[%s4738_s0 + $0x204] sm:$0xf]  ;;  %v1219_v34 = vpop.f32.mrf.mxu0 }
 0x188   :  { %v1720_v4 = vadd.f32 %v1719_v17, %v1551_v2 }
 0x18a   :  { %2116 = vmatmul.f32.gmra.mxu0 %v1720_v4  ;;  %v2729_v4 = vld [vmem:[%s4738_s0 + $0x210] sm:$0xf0] }
 0x18c   :  { %v1552_v38 = vpop.f32.mrf.mxu2 }
 0x18d   :  { %v1553_v57 = vadd.f32 %v1552_v38, %v1384_v46  ;;  %v2737_v46 = vld [vmem:[%s4738_s0 + $0x218] sm:$0xf0] }
 0x18e   :  { %v1386_v54 = vpop.f32.mrf.mxu1 }
 0x18f   :  { %v1721_v37 = vpop.f32.mrf.mxu3  ;;  %v1387_v15 = vadd.f32 %v1386_v54, %v1217_v32 }
 0x190   :  { %v1722_v24 = vadd.f32 %v1721_v37, %v1553_v57  ;;  %v2732_v57 = vor.u32 %v3173_v18, %v2729_v4  ;;  %v2736_v37 = vor.u32 %v3176_v26, %v2735_v35  ;;  %v2751_v18 = vld [vmem:[%s4738_s0 + $0x228] sm:$0xf]  ;;  %v3178_v35 = vld [vmem:[%s4738_s0 + $0x22c] sm:$0xf]  ;;  %v2753_v26 = vld [vmem:[%s4738_s0 + $0x238] sm:$0xf0] }
 0x191   :  { %1425 = vmatmul.bf16.gmra.mxu1 %v2716_v9  ;;  %1594 = vmatmul.bf16.gmra.mxu2 %v2720_v10  ;;  %v2740_v10 = vor.u32 %v3174_v47, %v2737_v46 }
 0x192   :  { %2119 = vmatmul.f32.gmra.mxu0 %v1722_v24 }
 0x194   :  { %1763 = vmatmul.bf16.gmra.mxu3 %v2724_v5  ;;  %v1555_v6 = vpop.f32.mrf.mxu2 }
 0x195   :  { %v1556_v8 = vadd.f32 %v1555_v6, %v1387_v15 }
 0x196   :  { %v1388_v2 = vpop.f32.mrf.mxu1 }
 0x197   :  { %v1724_v44 = vpop.f32.mrf.mxu3  ;;  %v1389_v45 = vadd.f32 %v1388_v2, %v1219_v34  ;;  %v4253_v2 = vld [vmem:[%s4740_s3] ss:$0 sm:$0xff]  ;;  %v3180_v34 = vld [vmem:[%s4738_s0 + $0x234] sm:$0xf0] }
 0x198   :  { %v1725_v17 = vadd.f32 %v1724_v44, %v1556_v8 }
 0x19a   :  { %2122 = vmatmul.f32.gmra.mxu0 %v1725_v17  ;;  %v3177_v17 = vld [vmem:[%s4738_s0 + $0x224] sm:$0xf] }
 0x19c   :  { %v1557_v50 = vpop.f32.mrf.mxu2 }
 0x19d   :  { %v1558_v28 = vadd.f32 %v1557_v50, %v1389_v45 }
 0x19e   :  { %v1391_v9 = vpop.f32.mrf.mxu1 }
 0x19f   :  { %v1726_v38 = vpop.f32.mrf.mxu3  ;;  %v1392_v5 = vadd.f32 %v1391_v9, %v3796_v60  ;;  %v2745_v60 = vld [vmem:[%s4738_s0 + $0x230] sm:$0xf0] }
 0x1a0   :  { %v1727_v54 = vadd.f32 %v1726_v38, %v1558_v28  ;;  %v2748_v50 = vor.u32 %v3177_v17, %v2745_v60  ;;  %v2752_v28 = vor.u32 %v3180_v34, %v2751_v18  ;;  %v3181_v18 = vld [vmem:[%s4738_s0 + $0x244] sm:$0xf]  ;;  %v2767_v34 = vld [vmem:[%s4738_s0 + $0x248] sm:$0xf] }
 0x1a1   :  { %1430 = vmatmul.bf16.gmra.mxu1 %v2732_v57  ;;  %1599 = vmatmul.bf16.gmra.mxu2 %v2736_v37  ;;  %v2756_v37 = vor.u32 %v3178_v35, %v2753_v26  ;;  %v3182_v26 = vld [vmem:[%s4738_s0 + $0x24c] sm:$0xf] }
 0x1a2   :  { %2125 = vmatmul.f32.gmra.mxu0 %v1727_v54 }
 0x1a4   :  { %1768 = vmatmul.bf16.gmra.mxu3 %v2740_v10  ;;  %v1560_v24 = vpop.f32.mrf.mxu2 }
 0x1a5   :  { %v1561_v32 = vadd.f32 %v1560_v24, %v1392_v5 }
 0x1a6   :  { %v1393_v6 = vpop.f32.mrf.mxu1 }
 0x1a7   :  { %v1729_v15 = vpop.f32.mrf.mxu3  ;;  %v2081_v8 = vpop.f32.mrf.mxu0  ;;  %v1394_v4 = vadd.f32 %v1393_v6, %v3805_v1 }
 0x1a8   :  { %v1730_v44 = vadd.f32 %v1729_v15, %v1561_v32  ;;  %v2082_v38 = vadd.f32 %v4253_v2, %v2081_v8 }
 0x1aa   :  { %2128 = vmatmul.f32.gmra.mxu0 %v1730_v44  ;;  %v2273_v54 = vmax.f32 %v2082_v38, 0.0 }
 0x1ac   :  { %v1562_v45 = vpop.f32.mrf.mxu2 }
 0x1ad   :  { %v1563_v47 = vadd.f32 %v1562_v45, %v1394_v4  ;;  %v3184_v4 = vld [vmem:[%s4738_s0 + $0x254] sm:$0xf0]  ;;  %v2769_v45 = vld [vmem:[%s4738_s0 + $0x258] sm:$0xf0] }
 0x1ae   :  { %v1396_v57 = vpop.f32.mrf.mxu1  ;;  %v2768_v38 = vor.u32 %v3184_v4, %v2767_v34  ;;  %v3188_v34 = vld [vmem:[%s4738_s0 + $0x274] sm:$0xf0] }
 0x1af   :  { %v1731_v46 = vpop.f32.mrf.mxu3  ;;  %v2084_v10 = vpop.f32.mrf.mxu0  ;;  %v1397_v24 = vadd.f32 %v1396_v57, %v3838_v16  ;;  %v2761_v16 = vld [vmem:[%s4738_s0 + $0x250] sm:$0xf0] }
 0x1b0   :  { %v1732_v9 = vadd.f32 %v1731_v46, %v1563_v47  ;;  %v2085_v1 = vadd.f32 %v4253_v2, %v2084_v10 }
 0x1b1   :  { %1435 = vmatmul.bf16.gmra.mxu1 %v2748_v50  ;;  %1604 = vmatmul.bf16.gmra.mxu2 %v2752_v28  ;;  %v2764_v28 = vor.u32 %v3181_v18, %v2761_v16  ;;  %v3185_v18 = vld [vmem:[%s4738_s0 + $0x264] sm:$0xf]  ;;  %v2783_v16 = vld [vmem:[%s4738_s0 + $0x268] sm:$0xf] }
 0x1b2   :  { %v2274_v5 = vmax.f32 %v2085_v1, 0.0  ;;  %2131 = vmatmul.f32.gmra.mxu0 %v1732_v9  ;;  %v2772_v9 = vor.u32 %v3182_v26, %v2769_v45  ;;  %v2785_v26 = vld [vmem:[%s4738_s0 + $0x278] sm:$0xf0] }
 0x1b4   :  { %1773 = vmatmul.bf16.gmra.mxu3 %v2756_v37  ;;  %v3272_v32 = vpack.c.bf16 %v2274_v5, %v2273_v54  ;;  %v1565_v15 = vpop.f32.mrf.mxu2 }
 0x1b5   :  { %v1566_v6 = vadd.f32 %v1565_v15, %v1397_v24 }
 0x1b6   :  { %3273 = vst [vmem:[%s4741_s4] sm:$0xff] %v3272_v32   ;;  %v1398_v8 = vpop.f32.mrf.mxu1 }
 0x1b7   :  { %v1734_v44 = vpop.f32.mrf.mxu3  ;;  %v2087_v60 = vpop.f32.mrf.mxu0  ;;  %v1399_v35 = vadd.f32 %v1398_v8, %v3847_v21 }
 0x1b8   :  { %v1735_v17 = vadd.f32 %v1734_v44, %v1566_v6  ;;  %v2088_v57 = vadd.f32 %v4253_v2, %v2087_v60 }
 0x1ba   :  { %2134 = vmatmul.f32.gmra.mxu0 %v1735_v17  ;;  %v2275_v54 = vmax.f32 %v2088_v57, 0.0 }
 0x1bc   :  { %v1567_v47 = vpop.f32.mrf.mxu2 }
 0x1bd   :  { %v1568_v46 = vadd.f32 %v1567_v47, %v1399_v35  ;;  %v3186_v35 = vld [vmem:[%s4738_s0 + $0x26c] sm:$0xf] }
 0x1be   :  { %v1401_v37 = vpop.f32.mrf.mxu1 }
 0x1bf   :  { %v1736_v50 = vpop.f32.mrf.mxu3  ;;  %v2090_v1 = vpop.f32.mrf.mxu0  ;;  %v1402_v24 = vadd.f32 %v1401_v37, %v3880_v36  ;;  %v2777_v36 = vld [vmem:[%s4738_s0 + $0x270] sm:$0xf0]  ;;  %v2788_v37 = vor.u32 %v3186_v35, %v2785_v26 }
 0x1c0   :  { %v1737_v10 = vadd.f32 %v1736_v50, %v1568_v46  ;;  %v2091_v21 = vadd.f32 %v4253_v2, %v2090_v1  ;;  %v2780_v50 = vor.u32 %v3185_v18, %v2777_v36  ;;  %v3192_v18 = vld [vmem:[%s4738_s0 + $0x294] sm:$0xf0] }
 0x1c1   :  { %1440 = vmatmul.bf16.gmra.mxu1 %v2764_v28  ;;  %1609 = vmatmul.bf16.gmra.mxu2 %v2768_v38  ;;  %v2784_v28 = vor.u32 %v3188_v34, %v2783_v16  ;;  %v3190_v16 = vld [vmem:[%s4738_s0 + $0x28c] sm:$0xf]  ;;  %v2801_v34 = vld [vmem:[%s4738_s0 + $0x298] sm:$0xf0] }
 0x1c2   :  { %v2276_v5 = vmax.f32 %v2091_v21, 0.0  ;;  %2137 = vmatmul.f32.gmra.mxu0 %v1737_v10 }
 0x1c4   :  { %1778 = vmatmul.bf16.gmra.mxu3 %v2772_v9  ;;  %v3277_v32 = vpack.c.bf16 %v2276_v5, %v2275_v54  ;;  %v1570_v15 = vpop.f32.mrf.mxu2 }
 0x1c5   :  { %v1571_v6 = vadd.f32 %v1570_v15, %v1402_v24 }
 0x1c6   :  { %3429 = vst [vmem:[%s4741_s4 + $0x8] sm:$0xff] %v3277_v32   ;;  %v1403_v8 = vpop.f32.mrf.mxu1 }
 0x1c7   :  { %v1739_v44 = vpop.f32.mrf.mxu3  ;;  %v2093_v60 = vpop.f32.mrf.mxu0  ;;  %v1404_v4 = vadd.f32 %v1403_v8, %v3889_v41 }
 0x1c8   :  { %v1740_v17 = vadd.f32 %v1739_v44, %v1571_v6  ;;  %v2094_v38 = vadd.f32 %v4253_v2, %v2093_v60  ;;  %v2799_v60 = vld [vmem:[%s4738_s0 + $0x288] sm:$0xf] }
 0x1ca   :  { %2140 = vmatmul.f32.gmra.mxu0 %v1740_v17  ;;  %v2277_v1 = vmax.f32 %v2094_v38, 0.0  ;;  %v3189_v17 = vld [vmem:[%s4738_s0 + $0x284] sm:$0xf] }
 0x1cc   :  { %v1572_v45 = vpop.f32.mrf.mxu2 }
 0x1cd   :  { %v1573_v47 = vadd.f32 %v1572_v45, %v1404_v4 }
 0x1ce   :  { %v1406_v57 = vpop.f32.mrf.mxu1 }
 0x1cf   :  { %v1741_v46 = vpop.f32.mrf.mxu3  ;;  %v2096_v10 = vpop.f32.mrf.mxu0  ;;  %v1407_v54 = vadd.f32 %v1406_v57, %v3922_v56  ;;  %v2793_v56 = vld [vmem:[%s4738_s0 + $0x290] sm:$0xf0] }
 0x1d0   :  { %v1742_v9 = vadd.f32 %v1741_v46, %v1573_v47  ;;  %v2097_v41 = vadd.f32 %v4253_v2, %v2096_v10  ;;  %v2796_v45 = vor.u32 %v3189_v17, %v2793_v56  ;;  %v2800_v47 = vor.u32 %v3192_v18, %v2799_v60  ;;  %v3194_v17 = vld [vmem:[%s4738_s0 + $0x2ac] sm:$0xf]  ;;  %v2817_v56 = vld [vmem:[%s4738_s0 + $0x2b8] sm:$0xf0] }
 0x1d1   :  { %1445 = vmatmul.bf16.gmra.mxu1 %v2780_v50  ;;  %1614 = vmatmul.bf16.gmra.mxu2 %v2784_v28  ;;  %v2804_v28 = vor.u32 %v3190_v16, %v2801_v34 }
 0x1d2   :  { %v2278_v21 = vmax.f32 %v2097_v41, 0.0  ;;  %2143 = vmatmul.f32.gmra.mxu0 %v1742_v9 }
 0x1d4   :  { %1783 = vmatmul.bf16.gmra.mxu3 %v2788_v37  ;;  %v3282_v5 = vpack.c.bf16 %v2278_v21, %v2277_v1  ;;  %v1575_v24 = vpop.f32.mrf.mxu2 }
 0x1d5   :  { %v1576_v32 = vadd.f32 %v1575_v24, %v1407_v54 }
 0x1d6   :  { %3430 = vst [vmem:[%s4741_s4 + $0x10] sm:$0xff] %v3282_v5   ;;  %v1408_v6 = vpop.f32.mrf.mxu1 }
 0x1d7   :  { %v1744_v15 = vpop.f32.mrf.mxu3  ;;  %v2099_v8 = vpop.f32.mrf.mxu0  ;;  %v1409_v36 = vadd.f32 %v1408_v6, %v3931_v62  ;;  %v2815_v6 = vld [vmem:[%s4738_s0 + $0x2a8] sm:$0xf] }
 0x1d8   :  { %v1745_v44 = vadd.f32 %v1744_v15, %v1576_v32  ;;  %v2100_v46 = vadd.f32 %v4253_v2, %v2099_v8  ;;  %v3193_v15 = vld [vmem:[%s4738_s0 + $0x2a4] sm:$0xf] }
 0x1da   :  { %2146 = vmatmul.f32.gmra.mxu0 %v1745_v44  ;;  %v2279_v37 = vmax.f32 %v2100_v46, 0.0  ;;  %v3196_v44 = vld [vmem:[%s4738_s0 + $0x2b4] sm:$0xf0] }
 0x1db   :  { %v2816_v34 = vor.u32 %v3196_v44, %v2815_v6 }
 0x1dc   :  { %v1577_v4 = vpop.f32.mrf.mxu2 }
 0x1dd   :  { %v1578_v35 = vadd.f32 %v1577_v4, %v1409_v36 }
 0x1de   :  { %v1411_v50 = vpop.f32.mrf.mxu1 }
 0x1df   :  { %v1746_v26 = vpop.f32.mrf.mxu3  ;;  %v2102_v57 = vpop.f32.mrf.mxu0  ;;  %v1412_v10 = vadd.f32 %v1411_v50, %v3964_v22  ;;  %v2809_v22 = vld [vmem:[%s4738_s0 + $0x2b0] sm:$0xf0] }
 0x1e0   :  { %v1747_v38 = vadd.f32 %v1746_v26, %v1578_v35  ;;  %v2103_v62 = vadd.f32 %v4253_v2, %v2102_v57  ;;  %v2812_v16 = vor.u32 %v3193_v15, %v2809_v22  ;;  %v2820_v26 = vor.u32 %v3194_v17, %v2817_v56 }
 0x1e1   :  { %1450 = vmatmul.bf16.gmra.mxu1 %v2796_v45  ;;  %1619 = vmatmul.bf16.gmra.mxu2 %v2800_v47 }
 0x1e2   :  { %v2280_v9 = vmax.f32 %v2103_v62, 0.0  ;;  %2149 = vmatmul.f32.gmra.mxu0 %v1747_v38 }
 0x1e4   :  { %1788 = vmatmul.bf16.gmra.mxu3 %v2804_v28  ;;  %v3287_v41 = vpack.c.bf16 %v2280_v9, %v2279_v37  ;;  %v1580_v1 = vpop.f32.mrf.mxu2 }
 0x1e5   :  { %v1581_v21 = vadd.f32 %v1580_v1, %v1412_v10  ;;  %v3197_v1 = vld [vmem:[%s4738_s0 + $0x2c4] sm:$0xf] }
 0x1e6   :  { %3431 = vst [vmem:[%s4741_s4 + $0x18] sm:$0xff] %v3287_v41   ;;  %v1413_v5 = vpop.f32.mrf.mxu1 }
 0x1e7   :  { %v1749_v54 = vpop.f32.mrf.mxu3  ;;  %v2105_v32 = vpop.f32.mrf.mxu0  ;;  %v1414_v8 = vadd.f32 %v1413_v5, %v3973_v27 }
 0x1e8   :  { %v1750_v24 = vadd.f32 %v1749_v54, %v1581_v21  ;;  %v2106_v4 = vadd.f32 %v4253_v2, %v2105_v32  ;;  %v2831_v21 = vld [vmem:[%s4738_s0 + $0x2c8] sm:$0xf]  ;;  %v3200_v54 = vld [vmem:[%s4738_s0 + $0x2d4] sm:$0xf0]  ;;  %v2833_v32 = vld [vmem:[%s4738_s0 + $0x2d8] sm:$0xf0] }
 0x1ea   :  { %2152 = vmatmul.f32.gmra.mxu0 %v1750_v24  ;;  %v2281_v46 = vmax.f32 %v2106_v4, 0.0  ;;  %v3198_v24 = vld [vmem:[%s4738_s0 + $0x2cc] sm:$0xf] }
 0x1ec   :  { %v1582_v60 = vpop.f32.mrf.mxu2 }
 0x1ed   :  { %v1583_v18 = vadd.f32 %v1582_v60, %v1414_v8  ;;  %v2832_v8 = vor.u32 %v3200_v54, %v2831_v21  ;;  %v2836_v60 = vor.u32 %v3198_v24, %v2833_v32 }
 0x1ee   :  { %v1416_v35 = vpop.f32.mrf.mxu1 }
 0x1ef   :  { %v1751_v36 = vpop.f32.mrf.mxu3  ;;  %v2108_v47 = vpop.f32.mrf.mxu0  ;;  %v1417_v28 = vadd.f32 %v1416_v35, %v4006_v48  ;;  %v2825_v48 = vld [vmem:[%s4738_s0 + $0x2d0] sm:$0xf0] }
 0x1f0   :  { %v1752_v45 = vadd.f32 %v1751_v36, %v1583_v18  ;;  %v2109_v27 = vadd.f32 %v4253_v2, %v2108_v47  ;;  %v2828_v44 = vor.u32 %v3197_v1, %v2825_v48 }
 0x1f1   :  { %1455 = vmatmul.bf16.gmra.mxu1 %v2812_v16  ;;  %1624 = vmatmul.bf16.gmra.mxu2 %v2816_v34 }
 0x1f2   :  { %v2282_v50 = vmax.f32 %v2109_v27, 0.0  ;;  %2155 = vmatmul.f32.gmra.mxu0 %v1752_v45 }
 0x1f4   :  { %1793 = vmatmul.bf16.gmra.mxu3 %v2820_v26  ;;  %v3292_v38 = vpack.c.bf16 %v2282_v50, %v2281_v46  ;;  %v1585_v57 = vpop.f32.mrf.mxu2 }
 0x1f5   :  { %v1586_v62 = vadd.f32 %v1585_v57, %v1417_v28  ;;  %v3201_v28 = vld [vmem:[%s4738_s0 + $0x2e4] sm:$0xf]  ;;  %v3204_v57 = vld [vmem:[%s4738_s0 + $0x2f4] sm:$0xf0] }
 0x1f6   :  { %3432 = vst [vmem:[%s4741_s4 + $0x20] sm:$0xff] %v3292_v38   ;;  %v1418_v9 = vpop.f32.mrf.mxu1  ;;  %v2847_v38 = vld [vmem:[%s4738_s0 + $0x2e8] sm:$0xf] }
 0x1f7   :  { %v1754_v37 = vpop.f32.mrf.mxu3  ;;  %v2111_v41 = vpop.f32.mrf.mxu0  ;;  %v1419_v5 = vadd.f32 %v1418_v9, %v4015_v55  ;;  %v2849_v9 = vld [vmem:[%s4738_s0 + $0x2f8] sm:$0xf0]  ;;  %v2848_v21 = vor.u32 %v3204_v57, %v2847_v38 }
 0x1f8   :  { %v1755_v10 = vadd.f32 %v1754_v37, %v1586_v62  ;;  %v2112_v17 = vadd.f32 %v4253_v2, %v2111_v41  ;;  %v3202_v37 = vld [vmem:[%s4738_s0 + $0x2ec] sm:$0xf] }
 0x1f9   :  { %v2852_v24 = vor.u32 %v3202_v37, %v2849_v9 }
 0x1fa   :  { %2158 = vmatmul.f32.gmra.mxu0 %v1755_v10  ;;  %v2283_v16 = vmax.f32 %v2112_v17, 0.0 }
 0x1fc   :  { %v1587_v15 = vpop.f32.mrf.mxu2 }
 0x1fd   :  { %v1588_v22 = vadd.f32 %v1587_v15, %v1419_v5 }
 0x1fe   :  { %v1421_v56 = vpop.f32.mrf.mxu1 }
 0x1ff   :  { %v1756_v6 = vpop.f32.mrf.mxu3  ;;  %v2114_v36 = vpop.f32.mrf.mxu0  ;;  %v1422_v4 = vadd.f32 %v1421_v56, %v4042_v14  ;;  %v2841_v14 = vld [vmem:[%s4738_s0 + $0x2f0] sm:$0xf0] }
 0x200   :  { %v1757_v18 = vadd.f32 %v1756_v6, %v1588_v22  ;;  %v2115_v55 = vadd.f32 %v4253_v2, %v2114_v36  ;;  %v2844_v48 = vor.u32 %v3201_v28, %v2841_v14 }
 0x201   :  { %1460 = vmatmul.bf16.gmra.mxu1 %v2828_v44  ;;  %1629 = vmatmul.bf16.gmra.mxu2 %v2832_v8 }
 0x202   :  { %v2284_v34 = vmax.f32 %v2115_v55, 0.0  ;;  %2161 = vmatmul.f32.gmra.mxu0 %v1757_v18 }
 0x204   :  { %1798 = vmatmul.bf16.gmra.mxu3 %v2836_v60  ;;  %v3297_v35 = vpack.c.bf16 %v2284_v34, %v2283_v16  ;;  %v1590_v26 = vpop.f32.mrf.mxu2  ;;  %v3205_v16 = vld [vmem:[%s4738_s0 + $0x304] sm:$0xf]  ;;  %v2863_v34 = vld [vmem:[%s4738_s0 + $0x308] sm:$0xf] }
 0x205   :  { %v1591_v45 = vadd.f32 %v1590_v26, %v1422_v4  ;;  %v3208_v4 = vld [vmem:[%s4738_s0 + $0x314] sm:$0xf0]  ;;  %v3206_v26 = vld [vmem:[%s4738_s0 + $0x30c] sm:$0xf] }
 0x206   :  { %3433 = vst [vmem:[%s4741_s4 + $0x28] sm:$0xff] %v3297_v35   ;;  %v1423_v27 = vpop.f32.mrf.mxu1  ;;  %v2864_v28 = vor.u32 %v3208_v4, %v2863_v34 }
 0x207   :  { %v1759_v47 = vpop.f32.mrf.mxu3  ;;  %v2117_v50 = vpop.f32.mrf.mxu0  ;;  %v1424_v62 = vadd.f32 %v1423_v27, %v4051_v29 }
 0x208   :  { %v1760_v46 = vadd.f32 %v1759_v47, %v1591_v45  ;;  %v2118_v54 = vadd.f32 %v4253_v2, %v2117_v50  ;;  %v2865_v45 = vld [vmem:[%s4738_s0 + $0x318] sm:$0xf0] }
 0x209   :  { %v2868_v57 = vor.u32 %v3206_v26, %v2865_v45 }
 0x20a   :  { %2164 = vmatmul.f32.gmra.mxu0 %v1760_v46  ;;  %v2285_v22 = vmax.f32 %v2118_v54, 0.0 }
 0x20c   :  { %v1592_v10 = vpop.f32.mrf.mxu2 }
 0x20d   :  { %v1593_v41 = vadd.f32 %v1592_v10, %v1424_v62 }
 0x20e   :  { %v1426_v5 = vpop.f32.mrf.mxu1 }
 0x20f   :  { %v1761_v1 = vpop.f32.mrf.mxu3  ;;  %v2120_v15 = vpop.f32.mrf.mxu0  ;;  %v1427_v44 = vadd.f32 %v1426_v5, %v4075_v49  ;;  %v2857_v49 = vld [vmem:[%s4738_s0 + $0x310] sm:$0xf0] }
 0x210   :  { %v1762_v32 = vadd.f32 %v1761_v1, %v1593_v41  ;;  %v2121_v29 = vadd.f32 %v4253_v2, %v2120_v15  ;;  %v2860_v50 = vor.u32 %v3205_v16, %v2857_v49  ;;  %v3209_v15 = vld [vmem:[%s4738_s0 + $0x324] sm:$0xf] }
 0x211   :  { %1465 = vmatmul.bf16.gmra.mxu1 %v2844_v48  ;;  %1634 = vmatmul.bf16.gmra.mxu2 %v2848_v21 }
 0x212   :  { %v2286_v6 = vmax.f32 %v2121_v29, 0.0  ;;  %2167 = vmatmul.f32.gmra.mxu0 %v1762_v32  ;;  %v2879_v29 = vld [vmem:[%s4738_s0 + $0x328] sm:$0xf] }
 0x214   :  { %1803 = vmatmul.bf16.gmra.mxu3 %v2852_v24  ;;  %v3302_v8 = vpack.c.bf16 %v2286_v6, %v2285_v22  ;;  %v1595_v17 = vpop.f32.mrf.mxu2  ;;  %v3212_v22 = vld [vmem:[%s4738_s0 + $0x334] sm:$0xf0] }
 0x215   :  { %v1596_v56 = vadd.f32 %v1595_v17, %v1427_v44  ;;  %v3210_v44 = vld [vmem:[%s4738_s0 + $0x32c] sm:$0xf] }
 0x216   :  { %3434 = vst [vmem:[%s4741_s4 + $0x30] sm:$0xff] %v3302_v8   ;;  %v1428_v18 = vpop.f32.mrf.mxu1  ;;  %v2881_v8 = vld [vmem:[%s4738_s0 + $0x338] sm:$0xf0] }
 0x217   :  { %v1764_v60 = vpop.f32.mrf.mxu3  ;;  %v2123_v55 = vpop.f32.mrf.mxu0  ;;  %v1429_v35 = vadd.f32 %v1428_v18, %v4081_v3  ;;  %v2884_v49 = vor.u32 %v3210_v44, %v2881_v8 }
 0x218   :  { %v1765_v36 = vadd.f32 %v1764_v60, %v1596_v56  ;;  %v2124_v14 = vadd.f32 %v4253_v2, %v2123_v55 }
 0x21a   :  { %2170 = vmatmul.f32.gmra.mxu0 %v1765_v36  ;;  %v2287_v9 = vmax.f32 %v2124_v14, 0.0  ;;  %v2880_v36 = vor.u32 %v3212_v22, %v2879_v29 }
 0x21c   :  { %v1597_v47 = vpop.f32.mrf.mxu2 }
 0x21d   :  { %v1598_v27 = vadd.f32 %v1597_v47, %v1429_v35 }
 0x21e   :  { %v1431_v38 = vpop.f32.mrf.mxu1 }
 0x21f   :  { %v1766_v46 = vpop.f32.mrf.mxu3  ;;  %v2126_v37 = vpop.f32.mrf.mxu0  ;;  %v1432_v41 = vadd.f32 %v1431_v38, %v3801_v63  ;;  %v2873_v63 = vld [vmem:[%s4738_s0 + $0x330] sm:$0xf0] }
 0x220   :  { %v1767_v62 = vadd.f32 %v1766_v46, %v1598_v27  ;;  %v2127_v3 = vadd.f32 %v4253_v2, %v2126_v37  ;;  %v2876_v18 = vor.u32 %v3209_v15, %v2873_v63  ;;  %v3216_v37 = vld [vmem:[%s4738_s0 + $0x354] sm:$0xf0] }
 0x221   :  { %1470 = vmatmul.bf16.gmra.mxu1 %v2860_v50  ;;  %1639 = vmatmul.bf16.gmra.mxu2 %v2864_v28 }
 0x222   :  { %v2288_v10 = vmax.f32 %v2127_v3, 0.0  ;;  %2173 = vmatmul.f32.gmra.mxu0 %v1767_v62  ;;  %v2895_v62 = vld [vmem:[%s4738_s0 + $0x348] sm:$0xf] }
 0x224   :  { %1808 = vmatmul.bf16.gmra.mxu3 %v2868_v57  ;;  %v3307_v1 = vpack.c.bf16 %v2288_v10, %v2287_v9  ;;  %v1600_v48 = vpop.f32.mrf.mxu2  ;;  %v3213_v57 = vld [vmem:[%s4738_s0 + $0x344] sm:$0xf]  ;;  %v3214_v9 = vld [vmem:[%s4738_s0 + $0x34c] sm:$0xf]  ;;  %v2897_v10 = vld [vmem:[%s4738_s0 + $0x358] sm:$0xf0] }
 0x225   :  { %v1601_v21 = vadd.f32 %v1600_v48, %v1432_v41 }
 0x226   :  { %3435 = vst [vmem:[%s4741_s4 + $0x38] sm:$0xff] %v3307_v1   ;;  %v1433_v5 = vpop.f32.mrf.mxu1 }
 0x227   :  { %v1769_v54 = vpop.f32.mrf.mxu3  ;;  %v2129_v32 = vpop.f32.mrf.mxu0  ;;  %v1434_v6 = vadd.f32 %v1433_v5, %v3834_v11 }
 0x228   :  { %v1770_v24 = vadd.f32 %v1769_v54, %v1601_v21  ;;  %v2130_v55 = vadd.f32 %v4253_v2, %v2129_v32  ;;  %v2896_v54 = vor.u32 %v3216_v37, %v2895_v62  ;;  %v2900_v32 = vor.u32 %v3214_v9, %v2897_v10 }
 0x22a   :  { %2176 = vmatmul.f32.gmra.mxu0 %v1770_v24  ;;  %v2289_v35 = vmax.f32 %v2130_v55, 0.0  ;;  %v3217_v55 = vld [vmem:[%s4738_s0 + $0x364] sm:$0xf] }
 0x22c   :  { %v1602_v17 = vpop.f32.mrf.mxu2 }
 0x22d   :  { %v1603_v56 = vadd.f32 %v1602_v17, %v1434_v6 }
 0x22e   :  { %v1436_v16 = vpop.f32.mrf.mxu1 }
 0x22f   :  { %v1771_v60 = vpop.f32.mrf.mxu3  ;;  %v2132_v4 = vpop.f32.mrf.mxu0  ;;  %v1437_v45 = vadd.f32 %v1436_v16, %v3843_v19  ;;  %v2889_v19 = vld [vmem:[%s4738_s0 + $0x350] sm:$0xf0]  ;;  %v2911_v16 = vld [vmem:[%s4738_s0 + $0x368] sm:$0xf] }
 0x230   :  { %v1772_v34 = vadd.f32 %v1771_v60, %v1603_v56  ;;  %v2133_v11 = vadd.f32 %v4253_v2, %v2132_v4  ;;  %v2892_v21 = vor.u32 %v3213_v57, %v2889_v19  ;;  %v3218_v4 = vld [vmem:[%s4738_s0 + $0x36c] sm:$0xf] }
 0x231   :  { %1475 = vmatmul.bf16.gmra.mxu1 %v2876_v18  ;;  %1644 = vmatmul.bf16.gmra.mxu2 %v2880_v36 }
 0x232   :  { %v2290_v26 = vmax.f32 %v2133_v11, 0.0  ;;  %2179 = vmatmul.f32.gmra.mxu0 %v1772_v34  ;;  %v2913_v11 = vld [vmem:[%s4738_s0 + $0x378] sm:$0xf0] }
 0x234   :  { %1813 = vmatmul.bf16.gmra.mxu3 %v2884_v49  ;;  %v3312_v47 = vpack.c.bf16 %v2290_v26, %v2289_v35  ;;  %v1605_v27 = vpop.f32.mrf.mxu2  ;;  %v3220_v49 = vld [vmem:[%s4738_s0 + $0x374] sm:$0xf0] }
 0x235   :  { %v1606_v46 = vadd.f32 %v1605_v27, %v1437_v45  ;;  %v2912_v27 = vor.u32 %v3220_v49, %v2911_v16 }
 0x236   :  { %3436 = vst [vmem:[%s4741_s4 + $0x40] sm:$0xff] %v3312_v47   ;;  %v1438_v28 = vpop.f32.mrf.mxu1 }
 0x237   :  { %v1774_v50 = vpop.f32.mrf.mxu3  ;;  %v2135_v38 = vpop.f32.mrf.mxu0  ;;  %v1439_v3 = vadd.f32 %v1438_v28, %v3876_v31  ;;  %v2916_v28 = vor.u32 %v3218_v4, %v2913_v11 }
 0x238   :  { %v1775_v14 = vadd.f32 %v1774_v50, %v1606_v46  ;;  %v2136_v5 = vadd.f32 %v4253_v2, %v2135_v38 }
 0x23a   :  { %2182 = vmatmul.f32.gmra.mxu0 %v1775_v14  ;;  %v2291_v29 = vmax.f32 %v2136_v5, 0.0  ;;  %v3224_v5 = vld [vmem:[%s4738_s0 + $0x394] sm:$0xf0] }
 0x23c   :  { %v1607_v41 = vpop.f32.mrf.mxu2 }
 0x23d   :  { %v1608_v1 = vadd.f32 %v1607_v41, %v1439_v3 }
 0x23e   :  { %v1441_v24 = vpop.f32.mrf.mxu1 }
 0x23f   :  { %v1776_v48 = vpop.f32.mrf.mxu3  ;;  %v2138_v63 = vpop.f32.mrf.mxu0  ;;  %v1442_v6 = vadd.f32 %v1441_v24, %v3885_v39  ;;  %v2905_v39 = vld [vmem:[%s4738_s0 + $0x370] sm:$0xf0] }
 0x240   :  { %v1777_v15 = vadd.f32 %v1776_v48, %v1608_v1  ;;  %v2139_v31 = vadd.f32 %v4253_v2, %v2138_v63  ;;  %v2908_v47 = vor.u32 %v3217_v55, %v2905_v39 }
 0x241   :  { %1480 = vmatmul.bf16.gmra.mxu1 %v2892_v21  ;;  %1649 = vmatmul.bf16.gmra.mxu2 %v2896_v54  ;;  %v3221_v21 = vld [vmem:[%s4738_s0 + $0x384] sm:$0xf]  ;;  %v2927_v54 = vld [vmem:[%s4738_s0 + $0x388] sm:$0xf] }
 0x242   :  { %v2292_v22 = vmax.f32 %v2139_v31, 0.0  ;;  %2185 = vmatmul.f32.gmra.mxu0 %v1777_v15  ;;  %v2929_v15 = vld [vmem:[%s4738_s0 + $0x398] sm:$0xf0] }
 0x244   :  { %1818 = vmatmul.bf16.gmra.mxu3 %v2900_v32  ;;  %v3317_v44 = vpack.c.bf16 %v2292_v22, %v2291_v29  ;;  %v1610_v8 = vpop.f32.mrf.mxu2  ;;  %v3222_v32 = vld [vmem:[%s4738_s0 + $0x38c] sm:$0xf] }
 0x245   :  { %v1611_v17 = vadd.f32 %v1610_v8, %v1442_v6  ;;  %v2928_v6 = vor.u32 %v3224_v5, %v2927_v54 }
 0x246   :  { %3437 = vst [vmem:[%s4741_s4 + $0x48] sm:$0xff] %v3317_v44   ;;  %v1443_v60 = vpop.f32.mrf.mxu1 }
 0x247   :  { %v1779_v56 = vpop.f32.mrf.mxu3  ;;  %v2141_v36 = vpop.f32.mrf.mxu0  ;;  %v1444_v34 = vadd.f32 %v1443_v60, %v3918_v51 }
 0x248   :  { %v1780_v18 = vadd.f32 %v1779_v56, %v1611_v17  ;;  %v2142_v46 = vadd.f32 %v4253_v2, %v2141_v36  ;;  %v2932_v17 = vor.u32 %v3222_v32, %v2929_v15  ;;  %v3229_v15 = vld [vmem:[%s4738_s0 + $0x3c4] sm:$0xf] }
 0x24a   :  { %2188 = vmatmul.f32.gmra.mxu0 %v1780_v18  ;;  %v2293_v57 = vmax.f32 %v2142_v46, 0.0  ;;  %v3226_v46 = vld [vmem:[%s4738_s0 + $0x3ac] sm:$0xf] }
 0x24c   :  { %v1612_v35 = vpop.f32.mrf.mxu2 }
 0x24d   :  { %v1613_v26 = vadd.f32 %v1612_v35, %v1444_v34 }
 0x24e   :  { %v1446_v50 = vpop.f32.mrf.mxu1 }
 0x24f   :  { %v1781_v45 = vpop.f32.mrf.mxu3  ;;  %v2144_v38 = vpop.f32.mrf.mxu0  ;;  %v1447_v62 = vadd.f32 %v1446_v50, %v3927_v59  ;;  %v2921_v59 = vld [vmem:[%s4738_s0 + $0x390] sm:$0xf0]  ;;  %v2945_v50 = vld [vmem:[%s4738_s0 + $0x3b8] sm:$0xf0] }
 0x250   :  { %v1782_v14 = vadd.f32 %v1781_v45, %v1613_v26  ;;  %v2145_v51 = vadd.f32 %v4253_v2, %v2144_v38  ;;  %v2924_v22 = vor.u32 %v3221_v21, %v2921_v59  ;;  %v3225_v26 = vld [vmem:[%s4738_s0 + $0x3a4] sm:$0xf]  ;;  %v2943_v45 = vld [vmem:[%s4738_s0 + $0x3a8] sm:$0xf] }
 0x251   :  { %1485 = vmatmul.bf16.gmra.mxu1 %v2908_v47  ;;  %1654 = vmatmul.bf16.gmra.mxu2 %v2912_v27  ;;  %v3228_v47 = vld [vmem:[%s4738_s0 + $0x3b4] sm:$0xf0] }
 0x252   :  { %v2294_v19 = vmax.f32 %v2145_v51, 0.0  ;;  %2191 = vmatmul.f32.gmra.mxu0 %v1782_v14 }
 0x254   :  { %1823 = vmatmul.bf16.gmra.mxu3 %v2916_v28  ;;  %v3322_v37 = vpack.c.bf16 %v2294_v19, %v2293_v57  ;;  %v1615_v3 = vpop.f32.mrf.mxu2  ;;  %v2944_v57 = vor.u32 %v3228_v47, %v2943_v45 }
 0x255   :  { %v1616_v9 = vadd.f32 %v1615_v3, %v1447_v62 }
 0x256   :  { %3438 = vst [vmem:[%s4741_s4 + $0x50] sm:$0xff] %v3322_v37   ;;  %v1448_v41 = vpop.f32.mrf.mxu1  ;;  %v2948_v37 = vor.u32 %v3226_v46, %v2945_v50  ;;  %v2975_v46 = vld [vmem:[%s4738_s0 + $0x3e8] sm:$0xf]  ;;  %v3236_v50 = vld [vmem:[%s4738_s0 + $0x3f4] sm:$0xf0] }
 0x257   :  { %v1784_v10 = vpop.f32.mrf.mxu3  ;;  %v2147_v48 = vpop.f32.mrf.mxu0  ;;  %v1449_v24 = vadd.f32 %v1448_v41, %v3960_v12 }
 0x258   :  { %v1785_v1 = vadd.f32 %v1784_v10, %v1616_v9  ;;  %v2148_v44 = vadd.f32 %v4253_v2, %v2147_v48 }
 0x25a   :  { %2194 = vmatmul.f32.gmra.mxu0 %v1785_v1  ;;  %v2295_v18 = vmax.f32 %v2148_v44, 0.0 }
 0x25c   :  { %v1617_v63 = vpop.f32.mrf.mxu2 }
 0x25d   :  { %v1618_v31 = vadd.f32 %v1617_v63, %v1449_v24  ;;  %v2959_v63 = vld [vmem:[%s4738_s0 + $0x3c8] sm:$0xf] }
 0x25e   :  { %v1451_v8 = vpop.f32.mrf.mxu1 }
 0x25f   :  { %v1786_v29 = vpop.f32.mrf.mxu3  ;;  %v2150_v60 = vpop.f32.mrf.mxu0  ;;  %v1452_v55 = vadd.f32 %v1451_v8, %v3969_v25  ;;  %v2937_v25 = vld [vmem:[%s4738_s0 + $0x3b0] sm:$0xf0] }
 0x260   :  { %v1787_v56 = vadd.f32 %v1786_v29, %v1618_v31  ;;  %v2151_v12 = vadd.f32 %v4253_v2, %v2150_v60  ;;  %v2940_v51 = vor.u32 %v3225_v26, %v2937_v25  ;;  %v3232_v31 = vld [vmem:[%s4738_s0 + $0x3d4] sm:$0xf0] }
 0x261   :  { %1490 = vmatmul.bf16.gmra.mxu1 %v2924_v22  ;;  %1659 = vmatmul.bf16.gmra.mxu2 %v2928_v6  ;;  %v3230_v22 = vld [vmem:[%s4738_s0 + $0x3cc] sm:$0xf]  ;;  %v2961_v6 = vld [vmem:[%s4738_s0 + $0x3d8] sm:$0xf0]  ;;  %v2960_v60 = vor.u32 %v3232_v31, %v2959_v63 }
 0x262   :  { %v2296_v36 = vmax.f32 %v2151_v12, 0.0  ;;  %2197 = vmatmul.f32.gmra.mxu0 %v1787_v56 }
 0x264   :  { %1828 = vmatmul.bf16.gmra.mxu3 %v2932_v17  ;;  %v3327_v39 = vpack.c.bf16 %v2296_v36, %v2295_v18  ;;  %v1620_v16 = vpop.f32.mrf.mxu2  ;;  %v2964_v36 = vor.u32 %v3230_v22, %v2961_v6 }
 0x265   :  { %v1621_v49 = vadd.f32 %v1620_v16, %v1452_v55 }
 0x266   :  { %3439 = vst [vmem:[%s4741_s4 + $0x58] sm:$0xff] %v3327_v39   ;;  %v1453_v4 = vpop.f32.mrf.mxu1 }
 0x267   :  { %v1789_v34 = vpop.f32.mrf.mxu3  ;;  %v2153_v35 = vpop.f32.mrf.mxu0  ;;  %v1454_v27 = vadd.f32 %v1453_v4, %v4002_v43 }
 0x268   :  { %v1790_v11 = vadd.f32 %v1789_v34, %v1621_v49  ;;  %v2154_v19 = vadd.f32 %v4253_v2, %v2153_v35 }
 0x26a   :  { %2200 = vmatmul.f32.gmra.mxu0 %v1790_v11  ;;  %v2297_v10 = vmax.f32 %v2154_v19, 0.0 }
 0x26c   :  { %v1622_v28 = vpop.f32.mrf.mxu2 }
 0x26d   :  { %v1623_v14 = vadd.f32 %v1622_v28, %v1454_v27  ;;  %v3233_v27 = vld [vmem:[%s4738_s0 + $0x3e4] sm:$0xf] }
 0x26e   :  { %v1456_v62 = vpop.f32.mrf.mxu1 }
 0x26f   :  { %v1791_v38 = vpop.f32.mrf.mxu3  ;;  %v2156_v9 = vpop.f32.mrf.mxu0  ;;  %v1457_v1 = vadd.f32 %v1456_v62, %v4011_v52  ;;  %v2953_v52 = vld [vmem:[%s4738_s0 + $0x3d0] sm:$0xf0] }
 0x270   :  { %v1792_v3 = vadd.f32 %v1791_v38, %v1623_v14  ;;  %v2157_v43 = vadd.f32 %v4253_v2, %v2156_v9  ;;  %v2956_v56 = vor.u32 %v3229_v15, %v2953_v52  ;;  %v3234_v14 = vld [vmem:[%s4738_s0 + $0x3ec] sm:$0xf]  ;;  %v2977_v38 = vld [vmem:[%s4738_s0 + $0x3f8] sm:$0xf0] }
 0x271   :  { %1495 = vmatmul.bf16.gmra.mxu1 %v2940_v51  ;;  %1664 = vmatmul.bf16.gmra.mxu2 %v2944_v57 }
 0x272   :  { %v2298_v41 = vmax.f32 %v2157_v43, 0.0  ;;  %2203 = vmatmul.f32.gmra.mxu0 %v1792_v3  ;;  %v2980_v43 = vor.u32 %v3234_v14, %v2977_v38 }
 0x274   :  { %1833 = vmatmul.bf16.gmra.mxu3 %v2948_v37  ;;  %v3332_v48 = vpack.c.bf16 %v2298_v41, %v2297_v10  ;;  %v1625_v21 = vpop.f32.mrf.mxu2  ;;  %v2976_v37 = vor.u32 %v3236_v50, %v2975_v46 }
 0x275   :  { %v1626_v59 = vadd.f32 %v1625_v21, %v1457_v1 }
 0x276   :  { %3440 = vst [vmem:[%s4741_s4 + $0x60] sm:$0xff] %v3332_v48   ;;  %v1458_v5 = vpop.f32.mrf.mxu1 }
 0x277   :  { %v1794_v54 = vpop.f32.mrf.mxu3  ;;  %v2159_v32 = vpop.f32.mrf.mxu0  ;;  %v1459_v29 = vadd.f32 %v1458_v5, %v4038_v7 }
 0x278   :  { %v1795_v24 = vadd.f32 %v1794_v54, %v1626_v59  ;;  %v2160_v12 = vadd.f32 %v4253_v2, %v2159_v32 }
 0x27a   :  { %2206 = vmatmul.f32.gmra.mxu0 %v1795_v24  ;;  %v2299_v16 = vmax.f32 %v2160_v12, 0.0 }
 0x27c   :  { %v1627_v44 = vpop.f32.mrf.mxu2 }
 0x27d   :  { %v1628_v8 = vadd.f32 %v1627_v44, %v1459_v29 }
 0x27e   :  { %v1461_v18 = vpop.f32.mrf.mxu1 }
 0x27f   :  { %v1796_v17 = vpop.f32.mrf.mxu3  ;;  %v2162_v39 = vpop.f32.mrf.mxu0  ;;  %v1462_v34 = vadd.f32 %v1461_v18, %v4047_v23  ;;  %v2969_v23 = vld [vmem:[%s4738_s0 + $0x3f0] sm:$0xf0] }
 0x280   :  { %v1797_v55 = vadd.f32 %v1796_v17, %v1628_v8  ;;  %v2163_v7 = vadd.f32 %v4253_v2, %v2162_v39  ;;  %v2972_v62 = vor.u32 %v3233_v27, %v2969_v23 }
 0x281   :  { %1500 = vmatmul.bf16.gmra.mxu1 %v2956_v56  ;;  %1669 = vmatmul.bf16.gmra.mxu2 %v2960_v60 }
 0x282   :  { %v2300_v49 = vmax.f32 %v2163_v7, 0.0  ;;  %2209 = vmatmul.f32.gmra.mxu0 %v1797_v55 }
 0x284   :  { %1838 = vmatmul.bf16.gmra.mxu3 %v2964_v36  ;;  %v3337_v4 = vpack.c.bf16 %v2300_v49, %v2299_v16  ;;  %v1630_v11 = vpop.f32.mrf.mxu2 }
 0x285   :  { %v1631_v35 = vadd.f32 %v1630_v11, %v1462_v34 }
 0x286   :  { %3441 = vst [vmem:[%s4741_s4 + $0x68] sm:$0xff] %v3337_v4   ;;  %v1463_v25 = vpop.f32.mrf.mxu1 }
 0x287   :  { %v1799_v26 = vpop.f32.mrf.mxu3  ;;  %v2165_v47 = vpop.f32.mrf.mxu0  ;;  %v1464_v28 = vadd.f32 %v1463_v25, %v4071_v42 }
 0x288   :  { %v1800_v45 = vadd.f32 %v1799_v26, %v1631_v35  ;;  %v2166_v3 = vadd.f32 %v4253_v2, %v2165_v47 }
 0x28a   :  { %2212 = vmatmul.f32.gmra.mxu0 %v1800_v45  ;;  %v2301_v1 = vmax.f32 %v2166_v3, 0.0 }
 0x28c   :  { %v1632_v51 = vpop.f32.mrf.mxu2 }
 0x28d   :  { %v1633_v57 = vadd.f32 %v1632_v51, %v1464_v28 }
 0x28e   :  { %v1466_v9 = vpop.f32.mrf.mxu1 }
 0x28f   :  { %v1801_v19 = vpop.f32.mrf.mxu3  ;;  %v2168_v41 = vpop.f32.mrf.mxu0  ;;  %v1467_v21 = vadd.f32 %v1466_v9, %v4077_v58  ;;  %v4634_v58 = vld [vmem:[%s4740_s3] ss:$0 sm:$0xff] }
 0x290   :  { %v1802_v10 = vadd.f32 %v1801_v19, %v1633_v57  ;;  %v2169_v42 = vadd.f32 %v4253_v2, %v2168_v41 }
 0x291   :  { %1505 = vmatmul.bf16.gmra.mxu1 %v2972_v62  ;;  %1674 = vmatmul.bf16.gmra.mxu2 %v2976_v37 }
 0x292   :  { %v2302_v48 = vmax.f32 %v2169_v42, 0.0  ;;  %2215 = vmatmul.f32.gmra.mxu0 %v1802_v10 }
 0x294   :  { %1843 = vmatmul.bf16.gmra.mxu3 %v2980_v43  ;;  %v3342_v59 = vpack.c.bf16 %v2302_v48, %v2301_v1  ;;  %v1635_v54 = vpop.f32.mrf.mxu2 }
 0x295   :  { %v1636_v5 = vadd.f32 %v1635_v54, %v1467_v21 }
 0x296   :  { %3442 = vst [vmem:[%s4741_s4 + $0x70] sm:$0xff] %v3342_v59   ;;  %v1468_v32 = vpop.f32.mrf.mxu1 }
 0x297   :  { %v1804_v24 = vpop.f32.mrf.mxu3  ;;  %v2171_v52 = vpop.f32.mrf.mxu0  ;;  %v1469_v2 = vadd.f32 %v1468_v32, %v4101_v30 }
 0x298   :  { %v1805_v15 = vadd.f32 %v1804_v24, %v1636_v5  ;;  %v2172_v22 = vadd.f32 %v4634_v58, %v2171_v52 }
 0x29a   :  { %2218 = vmatmul.f32.gmra.mxu0 %v1805_v15  ;;  %v2303_v56 = vmax.f32 %v2172_v22, 0.0 }
 0x29c   :  { %v1637_v63 = vpop.f32.mrf.mxu2 }
 0x29d   :  { %v1638_v31 = vadd.f32 %v1637_v63, %v1469_v2 }
 0x29e   :  { %v1471_v6 = vpop.f32.mrf.mxu1 }
 0x29f   :  { %v1806_v29 = vpop.f32.mrf.mxu3  ;;  %v2174_v8 = vpop.f32.mrf.mxu0  ;;  %v1472_v30 = vadd.f32 %v1471_v6, %v3803_v0 }
 0x2a0   :  { %v1807_v44 = vadd.f32 %v1806_v29, %v1638_v31  ;;  %v2175_v17 = vadd.f32 %v4634_v58, %v2174_v8 }
 0x2a2   :  { %v2304_v60 = vmax.f32 %v2175_v17, 0.0  ;;  %2221 = vmatmul.f32.gmra.mxu0 %v1807_v44 }
 0x2a4   :  { %v3347_v12 = vpack.c.bf16 %v2304_v60, %v2303_v56  ;;  %v1640_v18 = vpop.f32.mrf.mxu2 }
 0x2a5   :  { %v1641_v36 = vadd.f32 %v1640_v18, %v1472_v30 }
 0x2a6   :  { %3443 = vst [vmem:[%s4741_s4 + $0x78] sm:$0xff] %v3347_v12   ;;  %v1473_v39 = vpop.f32.mrf.mxu1 }
 0x2a7   :  { %v1809_v55 = vpop.f32.mrf.mxu3  ;;  %v2177_v16 = vpop.f32.mrf.mxu0  ;;  %v1474_v49 = vadd.f32 %v1473_v39, %v3836_v13 }
 0x2a8   :  { %v1810_v7 = vadd.f32 %v1809_v55, %v1641_v36  ;;  %v2178_v35 = vadd.f32 %v4634_v58, %v2177_v16  ;;  %v4751_v36 = vld [vmem:[#allocation3_spill] sm:$0xff] }
 0x2aa   :  { %2224 = vmatmul.f32.gmra.mxu0 %v1810_v7  ;;  %v2305_v47 = vmax.f32 %v2178_v35, 0.0 }
 0x2ac   :  { %v1642_v34 = vpop.f32.mrf.mxu2 }
 0x2ad   :  { %v1643_v4 = vadd.f32 %v1642_v34, %v1474_v49 }
 0x2ae   :  { %v1476_v0 = vpop.f32.mrf.mxu1 }
 0x2af   :  { %v1811_v11 = vpop.f32.mrf.mxu3  ;;  %v2180_v25 = vpop.f32.mrf.mxu0  ;;  %v1477_v23 = vadd.f32 %v1476_v0, %v3845_v20 }
 0x2b0   :  { %v1812_v26 = vadd.f32 %v1811_v11, %v1643_v4  ;;  %v2181_v45 = vadd.f32 %v4634_v58, %v2180_v25 }
 0x2b2   :  { %v2306_v27 = vmax.f32 %v2181_v45, 0.0  ;;  %2227 = vmatmul.f32.gmra.mxu0 %v1812_v26  ;;  %v4752_v26 = vld [vmem:[#allocation4_spill] sm:$0xff] }
 0x2b4   :  { %v3352_v46 = vpack.c.bf16 %v2306_v27, %v2305_v47  ;;  %v1645_v50 = vpop.f32.mrf.mxu2 }
 0x2b5   :  { %v1646_v28 = vadd.f32 %v1645_v50, %v1477_v23 }
 0x2b6   :  { %3444 = vst [vmem:[%s4741_s4 + $0x80] sm:$0xff] %v3352_v46   ;;  %v1478_v13 = vpop.f32.mrf.mxu1 }
 0x2b7   :  { %v1814_v14 = vpop.f32.mrf.mxu3  ;;  %v2183_v51 = vpop.f32.mrf.mxu0  ;;  %v1479_v57 = vadd.f32 %v1478_v13, %v3878_v33 }
 0x2b8   :  { %v1815_v38 = vadd.f32 %v1814_v14, %v1646_v28  ;;  %v2184_v3 = vadd.f32 %v4634_v58, %v2183_v51  ;;  %v4753_v14 = vld [vmem:[#allocation5_spill] sm:$0xff] }
 0x2ba   :  { %2230 = vmatmul.f32.gmra.mxu0 %v1815_v38  ;;  %v2307_v41 = vmax.f32 %v2184_v3, 0.0 }
 0x2bc   :  { %v1647_v19 = vpop.f32.mrf.mxu2 }
 0x2bd   :  { %v1648_v62 = vadd.f32 %v1647_v19, %v1479_v57 }
 0x2be   :  { %v1481_v20 = vpop.f32.mrf.mxu1 }
 0x2bf   :  { %v1816_v37 = vpop.f32.mrf.mxu3  ;;  %v2186_v43 = vpop.f32.mrf.mxu0  ;;  %v1482_v1 = vadd.f32 %v1481_v20, %v3887_v40 }
 0x2c0   :  { %v1817_v9 = vadd.f32 %v1816_v37, %v1648_v62  ;;  %v2187_v10 = vadd.f32 %v4634_v58, %v2186_v43 }
 0x2c2   :  { %v2308_v42 = vmax.f32 %v2187_v10, 0.0  ;;  %2233 = vmatmul.f32.gmra.mxu0 %v1817_v9  ;;  %v4754_v10 = vld [vmem:[#allocation6_spill] sm:$0xff] }
 0x2c4   :  { %v3357_v48 = vpack.c.bf16 %v2308_v42, %v2307_v41  ;;  %v1650_v21 = vpop.f32.mrf.mxu2 }
 0x2c5   :  { %v1651_v59 = vadd.f32 %v1650_v21, %v1482_v1 }
 0x2c6   :  { %3445 = vst [vmem:[%s4741_s4 + $0x88] sm:$0xff] %v3357_v48   ;;  %v1483_v33 = vpop.f32.mrf.mxu1 }
 0x2c7   :  { %v1819_v54 = vpop.f32.mrf.mxu3  ;;  %v2189_v24 = vpop.f32.mrf.mxu0  ;;  %v1484_v32 = vadd.f32 %v1483_v33, %v3920_v53 }
 0x2c8   :  { %v1820_v5 = vadd.f32 %v1819_v54, %v1651_v59  ;;  %v2190_v63 = vadd.f32 %v4634_v58, %v2189_v24 }
 0x2ca   :  { %2236 = vmatmul.f32.gmra.mxu0 %v1820_v5  ;;  %v2309_v6 = vmax.f32 %v2190_v63, 0.0  ;;  %v4755_v5 = vld [vmem:[#allocation7_spill] sm:$0xff] }
 0x2cc   :  { %v1652_v15 = vpop.f32.mrf.mxu2 }
 0x2cd   :  { %v1653_v52 = vadd.f32 %v1652_v15, %v1484_v32 }
 0x2ce   :  { %v1486_v40 = vpop.f32.mrf.mxu1 }
 0x2cf   :  { %v1821_v2 = vpop.f32.mrf.mxu3  ;;  %v2192_v29 = vpop.f32.mrf.mxu0  ;;  %v1487_v8 = vadd.f32 %v1486_v40, %v3929_v61 }
 0x2d0   :  { %v1822_v31 = vadd.f32 %v1821_v2, %v1653_v52  ;;  %v2193_v22 = vadd.f32 %v4634_v58, %v2192_v29 }
 0x2d2   :  { %v2310_v44 = vmax.f32 %v2193_v22, 0.0  ;;  %2239 = vmatmul.f32.gmra.mxu0 %v1822_v31 }
 0x2d4   :  { %v3362_v17 = vpack.c.bf16 %v2310_v44, %v2309_v6  ;;  %v1655_v56 = vpop.f32.mrf.mxu2  ;;  %v4756_v44 = vld [vmem:[#allocation8_spill] sm:$0xff] }
 0x2d5   :  { %v1656_v60 = vadd.f32 %v1655_v56, %v1487_v8 }
 0x2d6   :  { %3446 = vst [vmem:[%s4741_s4 + $0x90] sm:$0xff] %v3362_v17   ;;  %v1488_v53 = vpop.f32.mrf.mxu1 }
 0x2d7   :  { %v1824_v30 = vpop.f32.mrf.mxu3  ;;  %v2195_v18 = vpop.f32.mrf.mxu0  ;;  %v1489_v55 = vadd.f32 %v1488_v53, %v4751_v36  ;;  %v4757_v36 = vld [vmem:[#allocation9_spill] sm:$0xff] }
 0x2d8   :  { %v1825_v12 = vadd.f32 %v1824_v30, %v1656_v60  ;;  %v2196_v49 = vadd.f32 %v4634_v58, %v2195_v18 }
 0x2da   :  { %2242 = vmatmul.f32.gmra.mxu0 %v1825_v12  ;;  %v2311_v35 = vmax.f32 %v2196_v49, 0.0 }
 0x2dc   :  { %v1657_v39 = vpop.f32.mrf.mxu2 }
 0x2dd   :  { %v1658_v7 = vadd.f32 %v1657_v39, %v1489_v55 }
 0x2de   :  { %v1491_v61 = vpop.f32.mrf.mxu1 }
 0x2df   :  { %v1826_v16 = vpop.f32.mrf.mxu3  ;;  %v2198_v4 = vpop.f32.mrf.mxu0  ;;  %v1492_v25 = vadd.f32 %v1491_v61, %v4752_v26  ;;  %v4758_v26 = vld [vmem:[#allocation10_spill] sm:$0xff] }
 0x2e0   :  { %v1827_v34 = vadd.f32 %v1826_v16, %v1658_v7  ;;  %v2199_v11 = vadd.f32 %v4634_v58, %v2198_v4 }
 0x2e2   :  { %v2312_v0 = vmax.f32 %v2199_v11, 0.0  ;;  %2245 = vmatmul.f32.gmra.mxu0 %v1827_v34 }
 0x2e4   :  { %v3367_v45 = vpack.c.bf16 %v2312_v0, %v2311_v35  ;;  %v1660_v47 = vpop.f32.mrf.mxu2 }
 0x2e5   :  { %v1661_v27 = vadd.f32 %v1660_v47, %v1492_v25 }
 0x2e6   :  { %3447 = vst [vmem:[%s4741_s4 + $0x98] sm:$0xff] %v3367_v45   ;;  %v1493_v46 = vpop.f32.mrf.mxu1 }
 0x2e7   :  { %v1829_v23 = vpop.f32.mrf.mxu3  ;;  %v2201_v28 = vpop.f32.mrf.mxu0  ;;  %v1494_v13 = vadd.f32 %v1493_v46, %v4753_v14  ;;  %v4759_v14 = vld [vmem:[#allocation11_spill] sm:$0xff] }
 0x2e8   :  { %v1830_v50 = vadd.f32 %v1829_v23, %v1661_v27  ;;  %v2202_v19 = vadd.f32 %v4634_v58, %v2201_v28 }
 0x2ea   :  { %2248 = vmatmul.f32.gmra.mxu0 %v1830_v50  ;;  %v2313_v9 = vmax.f32 %v2202_v19, 0.0 }
 0x2ec   :  { %v1662_v38 = vpop.f32.mrf.mxu2 }
 0x2ed   :  { %v1663_v51 = vadd.f32 %v1662_v38, %v1494_v13 }
 0x2ee   :  { %v1496_v62 = vpop.f32.mrf.mxu1 }
 0x2ef   :  { %v1831_v57 = vpop.f32.mrf.mxu3  ;;  %v2204_v3 = vpop.f32.mrf.mxu0  ;;  %v1497_v41 = vadd.f32 %v1496_v62, %v4754_v10 }
 0x2f0   :  { %v1832_v37 = vadd.f32 %v1831_v57, %v1663_v51  ;;  %v2205_v20 = vadd.f32 %v4634_v58, %v2204_v3 }
 0x2f2   :  { %v2314_v43 = vmax.f32 %v2205_v20, 0.0  ;;  %2251 = vmatmul.f32.gmra.mxu0 %v1832_v37 }
 0x2f4   :  { %v3372_v42 = vpack.c.bf16 %v2314_v43, %v2313_v9  ;;  %v1665_v1 = vpop.f32.mrf.mxu2 }
 0x2f5   :  { %v1666_v48 = vadd.f32 %v1665_v1, %v1497_v41 }
 0x2f6   :  { %3448 = vst [vmem:[%s4741_s4 + $0xa0] sm:$0xff] %v3372_v42   ;;  %v1498_v59 = vpop.f32.mrf.mxu1 }
 0x2f7   :  { %v1834_v21 = vpop.f32.mrf.mxu3  ;;  %v2207_v33 = vpop.f32.mrf.mxu0  ;;  %v1499_v24 = vadd.f32 %v1498_v59, %v4755_v5 }
 0x2f8   :  { %v1835_v54 = vadd.f32 %v1834_v21, %v1666_v48  ;;  %v2208_v2 = vadd.f32 %v4634_v58, %v2207_v33 }
 0x2fa   :  { %2254 = vmatmul.f32.gmra.mxu0 %v1835_v54  ;;  %v2315_v22 = vmax.f32 %v2208_v2, 0.0 }
 0x2fc   :  { %v1667_v32 = vpop.f32.mrf.mxu2 }
 0x2fd   :  { %v1668_v15 = vadd.f32 %v1667_v32, %v1499_v24 }
 0x2fe   :  { %v1501_v63 = vpop.f32.mrf.mxu1 }
 0x2ff   :  { %v1836_v52 = vpop.f32.mrf.mxu3  ;;  %v2210_v31 = vpop.f32.mrf.mxu0  ;;  %v1502_v8 = vadd.f32 %v1501_v63, %v4756_v44 }
 0x300   :  { %v1837_v40 = vadd.f32 %v1836_v52, %v1668_v15  ;;  %v2211_v29 = vadd.f32 %v4634_v58, %v2210_v31 }
 0x302   :  { %v2316_v6 = vmax.f32 %v2211_v29, 0.0  ;;  %2257 = vmatmul.f32.gmra.mxu0 %v1837_v40 }
 0x304   :  { %v3377_v17 = vpack.c.bf16 %v2316_v6, %v2315_v22  ;;  %v1670_v56 = vpop.f32.mrf.mxu2 }
 0x305   :  { %v1671_v60 = vadd.f32 %v1670_v56, %v1502_v8 }
 0x306   :  { %3449 = vst [vmem:[%s4741_s4 + $0xa8] sm:$0xff] %v3377_v17   ;;  %v1503_v53 = vpop.f32.mrf.mxu1 }
 0x307   :  { %v1839_v30 = vpop.f32.mrf.mxu3  ;;  %v2213_v18 = vpop.f32.mrf.mxu0  ;;  %v1504_v55 = vadd.f32 %v1503_v53, %v4757_v36 }
 0x308   :  { %v1840_v12 = vadd.f32 %v1839_v30, %v1671_v60  ;;  %v2214_v49 = vadd.f32 %v4634_v58, %v2213_v18 }
 0x30a   :  { %2260 = vmatmul.f32.gmra.mxu0 %v1840_v12  ;;  %v2317_v35 = vmax.f32 %v2214_v49, 0.0 }
 0x30c   :  { %v1672_v39 = vpop.f32.mrf.mxu2 }
 0x30d   :  { %v1673_v7 = vadd.f32 %v1672_v39, %v1504_v55 }
 0x30e   :  { %v1506_v61 = vpop.f32.mrf.mxu1 }
 0x30f   :  { %v1841_v16 = vpop.f32.mrf.mxu3  ;;  %v2216_v4 = vpop.f32.mrf.mxu0  ;;  %v1507_v25 = vadd.f32 %v1506_v61, %v4758_v26 }
 0x310   :  { %v1842_v34 = vadd.f32 %v1841_v16, %v1673_v7  ;;  %v2217_v11 = vadd.f32 %v4634_v58, %v2216_v4 }
 0x312   :  { %v2318_v0 = vmax.f32 %v2217_v11, 0.0  ;;  %2263 = vmatmul.f32.gmra.mxu0 %v1842_v34 }
 0x314   :  { %v3382_v45 = vpack.c.bf16 %v2318_v0, %v2317_v35  ;;  %v1675_v47 = vpop.f32.mrf.mxu2 }
 0x315   :  { %v1676_v27 = vadd.f32 %v1675_v47, %v1507_v25 }
 0x316   :  { %3450 = vst [vmem:[%s4741_s4 + $0xb0] sm:$0xff] %v3382_v45   ;;  %v1508_v28 = vpop.f32.mrf.mxu1 }
 0x317   :  { %v1844_v23 = vpop.f32.mrf.mxu3  ;;  %v2219_v50 = vpop.f32.mrf.mxu0  ;;  %v1509_v13 = vadd.f32 %v1508_v28, %v4759_v14 }
 0x318   :  { %v1845_v46 = vadd.f32 %v1844_v23, %v1676_v27  ;;  %v2220_v57 = vadd.f32 %v4634_v58, %v2219_v50 }
 0x31a   :  { %2266 = vmatmul.f32.gmra.mxu0 %v1845_v46  ;;  %v2319_v20 = vmax.f32 %v2220_v57, 0.0 }
 0x31c   :  { %v1677_v38 = vpop.f32.mrf.mxu2 }
 0x31d   :  { %v1678_v51 = vadd.f32 %v1677_v38, %v1509_v13 }
 0x31f   :  { %v1846_v19 = vpop.f32.mrf.mxu3  ;;  %v2222_v37 = vpop.f32.mrf.mxu0 }
 0x320   :  { %v1847_v62 = vadd.f32 %v1846_v19, %v1678_v51  ;;  %v2223_v3 = vadd.f32 %v4634_v58, %v2222_v37 }
 0x322   :  { %v2320_v9 = vmax.f32 %v2223_v3, 0.0  ;;  %2269 = vmatmul.f32.gmra.mxu0 %v1847_v62 }
 0x324   :  { %v3387_v43 = vpack.c.bf16 %v2320_v9, %v2319_v20 }
 0x326   :  { %3451 = vst [vmem:[%s4741_s4 + $0xb8] sm:$0xff] %v3387_v43  }
 0x327   :  { %v2225_v10 = vpop.f32.mrf.mxu0 }
 0x328   :  { %v2226_v41 = vadd.f32 %v4634_v58, %v2225_v10 }
 0x32a   :  { %v2321_v48 = vmax.f32 %v2226_v41, 0.0 }
 0x32f   :  { %v2228_v42 = vpop.f32.mrf.mxu0 }
 0x330   :  { %v2229_v1 = vadd.f32 %v4634_v58, %v2228_v42 }
 0x332   :  { %v2322_v21 = vmax.f32 %v2229_v1, 0.0 }
 0x334   :  { %v3392_v59 = vpack.c.bf16 %v2322_v21, %v2321_v48 }
 0x336   :  { %3452 = vst [vmem:[%s4741_s4 + $0xc0] sm:$0xff] %v3392_v59  }
 0x337   :  { %v2231_v54 = vpop.f32.mrf.mxu0 }
 0x338   :  { %v2232_v33 = vadd.f32 %v4634_v58, %v2231_v54 }
 0x33a   :  { %v2323_v32 = vmax.f32 %v2232_v33, 0.0 }
 0x33f   :  { %v2234_v5 = vpop.f32.mrf.mxu0 }
 0x340   :  { %v2235_v24 = vadd.f32 %v4634_v58, %v2234_v5 }
 0x342   :  { %v2324_v15 = vmax.f32 %v2235_v24, 0.0 }
 0x344   :  { %v3397_v52 = vpack.c.bf16 %v2324_v15, %v2323_v32 }
 0x346   :  { %3453 = vst [vmem:[%s4741_s4 + $0xc8] sm:$0xff] %v3397_v52  }
 0x347   :  { %v2237_v2 = vpop.f32.mrf.mxu0 }
 0x348   :  { %v2238_v63 = vadd.f32 %v4634_v58, %v2237_v2 }
 0x34a   :  { %v2325_v29 = vmax.f32 %v2238_v63, 0.0 }
 0x34f   :  { %v2240_v40 = vpop.f32.mrf.mxu0 }
 0x350   :  { %v2241_v31 = vadd.f32 %v4634_v58, %v2240_v40 }
 0x352   :  { %v2326_v22 = vmax.f32 %v2241_v31, 0.0 }
 0x354   :  { %v3402_v6 = vpack.c.bf16 %v2326_v22, %v2325_v29 }
 0x356   :  { %3454 = vst [vmem:[%s4741_s4 + $0xd0] sm:$0xff] %v3402_v6  }
 0x357   :  { %v2243_v44 = vpop.f32.mrf.mxu0 }
 0x358   :  { %v2244_v8 = vadd.f32 %v4634_v58, %v2243_v44 }
 0x35a   :  { %v2327_v60 = vmax.f32 %v2244_v8, 0.0 }
 0x35f   :  { %v2246_v17 = vpop.f32.mrf.mxu0 }
 0x360   :  { %v2247_v56 = vadd.f32 %v4634_v58, %v2246_v17 }
 0x362   :  { %v2328_v30 = vmax.f32 %v2247_v56, 0.0 }
 0x364   :  { %v3407_v53 = vpack.c.bf16 %v2328_v30, %v2327_v60 }
 0x366   :  { %3455 = vst [vmem:[%s4741_s4 + $0xd8] sm:$0xff] %v3407_v53  }
 0x367   :  { %v2249_v12 = vpop.f32.mrf.mxu0 }
 0x368   :  { %v2250_v18 = vadd.f32 %v4634_v58, %v2249_v12 }
 0x36a   :  { %v2329_v39 = vmax.f32 %v2250_v18, 0.0 }
 0x36f   :  { %v2252_v36 = vpop.f32.mrf.mxu0 }
 0x370   :  { %v2253_v55 = vadd.f32 %v4634_v58, %v2252_v36 }
 0x372   :  { %v2330_v7 = vmax.f32 %v2253_v55, 0.0 }
 0x374   :  { %v3412_v16 = vpack.c.bf16 %v2330_v7, %v2329_v39 }
 0x376   :  { %3456 = vst [vmem:[%s4741_s4 + $0xe0] sm:$0xff] %v3412_v16  }
 0x377   :  { %v2255_v49 = vpop.f32.mrf.mxu0 }
 0x378   :  { %v2256_v61 = vadd.f32 %v4634_v58, %v2255_v49 }
 0x37a   :  { %v2331_v11 = vmax.f32 %v2256_v61, 0.0 }
 0x37f   :  { %v2258_v34 = vpop.f32.mrf.mxu0 }
 0x380   :  { %v2259_v4 = vadd.f32 %v4634_v58, %v2258_v34 }
 0x382   :  { %v2332_v35 = vmax.f32 %v2259_v4, 0.0 }
 0x384   :  { %v3417_v0 = vpack.c.bf16 %v2332_v35, %v2331_v11 }
 0x386   :  { %3457 = vst [vmem:[%s4741_s4 + $0xe8] sm:$0xff] %v3417_v0  }
 0x387   :  { %v2261_v26 = vpop.f32.mrf.mxu0 }
 0x388   :  { %v2262_v25 = vadd.f32 %v4634_v58, %v2261_v26 }
 0x38a   :  { %v2333_v27 = vmax.f32 %v2262_v25, 0.0 }
 0x38f   :  { %v2264_v45 = vpop.f32.mrf.mxu0 }
 0x390   :  { %v2265_v47 = vadd.f32 %v4634_v58, %v2264_v45 }
 0x392   :  { %v2334_v23 = vmax.f32 %v2265_v47, 0.0 }
 0x394   :  { %v3422_v46 = vpack.c.bf16 %v2334_v23, %v2333_v27 }
 0x396   :  { %3458 = vst [vmem:[%s4741_s4 + $0xf0] sm:$0xff] %v3422_v46  }
 0x397   :  { %v2267_v50 = vpop.f32.mrf.mxu0 }
 0x398   :  { %v2268_v28 = vadd.f32 %v4634_v58, %v2267_v50 }
 0x39a   :  { %v2335_v38 = vmax.f32 %v2268_v28, 0.0 }
 0x39f   :  { %v2270_v14 = vpop.f32.mrf.mxu0 }
 0x3a0   :  { %v2271_v13 = vadd.f32 %v4634_v58, %v2270_v14 }
 0x3a2   :  { %v2336_v51 = vmax.f32 %v2271_v13, 0.0 }
 0x3a4   :  { %v3427_v57 = vpack.c.bf16 %v2336_v51, %v2335_v38 }
 0x3a6   :  { %3459 = vst [vmem:[%s4741_s4 + $0xf8] sm:$0xff] %v3427_v57  }

</bundles_post_ra>
